<compile_context>
chip_gen: v7x
topology: tpu7x:2x2x1
jax: 0.10.0
libtpu: 0.0.40
codegen_flags: <defaults>
</compile_context>

<pallas_src>
import functools

import jax
import jax.numpy as jnp
from jax.experimental import pallas as pl
from jax.experimental.pallas import tpu as pltpu

BN_EPS = 1e-5
LANE = 128
NUM_BLOCKS = 6
BLOCK_NAMES = ("enc1", "enc2", "enc3", "dec1", "dec2", "dec3")


# ------------------------------- fused kernel ------------------------------- #

def _unet_fused_kernel(has_res, x_ref, t_ref, tw1_ref, tb1_ref, tw2_ref,
                       tb2_ref, w1rx_ref, w1r_ref, b1r_ref, w2_ref, b2_ref,
                       o_ref):
    """Whole UNet forward on one (BM, P) batch tile, weights VMEM-resident.

    x_ref : (BM, input_dim) f32   raw input tile (no host-side padding)
    t_ref : (BM, 1)         f32   timestep column
    tw1   : (1, P) f32, tb1: (1, P) f32      time-embed Linear(1, T)
    tw2   : (P, P) bf16, tb2: (1, P) f32     time-embed Linear(T, T)
    w1rx  : (input_dim, 2P) bf16   block-0 fused [W1|Wres] rows multiplying x
    w1r   : (NB, P, 2P) bf16       per-block fused [W1|Wres] (BN folded in);
                                   block 0 holds the t_emb rows only
    b1r   : (NB, 2P) f32           per-block fused [b1|bres]
    w2    : (NB, P, P) bf16, b2: (NB, P) f32
    """
    P = tw2_ref.shape[0]
    bf16 = jnp.bfloat16

    # ---- time embedding: Linear(1, T) -> ReLU -> Linear(T, T) ----
    # K == 1 first layer is a broadcast multiply on the VPU (no MXU op).
    h = jnp.maximum(t_ref[...] * tw1_ref[...] + tb1_ref[...], 0.0)       # (BM, P)
    t_emb = jnp.dot(h.astype(bf16), tw2_ref[...],
                    preferred_element_type=jnp.float32) + tb2_ref[...]   # (BM, P)

    # ---- block 0 (encoder1): concat([x, t_embed]) folded into the fused
    #      [W1|Wres] matmul by splitting its K rows (x part + t_emb part). ----
    pre = (jnp.dot(x_ref[...].astype(bf16), w1rx_ref[...],
                   preferred_element_type=jnp.float32)
           + jnp.dot(t_emb.astype(bf16), w1r_ref[0],
                     preferred_element_type=jnp.float32)
           + b1r_ref[pl.ds(0, 1), :])                                    # (BM, 2P)
    h1 = jnp.maximum(pre[:, :P], 0.0)
    res = pre[:, P:]
    h2 = jnp.maximum(
        jnp.dot(h1.astype(bf16), w2_ref[0], preferred_element_type=jnp.float32)
        + b2_ref[pl.ds(0, 1), :], 0.0)
    z = h2 + res

    # ---- remaining blocks, statically unrolled ----
    for k in range(1, w1r_ref.shape[0]):
        zb = z.astype(bf16)
        if has_res[k]:
            # one (P, 2P) fused matmul: cols [0,P) -> W1 path, [P,2P) -> Wres
            pre = (jnp.dot(zb, w1r_ref[k], preferred_element_type=jnp.float32)
                   + b1r_ref[pl.ds(k, 1), :])
            h1 = jnp.maximum(pre[:, :P], 0.0)
            res = pre[:, P:]
        else:
            # identity residual: skip the Wres half of the matmul entirely
            h1 = jnp.maximum(
                jnp.dot(zb, w1r_ref[k][:, :P],
                        preferred_element_type=jnp.float32)
                + b1r_ref[pl.ds(k, 1), :P], 0.0)
            res = z
        h2 = jnp.maximum(
            jnp.dot(h1.astype(bf16), w2_ref[k],
                    preferred_element_type=jnp.float32)
            + b2_ref[pl.ds(k, 1), :], 0.0)
        z = h2 + res

    o_ref[...] = z.astype(o_ref.dtype)


# ------------------------------ pallas wrapper ------------------------------ #

def _const_spec(a):
    # Full-extent block, constant index_map -> stays VMEM-resident across grid.
    return pl.BlockSpec(a.shape, lambda i, _n=a.ndim: (0,) * _n)


def unet_forward(packed, x, t, *, has_res, block_m=128):
    """x: [B, input_dim] f32, t: [B] f32 -> [B, input_dim] f32 (eval mode)."""
    B, input_dim = x.shape
    P = packed["te_w2"].shape[0]
    n_blocks = packed["W1R"].shape[0]

    bm = min(block_m, B)
    assert B % bm == 0 and bm % 8 == 0, (B, bm)
    grid = (B // bm,)

    t_col = t.astype(jnp.float32)[:, None]                  # (B, 1)

    weights = (packed["te_w1"], packed["te_b1"], packed["te_w2"],
               packed["te_b2"], packed["w1rx"], packed["W1R"],
               packed["B1R"], packed["W2"], packed["B2"])
    args = (x.astype(jnp.float32), t_col) + weights

    # Approximate (padded-width) cost: te2 + per-block (P,2P)+(P,P) matmuls
    # plus block-0's x-row part.
    flops = 2 * B * P * P * (1 + 3 * n_blocks) + 4 * B * input_dim * P
    bytes_accessed = (sum(int(a.size) * a.dtype.itemsize for a in args)
                      + B * P * 4)

    out_pad = pl.pallas_call(
        functools.partial(_unet_fused_kernel, has_res),
        out_shape=jax.ShapeDtypeStruct((B, P), jnp.float32),
        grid=grid,
        in_specs=[
            pl.BlockSpec((bm, input_dim), lambda i: (i, 0)),   # x batch tile
            pl.BlockSpec((bm, 1), lambda i: (i, 0)),           # t batch tile
        ] + [_const_spec(w) for w in weights],
        out_specs=pl.BlockSpec((bm, P), lambda i: (i, 0)),
        compiler_params=pltpu.CompilerParams(
            dimension_semantics=("parallel",),
            vmem_limit_bytes=32 * 1024 * 1024),
        cost_estimate=pl.CostEstimate(
            flops=flops, transcendentals=0, bytes_accessed=bytes_accessed),
    )(*args)

    return out_pad[:, :input_dim]        # lane-dense store, slice outside


# ------------------------------ parameter init ------------------------------ #

def _init_linear(key, in_f, out_f):
    kw, kb = jax.random.split(key)
    w = 0.05 * jax.random.normal(kw, (in_f, out_f), jnp.float32)
    b = 0.01 * jax.random.normal(kb, (1, out_f), jnp.float32)
    return w, b


def _init_bn(out_f):
    # PyTorch BatchNorm1d defaults: gamma=1, beta=0, running_mean=0, running_var=1
    gamma = jnp.ones((1, out_f), jnp.float32)
    beta = jnp.zeros((1, out_f), jnp.float32)
    mean = jnp.zeros((1, out_f), jnp.float32)
    var = jnp.ones((1, out_f), jnp.float32)
    scale = gamma / jnp.sqrt(var + BN_EPS)
    shift = beta - mean * scale
    return scale, shift


def _init_residual_block(key, in_f, out_f):
    k1, k2, k3 = jax.random.split(key, 3)
    w1, b1 = _init_linear(k1, in_f, out_f)
    s1, t1 = _init_bn(out_f)
    w2, b2 = _init_linear(k2, out_f, out_f)
    s2, t2 = _init_bn(out_f)
    if in_f != out_f:
        wr, br = _init_linear(k3, in_f, out_f)
    else:
        wr, br = None, None
    return dict(w1=w1, b1=b1, s1=s1, t1=t1,
                w2=w2, b2=b2, s2=s2, t2=t2, wr=wr, br=br)


def init_unet_params(key, input_dim, hidden_dim, time_embed_dim):
    ks = jax.random.split(key, 8)
    te_w1, te_b1 = _init_linear(ks[0], 1, time_embed_dim)
    te_w2, te_b2 = _init_linear(ks[1], time_embed_dim, time_embed_dim)
    return dict(
        te_w1=te_w1, te_b1=te_b1, te_w2=te_w2, te_b2=te_b2,
        enc1=_init_residual_block(ks[2], input_dim + time_embed_dim, hidden_dim),
        enc2=_init_residual_block(ks[3], hidden_dim, hidden_dim * 2),
        enc3=_init_residual_block(ks[4], hidden_dim * 2, hidden_dim * 4),
        dec1=_init_residual_block(ks[5], hidden_dim * 4, hidden_dim * 2),
        dec2=_init_residual_block(ks[6], hidden_dim * 2, hidden_dim),
        dec3=_init_residual_block(ks[7], hidden_dim, input_dim),
    )


# --------------------------- BN fold + lane packing -------------------------- #

def _round_up(n, m):
    return ((n + m - 1) // m) * m


def _pad2(a, rows, cols):
    out = jnp.zeros((rows, cols), jnp.float32)
    return out.at[:a.shape[0], :a.shape[1]].set(a)


def _fold_bn(w, b, s, t):
    # Eval-mode BN folded into preceding Linear: w' = w*s, b' = b*s + t.
    return w * s, b * s + t


def pack_unet_params(raw, input_dim, hidden_dim, time_embed_dim):
    """Fold eval-mode BN into the Linears, fuse [W1|Wres] per block, pad every
    feature dim to a lane-dense multiple of 128 and cast matmul weights to
    bf16.  Returns (packed_dict, has_res_static_flags)."""
    T = time_embed_dim
    widths = [input_dim + T, hidden_dim, hidden_dim * 2, hidden_dim * 4,
              input_dim, T]
    P = _round_up(max(widths), LANE)
    P2 = 2 * P

    te_w1 = _pad2(raw["te_w1"], 1, P)                        # f32 (VPU path)
    te_b1 = _pad2(raw["te_b1"], 1, P)
    te_w2 = _pad2(raw["te_w2"], P, P).astype(jnp.bfloat16)   # out cols [0, T)
    te_b2 = _pad2(raw["te_b2"], 1, P)

    w1r, b1r, w2s, b2s, has_res = [], [], [], [], []
    w1rx = None

    for idx, name in enumerate(BLOCK_NAMES):
        blk = raw[name]
        in_f, out_f = blk["w1"].shape
        w1, b1 = _fold_bn(blk["w1"], blk["b1"], blk["s1"], blk["t1"])
        w2, b2 = _fold_bn(blk["w2"], blk["b2"], blk["s2"], blk["t2"])
        use_res = blk["wr"] is not None
        has_res.append(bool(use_res))

        # fused [W1 | Wres] at logical size (in_f, 2P); Wres half zero if identity
        wf = jnp.zeros((in_f, P2), jnp.float32).at[:, :out_f].set(w1)
        bf = jnp.zeros((P2,), jnp.float32).at[:out_f].set(b1[0])
        if use_res:
            wf = wf.at[:, P:P + out_f].set(blk["wr"])
            bf = bf.at[P:P + out_f].set(blk["br"][0])

        if idx == 0:
            # encoder1 consumes concat([x, t_embed]); split its K rows so the
            # concat is folded into two matmuls and the host never pads x.
            assert use_res, "enc1 with identity residual not supported"
            w1rx = wf[:input_dim].astype(jnp.bfloat16)        # (input_dim, 2P)
            wt = jnp.zeros((P, P2), jnp.float32).at[:T].set(wf[input_dim:])
            w1r.append(wt.astype(jnp.bfloat16))
        else:
            w1r.append(_pad2(wf, P, P2).astype(jnp.bfloat16))
        b1r.append(bf)
        w2s.append(_pad2(w2, P, P).astype(jnp.bfloat16))
        b2s.append(jnp.zeros((P,), jnp.float32).at[:out_f].set(b2[0]))

    packed = dict(te_w1=te_w1, te_b1=te_b1, te_w2=te_w2, te_b2=te_b2,
                  w1rx=w1rx, W1R=jnp.stack(w1r), B1R=jnp.stack(b1r),
                  W2=jnp.stack(w2s), B2=jnp.stack(b2s))
    return packed, tuple(has_res)


# ------------------------------ pure-JAX reference --------------------------- #

def unet_reference(raw, x, t):
    t_col = t[:, None]
    h = jnp.maximum(t_col @ raw["te_w1"] + raw["te_b1"], 0.0)
    t_emb = h @ raw["te_w2"] + raw["te_b2"]
    z = jnp.concatenate([x, t_emb], axis=-1)
    for name in BLOCK_NAMES:
        p = raw[name]
        h1 = jnp.maximum((z @ p["w1"] + p["b1"]) * p["s1"] + p["t1"], 0.0)
        h2 = jnp.maximum((h1 @ p["w2"] + p["b2"]) * p["s2"] + p["t2"], 0.0)
        res = (z @ p["wr"] + p["br"]) if p["wr"] is not None else z
        z = h2 + res
    return z


# ----------------------------------- main ------------------------------------ #

if __name__ == "__main__":
    batch = 256            # >=128 rows per tile keeps the MXU M-dim full
    block_m = 128          # batch tile (grid over batch, "parallel")
    input_dim = 16
    hidden_dim = 32
    time_embed_dim = 32

    key = jax.random.PRNGKey(0)
    kp, kx, kt = jax.random.split(key, 3)

    raw = init_unet_params(kp, input_dim, hidden_dim, time_embed_dim)
    packed, has_res = pack_unet_params(raw, input_dim, hidden_dim,
                                       time_embed_dim)

    x = jax.random.normal(kx, (batch, input_dim), jnp.float32)
    t = jax.random.uniform(kt, (batch,), jnp.float32)

    fwd = jax.jit(functools.partial(unet_forward, has_res=has_res,
                                    block_m=block_m))
    out = fwd(packed, x, t)
    jax.block_until_ready(out)

    assert out.shape == (batch, input_dim), out.shape
    assert out.dtype == jnp.float32

    ref = unet_reference(raw, x, t)
    err = float(jnp.max(jnp.abs(out - ref)))
    # bf16 matmul inputs (f32 accumulate) across 6 chained residual blocks.
    assert err < 2e-2, f"mismatch vs JAX reference: {err}"

    print("KERNEL_OK")
</pallas_src>

<mosaic_0001>
module attributes {stable_mosaic.version = 11 : i64} {
  func.func @_unet_fused_kernel(%arg0: i32, %arg1: memref<128x16xf32, #tpu.memory_space<vmem>>, %arg2: memref<128x1xf32, #tpu.memory_space<vmem>>, %arg3: memref<1x128xf32, #tpu.memory_space<vmem>>, %arg4: memref<1x128xf32, #tpu.memory_space<vmem>>, %arg5: memref<128x128xbf16, #tpu.memory_space<vmem>>, %arg6: memref<1x128xf32, #tpu.memory_space<vmem>>, %arg7: memref<16x256xbf16, #tpu.memory_space<vmem>>, %arg8: memref<6x128x256xbf16, #tpu.memory_space<vmem>>, %arg9: memref<6x256xf32, #tpu.memory_space<vmem>>, %arg10: memref<6x128x128xbf16, #tpu.memory_space<vmem>>, %arg11: memref<6x128xf32, #tpu.memory_space<vmem>>, %arg12: memref<128x128xf32, #tpu.memory_space<vmem>>) attributes {dimension_semantics = [#tpu.dimension_semantics<parallel>], iteration_bounds = array<i64: 2>, scalar_prefetch = 0 : i64, scratch_operands = 0 : i64, tpu.core_type = #tpu.core_type<tc>, window_params = [{transform_indices = @transform_0, window_bounds = array<i64: 128, 16>}, {transform_indices = @transform_1, window_bounds = array<i64: 128, 1>}, {pipeline_mode = #tpu.pipeline_mode<synchronous>, transform_indices = @transform_2, window_bounds = array<i64: 1, 128>}, {pipeline_mode = #tpu.pipeline_mode<synchronous>, transform_indices = @transform_3, window_bounds = array<i64: 1, 128>}, {pipeline_mode = #tpu.pipeline_mode<synchronous>, transform_indices = @transform_4, window_bounds = array<i64: 128, 128>}, {pipeline_mode = #tpu.pipeline_mode<synchronous>, transform_indices = @transform_5, window_bounds = array<i64: 1, 128>}, {pipeline_mode = #tpu.pipeline_mode<synchronous>, transform_indices = @transform_6, window_bounds = array<i64: 16, 256>}, {pipeline_mode = #tpu.pipeline_mode<synchronous>, transform_indices = @transform_7, window_bounds = array<i64: 6, 128, 256>}, {pipeline_mode = #tpu.pipeline_mode<synchronous>, transform_indices = @transform_8, window_bounds = array<i64: 6, 256>}, {pipeline_mode = #tpu.pipeline_mode<synchronous>, transform_indices = @transform_9, window_bounds = array<i64: 6, 128, 128>}, {pipeline_mode = #tpu.pipeline_mode<synchronous>, transform_indices = @transform_10, window_bounds = array<i64: 6, 128>}, {transform_indices = @transform_11, window_bounds = array<i64: 128, 128>}]} {
    %c0 = arith.constant 0 : index
    %c0_0 = arith.constant 0 : index
    %0 = vector.load %arg2[%c0, %c0_0] : memref<128x1xf32, #tpu.memory_space<vmem>>, vector<128x1xf32>
    %c0_1 = arith.constant 0 : index
    %c0_2 = arith.constant 0 : index
    %1 = vector.load %arg3[%c0_1, %c0_2] : memref<1x128xf32, #tpu.memory_space<vmem>>, vector<1x128xf32>
    %2 = vector.broadcast %0 : vector<128x1xf32> to vector<128x128xf32>
    %3 = vector.broadcast %1 : vector<1x128xf32> to vector<128x128xf32>
    %4 = arith.mulf %2, %3 : vector<128x128xf32>
    %c0_3 = arith.constant 0 : index
    %c0_4 = arith.constant 0 : index
    %5 = vector.load %arg4[%c0_3, %c0_4] : memref<1x128xf32, #tpu.memory_space<vmem>>, vector<1x128xf32>
    %6 = vector.broadcast %5 : vector<1x128xf32> to vector<128x128xf32>
    %7 = arith.addf %4, %6 : vector<128x128xf32>
    %cst = arith.constant 0.000000e+00 : f32
    %8 = vector.broadcast %cst : f32 to vector<128x128xf32>
    %9 = arith.maximumf %7, %8 : vector<128x128xf32>
    %10 = arith.truncf %9 : vector<128x128xf32> to vector<128x128xbf16>
    %c0_5 = arith.constant 0 : index
    %c0_6 = arith.constant 0 : index
    %11 = vector.load %arg5[%c0_5, %c0_6] : memref<128x128xbf16, #tpu.memory_space<vmem>>, vector<128x128xbf16>
    %cst_7 = arith.constant dense<0.000000e+00> : vector<128x128xf32>
    %12 = tpu.matmul %10, %11, %cst_7 {dimension_numbers = #tpu.dot_dimension_numbers<[1], [0], [0], [1], [0, 0, 1, 1], [], []>} : vector<128x128xbf16>, vector<128x128xbf16>, vector<128x128xf32> -> vector<128x128xf32>
    %c0_8 = arith.constant 0 : index
    %c0_9 = arith.constant 0 : index
    %13 = vector.load %arg6[%c0_8, %c0_9] : memref<1x128xf32, #tpu.memory_space<vmem>>, vector<1x128xf32>
    %14 = vector.broadcast %13 : vector<1x128xf32> to vector<128x128xf32>
    %15 = arith.addf %12, %14 : vector<128x128xf32>
    %c0_10 = arith.constant 0 : index
    %c0_11 = arith.constant 0 : index
    %16 = vector.load %arg1[%c0_10, %c0_11] : memref<128x16xf32, #tpu.memory_space<vmem>>, vector<128x16xf32>
    %17 = arith.truncf %16 : vector<128x16xf32> to vector<128x16xbf16>
    %c0_12 = arith.constant 0 : index
    %c0_13 = arith.constant 0 : index
    %18 = vector.load %arg7[%c0_12, %c0_13] : memref<16x256xbf16, #tpu.memory_space<vmem>>, vector<16x256xbf16>
    %cst_14 = arith.constant dense<0.000000e+00> : vector<128x256xf32>
    %19 = tpu.matmul %17, %18, %cst_14 {dimension_numbers = #tpu.dot_dimension_numbers<[1], [0], [0], [1], [0, 0, 1, 1], [], []>} : vector<128x16xbf16>, vector<16x256xbf16>, vector<128x256xf32> -> vector<128x256xf32>
    %20 = arith.truncf %15 : vector<128x128xf32> to vector<128x128xbf16>
    %c0_15 = arith.constant 0 : index
    %c0_16 = arith.constant 0 : index
    %c0_17 = arith.constant 0 : index
    %21 = vector.load %arg8[%c0_15, %c0_16, %c0_17] : memref<6x128x256xbf16, #tpu.memory_space<vmem>>, vector<1x128x256xbf16>
    %22 = vector.shape_cast %21 : vector<1x128x256xbf16> to vector<128x256xbf16>
    %cst_18 = arith.constant dense<0.000000e+00> : vector<128x256xf32>
    %23 = tpu.matmul %20, %22, %cst_18 {dimension_numbers = #tpu.dot_dimension_numbers<[1], [0], [0], [1], [0, 0, 1, 1], [], []>} : vector<128x128xbf16>, vector<128x256xbf16>, vector<128x256xf32> -> vector<128x256xf32>
    %24 = arith.addf %19, %23 : vector<128x256xf32>
    %c0_19 = arith.constant 0 : index
    %c0_20 = arith.constant 0 : index
    %25 = vector.load %arg9[%c0_19, %c0_20] : memref<6x256xf32, #tpu.memory_space<vmem>>, vector<1x256xf32>
    %26 = vector.broadcast %25 : vector<1x256xf32> to vector<128x256xf32>
    %27 = arith.addf %24, %26 : vector<128x256xf32>
    %28 = vector.extract_strided_slice %27 {offsets = [0, 0], sizes = [128, 128], strides = [1, 1]} : vector<128x256xf32> to vector<128x128xf32>
    %cst_21 = arith.constant 0.000000e+00 : f32
    %29 = vector.broadcast %cst_21 : f32 to vector<128x128xf32>
    %30 = arith.maximumf %28, %29 : vector<128x128xf32>
    %31 = vector.extract_strided_slice %27 {offsets = [0, 128], sizes = [128, 128], strides = [1, 1]} : vector<128x256xf32> to vector<128x128xf32>
    %32 = arith.truncf %30 : vector<128x128xf32> to vector<128x128xbf16>
    %c0_22 = arith.constant 0 : index
    %c0_23 = arith.constant 0 : index
    %c0_24 = arith.constant 0 : index
    %33 = vector.load %arg10[%c0_22, %c0_23, %c0_24] : memref<6x128x128xbf16, #tpu.memory_space<vmem>>, vector<1x128x128xbf16>
    %34 = vector.shape_cast %33 : vector<1x128x128xbf16> to vector<128x128xbf16>
    %cst_25 = arith.constant dense<0.000000e+00> : vector<128x128xf32>
    %35 = tpu.matmul %32, %34, %cst_25 {dimension_numbers = #tpu.dot_dimension_numbers<[1], [0], [0], [1], [0, 0, 1, 1], [], []>} : vector<128x128xbf16>, vector<128x128xbf16>, vector<128x128xf32> -> vector<128x128xf32>
    %c0_26 = arith.constant 0 : index
    %c0_27 = arith.constant 0 : index
    %36 = vector.load %arg11[%c0_26, %c0_27] : memref<6x128xf32, #tpu.memory_space<vmem>>, vector<1x128xf32>
    %37 = vector.broadcast %36 : vector<1x128xf32> to vector<128x128xf32>
    %38 = arith.addf %35, %37 : vector<128x128xf32>
    %cst_28 = arith.constant 0.000000e+00 : f32
    %39 = vector.broadcast %cst_28 : f32 to vector<128x128xf32>
    %40 = arith.maximumf %38, %39 : vector<128x128xf32>
    %41 = arith.addf %40, %31 : vector<128x128xf32>
    %42 = arith.truncf %41 : vector<128x128xf32> to vector<128x128xbf16>
    %c1 = arith.constant 1 : index
    %c0_29 = arith.constant 0 : index
    %c0_30 = arith.constant 0 : index
    %43 = vector.load %arg8[%c1, %c0_29, %c0_30] : memref<6x128x256xbf16, #tpu.memory_space<vmem>>, vector<1x128x256xbf16>
    %44 = vector.shape_cast %43 : vector<1x128x256xbf16> to vector<128x256xbf16>
    %cst_31 = arith.constant dense<0.000000e+00> : vector<128x256xf32>
    %45 = tpu.matmul %42, %44, %cst_31 {dimension_numbers = #tpu.dot_dimension_numbers<[1], [0], [0], [1], [0, 0, 1, 1], [], []>} : vector<128x128xbf16>, vector<128x256xbf16>, vector<128x256xf32> -> vector<128x256xf32>
    %c1_32 = arith.constant 1 : index
    %c0_33 = arith.constant 0 : index
    %46 = vector.load %arg9[%c1_32, %c0_33] : memref<6x256xf32, #tpu.memory_space<vmem>>, vector<1x256xf32>
    %47 = vector.broadcast %46 : vector<1x256xf32> to vector<128x256xf32>
    %48 = arith.addf %45, %47 : vector<128x256xf32>
    %49 = vector.extract_strided_slice %48 {offsets = [0, 0], sizes = [128, 128], strides = [1, 1]} : vector<128x256xf32> to vector<128x128xf32>
    %cst_34 = arith.constant 0.000000e+00 : f32
    %50 = vector.broadcast %cst_34 : f32 to vector<128x128xf32>
    %51 = arith.maximumf %49, %50 : vector<128x128xf32>
    %52 = vector.extract_strided_slice %48 {offsets = [0, 128], sizes = [128, 128], strides = [1, 1]} : vector<128x256xf32> to vector<128x128xf32>
    %53 = arith.truncf %51 : vector<128x128xf32> to vector<128x128xbf16>
    %c1_35 = arith.constant 1 : index
    %c0_36 = arith.constant 0 : index
    %c0_37 = arith.constant 0 : index
    %54 = vector.load %arg10[%c1_35, %c0_36, %c0_37] : memref<6x128x128xbf16, #tpu.memory_space<vmem>>, vector<1x128x128xbf16>
    %55 = vector.shape_cast %54 : vector<1x128x128xbf16> to vector<128x128xbf16>
    %cst_38 = arith.constant dense<0.000000e+00> : vector<128x128xf32>
    %56 = tpu.matmul %53, %55, %cst_38 {dimension_numbers = #tpu.dot_dimension_numbers<[1], [0], [0], [1], [0, 0, 1, 1], [], []>} : vector<128x128xbf16>, vector<128x128xbf16>, vector<128x128xf32> -> vector<128x128xf32>
    %c1_39 = arith.constant 1 : index
    %c0_40 = arith.constant 0 : index
    %57 = vector.load %arg11[%c1_39, %c0_40] : memref<6x128xf32, #tpu.memory_space<vmem>>, vector<1x128xf32>
    %58 = vector.broadcast %57 : vector<1x128xf32> to vector<128x128xf32>
    %59 = arith.addf %56, %58 : vector<128x128xf32>
    %cst_41 = arith.constant 0.000000e+00 : f32
    %60 = vector.broadcast %cst_41 : f32 to vector<128x128xf32>
    %61 = arith.maximumf %59, %60 : vector<128x128xf32>
    %62 = arith.addf %61, %52 : vector<128x128xf32>
    %63 = arith.truncf %62 : vector<128x128xf32> to vector<128x128xbf16>
    %c2 = arith.constant 2 : index
    %c0_42 = arith.constant 0 : index
    %c0_43 = arith.constant 0 : index
    %64 = vector.load %arg8[%c2, %c0_42, %c0_43] : memref<6x128x256xbf16, #tpu.memory_space<vmem>>, vector<1x128x256xbf16>
    %65 = vector.shape_cast %64 : vector<1x128x256xbf16> to vector<128x256xbf16>
    %cst_44 = arith.constant dense<0.000000e+00> : vector<128x256xf32>
    %66 = tpu.matmul %63, %65, %cst_44 {dimension_numbers = #tpu.dot_dimension_numbers<[1], [0], [0], [1], [0, 0, 1, 1], [], []>} : vector<128x128xbf16>, vector<128x256xbf16>, vector<128x256xf32> -> vector<128x256xf32>
    %c2_45 = arith.constant 2 : index
    %c0_46 = arith.constant 0 : index
    %67 = vector.load %arg9[%c2_45, %c0_46] : memref<6x256xf32, #tpu.memory_space<vmem>>, vector<1x256xf32>
    %68 = vector.broadcast %67 : vector<1x256xf32> to vector<128x256xf32>
    %69 = arith.addf %66, %68 : vector<128x256xf32>
    %70 = vector.extract_strided_slice %69 {offsets = [0, 0], sizes = [128, 128], strides = [1, 1]} : vector<128x256xf32> to vector<128x128xf32>
    %cst_47 = arith.constant 0.000000e+00 : f32
    %71 = vector.broadcast %cst_47 : f32 to vector<128x128xf32>
    %72 = arith.maximumf %70, %71 : vector<128x128xf32>
    %73 = vector.extract_strided_slice %69 {offsets = [0, 128], sizes = [128, 128], strides = [1, 1]} : vector<128x256xf32> to vector<128x128xf32>
    %74 = arith.truncf %72 : vector<128x128xf32> to vector<128x128xbf16>
    %c2_48 = arith.constant 2 : index
    %c0_49 = arith.constant 0 : index
    %c0_50 = arith.constant 0 : index
    %75 = vector.load %arg10[%c2_48, %c0_49, %c0_50] : memref<6x128x128xbf16, #tpu.memory_space<vmem>>, vector<1x128x128xbf16>
    %76 = vector.shape_cast %75 : vector<1x128x128xbf16> to vector<128x128xbf16>
    %cst_51 = arith.constant dense<0.000000e+00> : vector<128x128xf32>
    %77 = tpu.matmul %74, %76, %cst_51 {dimension_numbers = #tpu.dot_dimension_numbers<[1], [0], [0], [1], [0, 0, 1, 1], [], []>} : vector<128x128xbf16>, vector<128x128xbf16>, vector<128x128xf32> -> vector<128x128xf32>
    %c2_52 = arith.constant 2 : index
    %c0_53 = arith.constant 0 : index
    %78 = vector.load %arg11[%c2_52, %c0_53] : memref<6x128xf32, #tpu.memory_space<vmem>>, vector<1x128xf32>
    %79 = vector.broadcast %78 : vector<1x128xf32> to vector<128x128xf32>
    %80 = arith.addf %77, %79 : vector<128x128xf32>
    %cst_54 = arith.constant 0.000000e+00 : f32
    %81 = vector.broadcast %cst_54 : f32 to vector<128x128xf32>
    %82 = arith.maximumf %80, %81 : vector<128x128xf32>
    %83 = arith.addf %82, %73 : vector<128x128xf32>
    %84 = arith.truncf %83 : vector<128x128xf32> to vector<128x128xbf16>
    %c3 = arith.constant 3 : index
    %c0_55 = arith.constant 0 : index
    %c0_56 = arith.constant 0 : index
    %85 = vector.load %arg8[%c3, %c0_55, %c0_56] : memref<6x128x256xbf16, #tpu.memory_space<vmem>>, vector<1x128x256xbf16>
    %86 = vector.shape_cast %85 : vector<1x128x256xbf16> to vector<128x256xbf16>
    %cst_57 = arith.constant dense<0.000000e+00> : vector<128x256xf32>
    %87 = tpu.matmul %84, %86, %cst_57 {dimension_numbers = #tpu.dot_dimension_numbers<[1], [0], [0], [1], [0, 0, 1, 1], [], []>} : vector<128x128xbf16>, vector<128x256xbf16>, vector<128x256xf32> -> vector<128x256xf32>
    %c3_58 = arith.constant 3 : index
    %c0_59 = arith.constant 0 : index
    %88 = vector.load %arg9[%c3_58, %c0_59] : memref<6x256xf32, #tpu.memory_space<vmem>>, vector<1x256xf32>
    %89 = vector.broadcast %88 : vector<1x256xf32> to vector<128x256xf32>
    %90 = arith.addf %87, %89 : vector<128x256xf32>
    %91 = vector.extract_strided_slice %90 {offsets = [0, 0], sizes = [128, 128], strides = [1, 1]} : vector<128x256xf32> to vector<128x128xf32>
    %cst_60 = arith.constant 0.000000e+00 : f32
    %92 = vector.broadcast %cst_60 : f32 to vector<128x128xf32>
    %93 = arith.maximumf %91, %92 : vector<128x128xf32>
    %94 = vector.extract_strided_slice %90 {offsets = [0, 128], sizes = [128, 128], strides = [1, 1]} : vector<128x256xf32> to vector<128x128xf32>
    %95 = arith.truncf %93 : vector<128x128xf32> to vector<128x128xbf16>
    %c3_61 = arith.constant 3 : index
    %c0_62 = arith.constant 0 : index
    %c0_63 = arith.constant 0 : index
    %96 = vector.load %arg10[%c3_61, %c0_62, %c0_63] : memref<6x128x128xbf16, #tpu.memory_space<vmem>>, vector<1x128x128xbf16>
    %97 = vector.shape_cast %96 : vector<1x128x128xbf16> to vector<128x128xbf16>
    %cst_64 = arith.constant dense<0.000000e+00> : vector<128x128xf32>
    %98 = tpu.matmul %95, %97, %cst_64 {dimension_numbers = #tpu.dot_dimension_numbers<[1], [0], [0], [1], [0, 0, 1, 1], [], []>} : vector<128x128xbf16>, vector<128x128xbf16>, vector<128x128xf32> -> vector<128x128xf32>
    %c3_65 = arith.constant 3 : index
    %c0_66 = arith.constant 0 : index
    %99 = vector.load %arg11[%c3_65, %c0_66] : memref<6x128xf32, #tpu.memory_space<vmem>>, vector<1x128xf32>
    %100 = vector.broadcast %99 : vector<1x128xf32> to vector<128x128xf32>
    %101 = arith.addf %98, %100 : vector<128x128xf32>
    %cst_67 = arith.constant 0.000000e+00 : f32
    %102 = vector.broadcast %cst_67 : f32 to vector<128x128xf32>
    %103 = arith.maximumf %101, %102 : vector<128x128xf32>
    %104 = arith.addf %103, %94 : vector<128x128xf32>
    %105 = arith.truncf %104 : vector<128x128xf32> to vector<128x128xbf16>
    %c4 = arith.constant 4 : index
    %c0_68 = arith.constant 0 : index
    %c0_69 = arith.constant 0 : index
    %106 = vector.load %arg8[%c4, %c0_68, %c0_69] : memref<6x128x256xbf16, #tpu.memory_space<vmem>>, vector<1x128x256xbf16>
    %107 = vector.shape_cast %106 : vector<1x128x256xbf16> to vector<128x256xbf16>
    %cst_70 = arith.constant dense<0.000000e+00> : vector<128x256xf32>
    %108 = tpu.matmul %105, %107, %cst_70 {dimension_numbers = #tpu.dot_dimension_numbers<[1], [0], [0], [1], [0, 0, 1, 1], [], []>} : vector<128x128xbf16>, vector<128x256xbf16>, vector<128x256xf32> -> vector<128x256xf32>
    %c4_71 = arith.constant 4 : index
    %c0_72 = arith.constant 0 : index
    %109 = vector.load %arg9[%c4_71, %c0_72] : memref<6x256xf32, #tpu.memory_space<vmem>>, vector<1x256xf32>
    %110 = vector.broadcast %109 : vector<1x256xf32> to vector<128x256xf32>
    %111 = arith.addf %108, %110 : vector<128x256xf32>
    %112 = vector.extract_strided_slice %111 {offsets = [0, 0], sizes = [128, 128], strides = [1, 1]} : vector<128x256xf32> to vector<128x128xf32>
    %cst_73 = arith.constant 0.000000e+00 : f32
    %113 = vector.broadcast %cst_73 : f32 to vector<128x128xf32>
    %114 = arith.maximumf %112, %113 : vector<128x128xf32>
    %115 = vector.extract_strided_slice %111 {offsets = [0, 128], sizes = [128, 128], strides = [1, 1]} : vector<128x256xf32> to vector<128x128xf32>
    %116 = arith.truncf %114 : vector<128x128xf32> to vector<128x128xbf16>
    %c4_74 = arith.constant 4 : index
    %c0_75 = arith.constant 0 : index
    %c0_76 = arith.constant 0 : index
    %117 = vector.load %arg10[%c4_74, %c0_75, %c0_76] : memref<6x128x128xbf16, #tpu.memory_space<vmem>>, vector<1x128x128xbf16>
    %118 = vector.shape_cast %117 : vector<1x128x128xbf16> to vector<128x128xbf16>
    %cst_77 = arith.constant dense<0.000000e+00> : vector<128x128xf32>
    %119 = tpu.matmul %116, %118, %cst_77 {dimension_numbers = #tpu.dot_dimension_numbers<[1], [0], [0], [1], [0, 0, 1, 1], [], []>} : vector<128x128xbf16>, vector<128x128xbf16>, vector<128x128xf32> -> vector<128x128xf32>
    %c4_78 = arith.constant 4 : index
    %c0_79 = arith.constant 0 : index
    %120 = vector.load %arg11[%c4_78, %c0_79] : memref<6x128xf32, #tpu.memory_space<vmem>>, vector<1x128xf32>
    %121 = vector.broadcast %120 : vector<1x128xf32> to vector<128x128xf32>
    %122 = arith.addf %119, %121 : vector<128x128xf32>
    %cst_80 = arith.constant 0.000000e+00 : f32
    %123 = vector.broadcast %cst_80 : f32 to vector<128x128xf32>
    %124 = arith.maximumf %122, %123 : vector<128x128xf32>
    %125 = arith.addf %124, %115 : vector<128x128xf32>
    %126 = arith.truncf %125 : vector<128x128xf32> to vector<128x128xbf16>
    %c5 = arith.constant 5 : index
    %c0_81 = arith.constant 0 : index
    %c0_82 = arith.constant 0 : index
    %127 = vector.load %arg8[%c5, %c0_81, %c0_82] : memref<6x128x256xbf16, #tpu.memory_space<vmem>>, vector<1x128x256xbf16>
    %128 = vector.shape_cast %127 : vector<1x128x256xbf16> to vector<128x256xbf16>
    %cst_83 = arith.constant dense<0.000000e+00> : vector<128x256xf32>
    %129 = tpu.matmul %126, %128, %cst_83 {dimension_numbers = #tpu.dot_dimension_numbers<[1], [0], [0], [1], [0, 0, 1, 1], [], []>} : vector<128x128xbf16>, vector<128x256xbf16>, vector<128x256xf32> -> vector<128x256xf32>
    %c5_84 = arith.constant 5 : index
    %c0_85 = arith.constant 0 : index
    %130 = vector.load %arg9[%c5_84, %c0_85] : memref<6x256xf32, #tpu.memory_space<vmem>>, vector<1x256xf32>
    %131 = vector.broadcast %130 : vector<1x256xf32> to vector<128x256xf32>
    %132 = arith.addf %129, %131 : vector<128x256xf32>
    %133 = vector.extract_strided_slice %132 {offsets = [0, 0], sizes = [128, 128], strides = [1, 1]} : vector<128x256xf32> to vector<128x128xf32>
    %cst_86 = arith.constant 0.000000e+00 : f32
    %134 = vector.broadcast %cst_86 : f32 to vector<128x128xf32>
    %135 = arith.maximumf %133, %134 : vector<128x128xf32>
    %136 = vector.extract_strided_slice %132 {offsets = [0, 128], sizes = [128, 128], strides = [1, 1]} : vector<128x256xf32> to vector<128x128xf32>
    %137 = arith.truncf %135 : vector<128x128xf32> to vector<128x128xbf16>
    %c5_87 = arith.constant 5 : index
    %c0_88 = arith.constant 0 : index
    %c0_89 = arith.constant 0 : index
    %138 = vector.load %arg10[%c5_87, %c0_88, %c0_89] : memref<6x128x128xbf16, #tpu.memory_space<vmem>>, vector<1x128x128xbf16>
    %139 = vector.shape_cast %138 : vector<1x128x128xbf16> to vector<128x128xbf16>
    %cst_90 = arith.constant dense<0.000000e+00> : vector<128x128xf32>
    %140 = tpu.matmul %137, %139, %cst_90 {dimension_numbers = #tpu.dot_dimension_numbers<[1], [0], [0], [1], [0, 0, 1, 1], [], []>} : vector<128x128xbf16>, vector<128x128xbf16>, vector<128x128xf32> -> vector<128x128xf32>
    %c5_91 = arith.constant 5 : index
    %c0_92 = arith.constant 0 : index
    %141 = vector.load %arg11[%c5_91, %c0_92] : memref<6x128xf32, #tpu.memory_space<vmem>>, vector<1x128xf32>
    %142 = vector.broadcast %141 : vector<1x128xf32> to vector<128x128xf32>
    %143 = arith.addf %140, %142 : vector<128x128xf32>
    %cst_93 = arith.constant 0.000000e+00 : f32
    %144 = vector.broadcast %cst_93 : f32 to vector<128x128xf32>
    %145 = arith.maximumf %143, %144 : vector<128x128xf32>
    %146 = arith.addf %145, %136 : vector<128x128xf32>
    %c0_94 = arith.constant 0 : index
    %c0_95 = arith.constant 0 : index
    %147 = vector.load %arg12[%c0_94, %c0_95] : memref<128x128xf32, #tpu.memory_space<vmem>>, vector<128x128xf32>
    tpu.vector_store %arg12[%c0_94, %c0_95], %146 {strides = array<i32>} : memref<128x128xf32, #tpu.memory_space<vmem>>, vector<128x128xf32>,
    return
  }
  func.func @transform_0(%arg0: i32) -> (i32, i32) {
    %c0_i32 = arith.constant 0 : i32
    %c0_i32_0 = arith.constant 0 : i32
    return %arg0, %c0_i32 : i32, i32
  }
  func.func @transform_1(%arg0: i32) -> (i32, i32) {
    %c0_i32 = arith.constant 0 : i32
    %c0_i32_0 = arith.constant 0 : i32
    return %arg0, %c0_i32 : i32, i32
  }
  func.func @transform_2(%arg0: i32) -> (i32, i32) {
    %c0_i32 = arith.constant 0 : i32
    %c0_i32_0 = arith.constant 0 : i32
    %c0_i32_1 = arith.constant 0 : i32
    return %c0_i32, %c0_i32_0 : i32, i32
  }
  func.func @transform_3(%arg0: i32) -> (i32, i32) {
    %c0_i32 = arith.constant 0 : i32
    %c0_i32_0 = arith.constant 0 : i32
    %c0_i32_1 = arith.constant 0 : i32
    return %c0_i32, %c0_i32_0 : i32, i32
  }
  func.func @transform_4(%arg0: i32) -> (i32, i32) {
    %c0_i32 = arith.constant 0 : i32
    %c0_i32_0 = arith.constant 0 : i32
    %c0_i32_1 = arith.constant 0 : i32
    return %c0_i32, %c0_i32_0 : i32, i32
  }
  func.func @transform_5(%arg0: i32) -> (i32, i32) {
    %c0_i32 = arith.constant 0 : i32
    %c0_i32_0 = arith.constant 0 : i32
    %c0_i32_1 = arith.constant 0 : i32
    return %c0_i32, %c0_i32_0 : i32, i32
  }
  func.func @transform_6(%arg0: i32) -> (i32, i32) {
    %c0_i32 = arith.constant 0 : i32
    %c0_i32_0 = arith.constant 0 : i32
    %c0_i32_1 = arith.constant 0 : i32
    return %c0_i32, %c0_i32_0 : i32, i32
  }
  func.func @transform_7(%arg0: i32) -> (i32, i32, i32) {
    %c0_i32 = arith.constant 0 : i32
    %c0_i32_0 = arith.constant 0 : i32
    %c0_i32_1 = arith.constant 0 : i32
    %c0_i32_2 = arith.constant 0 : i32
    return %c0_i32, %c0_i32_0, %c0_i32_1 : i32, i32, i32
  }
  func.func @transform_8(%arg0: i32) -> (i32, i32) {
    %c0_i32 = arith.constant 0 : i32
    %c0_i32_0 = arith.constant 0 : i32
    %c0_i32_1 = arith.constant 0 : i32
    return %c0_i32, %c0_i32_0 : i32, i32
  }
  func.func @transform_9(%arg0: i32) -> (i32, i32, i32) {
    %c0_i32 = arith.constant 0 : i32
    %c0_i32_0 = arith.constant 0 : i32
    %c0_i32_1 = arith.constant 0 : i32
    %c0_i32_2 = arith.constant 0 : i32
    return %c0_i32, %c0_i32_0, %c0_i32_1 : i32, i32, i32
  }
  func.func @transform_10(%arg0: i32) -> (i32, i32) {
    %c0_i32 = arith.constant 0 : i32
    %c0_i32_0 = arith.constant 0 : i32
    %c0_i32_1 = arith.constant 0 : i32
    return %c0_i32, %c0_i32_0 : i32, i32
  }
  func.func @transform_11(%arg0: i32) -> (i32, i32) {
    %c0_i32 = arith.constant 0 : i32
    %c0_i32_0 = arith.constant 0 : i32
    return %arg0, %c0_i32 : i32, i32
  }
}

</mosaic_0001>

<bundles_post_ra>
// kernel: unet_forward.1
= control target key start
LH: loop header
LB: loop body
LE: loop exit
PB: predicated region body
PF: predicated region fallthrough
CT: control target
= control target key end

     0   :  { %16 = vsyncpa [#allocation3], 0  ;;  %s4755_s17 = smov 0   ;;  %s5845_s0 = inlined_call_operand.vmem [shape: f32[256,16], index: 0, kind: input, shape index: {}]   ;;  %s5846_s1 = inlined_call_operand.vmem [shape: f32[256,1], index: 1, kind: input, shape index: {}]   ;;  %s5847_s2 = inlined_call_operand.vmem [shape: f32[1,128], index: 2, kind: input, shape index: {}]   ;;  %s5848_s3 = inlined_call_operand.vmem [shape: f32[1,128], index: 3, kind: input, shape index: {}]   ;;  %s5849_s4 = inlined_call_operand.vmem [shape: bf16[128,128], index: 4, kind: input, shape index: {}]   ;;  %s5850_s5 = inlined_call_operand.vmem [shape: f32[1,128], index: 5, kind: input, shape index: {}]   ;;  %s5851_s6 = inlined_call_operand.vmem [shape: bf16[16,256], index: 6, kind: input, shape index: {}]   ;;  %s5852_s7 = inlined_call_operand.hbm [shape: bf16[6,128,256], index: 7, kind: input, shape index: {}]   ;;  %s5853_s8 = inlined_call_operand.vmem [shape: f32[6,256], index: 8, kind: input, shape index: {}]   ;;  %s5854_s9 = inlined_call_operand.vmem [shape: bf16[6,128,128], index: 9, kind: input, shape index: {}]   ;;  %s5855_s10 = inlined_call_operand.vmem [shape: f32[6,128], index: 10, kind: input, shape index: {}]   ;;  %s5856_s11 = inlined_call_operand.vmem [shape: f32[256,128], index: 11, kind: output, shape index: {}]  }
   0x1 LB: > { %s3785_s18 = sadd.s32 4294967295, %s4689_s17   ;;  %p3787_p0 = scmp.ge.s32.totalorder %s4689_s17, 1  ;;  %s4689_s17 = sphi %s4755_s17, %s22_s17  }
   0x2   : > { %p294_p1 = scmp.lt.s32.totalorder %s4689_s17, 3  ;;  %s4691_s19 = smov [#allocation2]  }
   0x3   : > { %s321_s20 = sshll.u32 %s4691_s19, 4  ;;  %p4769_p3 = scmp.eq.s32.totalorder %s3785_s18, 0  ;;  %s322_s20 = int_to_ptr.vmem [resolvable:$true] %s321_s20 }
   0x4   : > { %p4763_p2 = pnand %p3787_p0, %p294_p1  ;;  %s4651_s26 = scalar_lea.hbm %s5852_s7, 12288 }
   0x5   : > { %s5861_s22 = scalar_select %p4769_p3, 1, 0 }
   0x6   : > { %s5860_s21 = scalar_select %p4763_p2, 1, 0 }
   0x7   : > { %p4428_p4 = pneg %p4763_p2  ;;  %p4652_p6 = scmp.ne.s32.totalorder %s5852_s7, %s4651_s26 }
   0x8   : > { %p4658_p10 = scmp.lt.u32.totalorder %s4651_s26, %s5852_s7 }
   0x9   : > { %p4777_p5 = pnand %p4769_p3, %p4428_p4 }
   0xb   : > { %p4653_p7 = pneg %p4777_p5 }
   0xd   : > { %p4654_p8 = pnand %p4653_p7, %p4652_p6 }
   0xf   : > { %p4655_p9 = pneg %p4654_p8 }
  0x11   : > { %p4660_p11 = pnand %p4658_p10, %p4655_p9 }
  0x13   : > { %4663 = shalt.err (!%p4660_p11)
}
  0x14   : > { %s4664_s12 = scalar_lea.vmem %s322_s20, 12288  ;;  %p4672_p1 = scmp.lt.s32.totalorder %s322_s20, %s322_s20 }
  0x15   : > { %p4665_p12 = scmp.ne.s32.totalorder %s322_s20, %s4664_s12  ;;  %p4673_p4 = scmp.lt.s32.totalorder %s4664_s12, %s4664_s12 }
  0x17   : > { %p4667_p13 = pnand %p4665_p12, %p4653_p7  ;;  %p4674_p3 = por %p4673_p4, %p4672_p1 }
  0x19   : > { %p4668_p0 = pneg %p4667_p13 }
  0x1b   : > { %p4675_p2 = pnand %p4674_p3, %p4668_p0 }
  0x1d   : > { %4678 = shalt.err (!%p4675_p2)
}
  0x1e   : > { %s4692_s13 = smov 128   ;;  %s4693_s14 = smov 8  }
  0x1f   : > { %4431 = dma.hbm_to_vmem [thread:$0]  (!%p4777_p5), %s5852_s7, 12288, %s322_s20, [#allocation3], %s4692_s13, %s4692_s13, %s4693_s14  }
  0x20   : > { %p5863_p6 = scmp.ne.s32.totalorder %s5860_s21, 0 }
  0x21   : > { %p5864_p8 = scmp.ne.s32.totalorder (!%p5863_p6), %s5861_s22, 0 }
  0x22   : > { %364 = sbr.rel (%p5863_p6) target bundleno = 3226 (0xc9a), region = 64 }
  0x29   : > { %4684 = dma.done.wait (%p5864_p8), [#allocation3], 12288  }
  0x2a   : > { %4686 = vsyncadd (%p5864_p8), [#allocation3], 4294955008  ;;  %s3792_s19 = sshll.u32 %s3785_s18, 4  ;;  %v4694_v0 = vmov 0   ;;  %v4448_v7 = vld [vmem:[%s5849_s4] sm:$0xff]   ;;  %v4449_v8 = vld [vmem:[%s5849_s4 + $0x8] sm:$0xff]  }
  0x2b   : > { %4447 = vset.pattern.permute.xlu1 %v4694_v0  ;;  %4446 = vset.pattern.permute.xlu0 %v4694_v0  ;;  %p410_p2 = scmp.lt.s32.totalorder %s3792_s19, 31  ;;  %v4450_v11 = vld [vmem:[%s5849_s4 + $0x10] sm:$0xff]   ;;  %v4451_v14 = vld [vmem:[%s5849_s4 + $0x18] sm:$0xff]   ;;  %v4452_v17 = vld [vmem:[%s5849_s4 + $0x20] sm:$0xff]   ;;  %vm1015_vm0 = vcmask 130048  }
  0x2c   : > { %924 = vmatprep.mubr.bf16.mxu1 %v4694_v0  ;;  %4168 = vmatprep.subr.bf16.mxu0 %v4448_v7  ;;  %v4453_v20 = vld [vmem:[%s5849_s4 + $0x28] sm:$0xff]   ;;  %v4454_v23 = vld [vmem:[%s5849_s4 + $0x30] sm:$0xff]   ;;  %v4455_v24 = vld [vmem:[%s5849_s4 + $0x38] sm:$0xff]  }
  0x2d   : > { %s5866_s19 = smov (!%p410_p2, %s3792_s19), 31  ;;  %4169 = vmatpush3.bf16.msra.mxu0 %v4448_v7  ;;  %v4456_v25 = vld [vmem:[#allocation2 + $0x4] ss:$8 sps:$4 sm:$0xff]   ;;  %v4458_v26 = vld [vmem:[#allocation2] ss:$8 sps:$4 sm:$0xff]  }
  0x2e   : > { %s4808_s20 = sshll.u32 %s5866_s19, 3  ;;  %4170 = vmatprep.subr.bf16.mxu0 %v4449_v8  ;;  %v4459_v27 = vld [vmem:[#allocation2 + $0x14] ss:$8 sps:$4 sm:$0xff]   ;;  %892 = vmatprep.subr.bf16.mxu1 %v4456_v25  ;;  %v4461_v28 = vld [vmem:[#allocation2 + $0x10] ss:$8 sps:$4 sm:$0xff]  }
  0x2f   : > { %s4814_s22 = scalar_lea.vmem %s5846_s1, %s4808_s20  ;;  %893 = vmatpush1.bf16.msra.mxu1 %v4458_v26  ;;  %v4462_v29 = vld [vmem:[#allocation2 + $0x24] ss:$8 sps:$4 sm:$0xff]   ;;  %v4464_v30 = vld [vmem:[#allocation2 + $0x20] ss:$8 sps:$4 sm:$0xff]   ;;  %v4465_v31 = vld [vmem:[#allocation2 + $0x34] ss:$8 sps:$4 sm:$0xff]   ;;  %s4930_s25 = scalar_lea.vmem %s5845_s0, %s4808_s20 }
  0x30   : > { %v430_v1 = vld [vmem:[%s4814_s22 + $0x10] sm:$0xff]  ;;  %v428_v2 = vld [vmem:[%s4814_s22] sm:$0xff]  ;;  %v431_v3 = vld [vmem:[%s4814_s22 + $0x18] sm:$0xff]  ;;  %894 = vmatprep.subr.bf16.mxu1 %v4459_v27  ;;  %s5781_s23 = scalar_lea.vmem %s5856_s11, %s4808_s20 }
  0x31   : > { %457 = vperm.xlu1 %4447, %v430_v1   ;;  %447 = vperm.xlu0 %4446, %v428_v2   ;;  %v429_v4 = vld [vmem:[%s4814_s22 + $0x8] sm:$0xff]  ;;  %v432_v6 = vld [vmem:[%s4814_s22 + $0x20] sm:$0xff]  ;;  %v435_v9 = vld [vmem:[%s4814_s22 + $0x38] sm:$0xff] }
  0x32   : > { %v433_v5 = vld [vmem:[%s4814_s22 + $0x28] sm:$0xff]  ;;  %v434_v10 = vld [vmem:[%s4814_s22 + $0x30] sm:$0xff]  ;;  %v436_v13 = vld [vmem:[%s4814_s22 + $0x40] sm:$0xff]  ;;  %4171 = vmatpush3.bf16.msra.mxu0 %v4449_v8 }
  0x33   : > { %v437_v12 = vld [vmem:[%s4814_s22 + $0x48] sm:$0xff]  ;;  %4172 = vmatprep.subr.bf16.mxu0 %v4450_v11  ;;  %v439_v15 = vld [vmem:[%s4814_s22 + $0x58] sm:$0xff]  ;;  %v438_v16 = vld [vmem:[%s4814_s22 + $0x50] sm:$0xff]  ;;  %895 = vmatpush1.bf16.msra.mxu1 %v4461_v28 }
  0x34   : > { %v441_v18 = vld [vmem:[%s4814_s22 + $0x68] sm:$0xff]  ;;  %v440_v19 = vld [vmem:[%s4814_s22 + $0x60] sm:$0xff]  ;;  %v443_v21 = vld [vmem:[%s4814_s22 + $0x78] sm:$0xff]  ;;  %896 = vmatprep.subr.bf16.mxu1 %v4462_v29 }
  0x35   : > { %462 = vperm.xlu1 %4447, %v431_v3   ;;  %452 = vperm.xlu0 %4446, %v429_v4   ;;  %v442_v22 = vld [vmem:[%s4814_s22 + $0x70] sm:$0xff]  ;;  %v4468_v33 = vld [vmem:[#allocation2 + $0x44] ss:$8 sps:$4 sm:$0xff]   ;;  %v4470_v34 = vld [vmem:[#allocation2 + $0x40] ss:$8 sps:$4 sm:$0xff]  }
  0x36   : > { %4173 = vmatpush3.bf16.msra.mxu0 %v4450_v11  ;;  %v4467_v32 = vld [vmem:[#allocation2 + $0x30] ss:$8 sps:$4 sm:$0xff]   ;;  %v4471_v35 = vld [vmem:[#allocation2 + $0x54] ss:$8 sps:$4 sm:$0xff]   ;;  %v4474_v37 = vld [vmem:[#allocation2 + $0x64] ss:$8 sps:$4 sm:$0xff]  }
  0x37   : > { %4174 = vmatprep.subr.bf16.mxu0 %v4451_v14  ;;  %897 = vmatpush1.bf16.msra.mxu1 %v4464_v30  ;;  %v4473_v36 = vld [vmem:[#allocation2 + $0x50] ss:$8 sps:$4 sm:$0xff]   ;;  %v4859_v38 = vld [vmem:[%s5847_s2] ss:$0 sm:$0xff] }
  0x38   : > { %898 = vmatprep.subr.bf16.mxu1 %v4465_v31  ;;  %v4864_v41 = vld [vmem:[%s5848_s3] ss:$0 sm:$0xff] }
  0x39   : > { %472 = vperm.xlu1 %4447, %v433_v5   ;;  %467 = vperm.xlu0 %4446, %v432_v6  }
  0x3a   : > { %4175 = vmatpush3.bf16.msra.mxu0 %v4451_v14 }
  0x3b   : > { %4176 = vmatprep.subr.bf16.mxu0 %v4452_v17  ;;  %899 = vmatpush1.bf16.msra.mxu1 %v4467_v32 }
  0x3c   : > { %900 = vmatprep.subr.bf16.mxu1 %v4468_v33 }
  0x3d   : > { %482 = vperm.xlu1 %4447, %v435_v9   ;;  %477 = vperm.xlu0 %4446, %v434_v10  }
  0x3e   : > { %4177 = vmatpush3.bf16.msra.mxu0 %v4452_v17 }
  0x3f   : > { %4178 = vmatprep.subr.bf16.mxu0 %v4453_v20  ;;  %901 = vmatpush1.bf16.msra.mxu1 %v4470_v34 }
  0x40   : > { %902 = vmatprep.subr.bf16.mxu1 %v4471_v35 }
  0x41   : > { %492 = vperm.xlu1 %4447, %v437_v12   ;;  %487 = vperm.xlu0 %4446, %v436_v13  }
  0x42   : > { %4179 = vmatpush3.bf16.msra.mxu0 %v4453_v20 }
  0x43   : > { %4180 = vmatprep.subr.bf16.mxu0 %v4454_v23  ;;  %903 = vmatpush1.bf16.msra.mxu1 %v4473_v36 }
  0x44   : > { %904 = vmatprep.subr.bf16.mxu1 %v4474_v37 }
  0x45   : > { %502 = vperm.xlu1 %4447, %v439_v15   ;;  %497 = vperm.xlu0 %4446, %v438_v16  }
  0x46   : > { %4181 = vmatpush3.bf16.msra.mxu0 %v4454_v23 }
  0x47   : > { %4182 = vmatprep.subr.bf16.mxu0 %v4455_v24 }
  0x49   : > { %512 = vperm.xlu1 %4447, %v441_v18   ;;  %507 = vperm.xlu0 %4446, %v440_v19  }
  0x4a   : > { %4183 = vmatpush3.bf16.msra.mxu0 %v4455_v24 }
  0x4d   : > { %522 = vperm.xlu1 %4447, %v443_v21   ;;  %517 = vperm.xlu0 %4446, %v442_v22  }
  0xb0   : > { %v458_v39 = vpop.permute.xlu1 %457  ;;  %v448_v40 = vpop.permute.xlu0 %447 }
  0xb1   : > { %v533_v42 = vmul.f32 %v4859_v38, %v458_v39  ;;  %v531_v43 = vmul.f32 %v4859_v38, %v448_v40 }
  0xb3   : > { %v556_v44 = vadd.f32 %v4864_v41, %v533_v42  ;;  %v554_v47 = vadd.f32 %v4864_v41, %v531_v43 }
  0xb4   : > { %v463_v45 = vpop.permute.xlu1 %462  ;;  %v453_v46 = vpop.permute.xlu0 %452 }
  0xb5   : > { %v534_v48 = vmul.f32 %v4859_v38, %v463_v45  ;;  %v532_v49 = vmul.f32 %v4859_v38, %v453_v46  ;;  %v572_v52 = vmax.f32 %v556_v44, 0.0  ;;  %v570_v55 = vmax.f32 %v554_v47, 0.0 }
  0xb7   : > { %v557_v50 = vadd.f32 %v4864_v41, %v534_v48  ;;  %v555_v51 = vadd.f32 %v4864_v41, %v532_v49 }
  0xb8   : > { %v473_v53 = vpop.permute.xlu1 %472  ;;  %v468_v54 = vpop.permute.xlu0 %467 }
  0xb9   : > { %v573_v56 = vmax.f32 %v557_v50, 0.0  ;;  %v536_v57 = vmul.f32 %v4859_v38, %v473_v53  ;;  %v535_v58 = vmul.f32 %v4859_v38, %v468_v54  ;;  %v571_v59 = vmax.f32 %v555_v51, 0.0  ;;  %v4476_v51 = vld [vmem:[#allocation2 + $0x60] ss:$8 sps:$4 sm:$0xff]   ;;  %v4479_v53 = vld [vmem:[#allocation2 + $0x70] ss:$8 sps:$4 sm:$0xff]  }
  0xba   : > { %905 = vmatpush1.bf16.msra.mxu1 %v4476_v51  ;;  %v771_v51 = vld [vmem:[%s4930_s25 + $0x48] sm:$0xff] }
  0xbb   : > { %v559_v60 = vadd.f32 %v4864_v41, %v536_v57  ;;  %v558_v61 = vadd.f32 %v4864_v41, %v535_v58  ;;  %v586_v62 = vpack.c.bf16 %v571_v59, %v570_v55  ;;  %v587_v63 = vpack.c.bf16 %v573_v56, %v572_v52  ;;  %v4477_v52 = vld [vmem:[#allocation2 + $0x74] ss:$8 sps:$4 sm:$0xff]   ;;  %v4483_v55 = vld [vmem:[%s5854_s9] sm:$0xff]   ;;  %v4484_v56 = vld [vmem:[%s5854_s9 + $0x8] sm:$0xff]  }
  0xbc   : > { %v483_v1 = vpop.permute.xlu1 %482  ;;  %v478_v2 = vpop.permute.xlu0 %477  ;;  %906 = vmatprep.subr.bf16.mxu1 %v4477_v52  ;;  %4200 = vmatprep.subr.bf16.mxu0 %v4483_v55 }
  0xbd   : > { %v575_v3 = vmax.f32 %v559_v60, 0.0  ;;  %v574_v4 = vmax.f32 %v558_v61, 0.0  ;;  %v538_v5 = vmul.f32 %v4859_v38, %v483_v1  ;;  %v537_v6 = vmul.f32 %v4859_v38, %v478_v2  ;;  %4184 = vmatprep.mubr.bf16.mxu0 %v586_v62  ;;  %v4485_v1 = vld [vmem:[%s5854_s9 + $0x10] sm:$0xff]  }
  0xbe   : > { %4185 = vmatmul.mubr.bf16.vlgmr.msra.gmra.mrb[0].mxu0 %v587_v63  ;;  %907 = vmatpush1.bf16.msra.mxu1 %v4479_v53  ;;  %v772_v53 = vld [vmem:[%s4930_s25 + $0x50] sm:$0xff] }
  0xbf   : > { %v561_v7 = vadd.f32 %v4864_v41, %v538_v5  ;;  %v560_v8 = vadd.f32 %v4864_v41, %v537_v6  ;;  %v588_v9 = vpack.c.bf16 %v575_v3, %v574_v4  ;;  %4201 = vmatpush3.bf16.msra.mxu0 %v4483_v55  ;;  %v4480_v3 = vld [vmem:[%s5851_s6] ss:$8 sps:$4 sm:$0xff]   ;;  %v4486_v6 = vld [vmem:[%s5854_s9 + $0x18] sm:$0xff]  }
  0xc0   : > { %v493_v10 = vpop.permute.xlu1 %492  ;;  %v488_v11 = vpop.permute.xlu0 %487  ;;  %4202 = vmatprep.subr.bf16.mxu0 %v4484_v56  ;;  %v775_v55 = vld [vmem:[%s4930_s25 + $0x68] sm:$0xff] }
  0xc1   : > { %v577_v12 = vmax.f32 %v561_v7, 0.0  ;;  %v576_v13 = vmax.f32 %v560_v8, 0.0  ;;  %v540_v14 = vmul.f32 %v4859_v38, %v493_v10  ;;  %v539_v15 = vmul.f32 %v4859_v38, %v488_v11  ;;  %4188 = vmatprep.mubr.bf16.mxu0 %v588_v9 }
  0xc3   : > { %v563_v16 = vadd.f32 %v4864_v41, %v540_v14  ;;  %v562_v17 = vadd.f32 %v4864_v41, %v539_v15  ;;  %v589_v18 = vpack.c.bf16 %v577_v12, %v576_v13  ;;  %4203 = vmatpush3.bf16.msra.mxu0 %v4484_v56 }
  0xc4   : > { %v503_v19 = vpop.permute.xlu1 %502  ;;  %v498_v20 = vpop.permute.xlu0 %497  ;;  %4204 = vmatprep.subr.bf16.mxu0 %v4485_v1 }
  0xc5   : > { %v579_v21 = vmax.f32 %v563_v16, 0.0  ;;  %v578_v22 = vmax.f32 %v562_v17, 0.0  ;;  %v542_v23 = vmul.f32 %v4859_v38, %v503_v19  ;;  %v541_v24 = vmul.f32 %v4859_v38, %v498_v20 }
  0xc6   : > { %4189 = vmatmul.mubr.bf16.gmra.mrb[4].mxu0 %v589_v18 }
  0xc7   : > { %v565_v25 = vadd.f32 %v4864_v41, %v542_v23  ;;  %v564_v26 = vadd.f32 %v4864_v41, %v541_v24  ;;  %v590_v27 = vpack.c.bf16 %v579_v21, %v578_v22  ;;  %4205 = vmatpush3.bf16.msra.mxu0 %v4485_v1  ;;  %v4493_v1 = vld [vmem:[#allocation2 + $0x84] ss:$8 sps:$4 sm:$0xff]  }
  0xc8   : > { %v513_v28 = vpop.permute.xlu1 %512  ;;  %v508_v29 = vpop.permute.xlu0 %507  ;;  %4206 = vmatprep.subr.bf16.mxu0 %v4486_v6 }
  0xc9   : > { %v581_v30 = vmax.f32 %v565_v25, 0.0  ;;  %v580_v31 = vmax.f32 %v564_v26, 0.0  ;;  %v544_v32 = vmul.f32 %v4859_v38, %v513_v28  ;;  %v543_v33 = vmul.f32 %v4859_v38, %v508_v29  ;;  %4192 = vmatprep.mubr.bf16.mxu0 %v590_v27 }
  0xcb   : > { %v567_v34 = vadd.f32 %v4864_v41, %v544_v32  ;;  %v566_v35 = vadd.f32 %v4864_v41, %v543_v33  ;;  %v591_v36 = vpack.c.bf16 %v581_v30, %v580_v31  ;;  %4207 = vmatpush3.bf16.msra.mxu0 %v4486_v6 }
  0xcc   : > { %v523_v37 = vpop.permute.xlu1 %522  ;;  %v518_v39 = vpop.permute.xlu0 %517 }
  0xcd   : > { %v583_v40 = vmax.f32 %v567_v34, 0.0  ;;  %v582_v42 = vmax.f32 %v566_v35, 0.0  ;;  %v546_v43 = vmul.f32 %v4859_v38, %v523_v37  ;;  %v545_v44 = vmul.f32 %v4859_v38, %v518_v39  ;;  %v4482_v38 = vld [vmem:[%s5851_s6 + $0x4] ss:$8 sps:$4 sm:$0xff]  }
  0xce   : > { %4193 = vmatmul.mubr.bf16.gmra.mrb[8].mxu0 %v591_v36  ;;  %1040 = vmatprep.subr.bf16.mxu1 %v4482_v38  ;;  %v762_v36 = vld [vmem:[%s4930_s25] sm:$0xff]  ;;  %v763_v37 = vld [vmem:[%s4930_s25 + $0x8] sm:$0xff]  ;;  %v773_v38 = vld [vmem:[%s4930_s25 + $0x58] sm:$0xff] }
  0xcf   : > { %v569_v45 = vadd.f32 %v4864_v41, %v546_v43  ;;  %v568_v46 = vadd.f32 %v4864_v41, %v545_v44  ;;  %v592_v47 = vpack.c.bf16 %v583_v40, %v582_v42  ;;  %v3800_v41 = vld [vmem:[%s5850_s5] ss:$0 sm:$0xff]  ;;  %v778_v39 = vpack.c.bf16 %v763_v37, %v762_v36  ;;  %v764_v40 = vld [vmem:[%s4930_s25 + $0x10] sm:$0xff]  ;;  %v765_v42 = vld [vmem:[%s4930_s25 + $0x18] sm:$0xff] }
  0xd0   : > { %v779_v43 = vpack.c.bf16 %v765_v42, %v764_v40  ;;  %v766_v44 = vld [vmem:[%s4930_s25 + $0x20] sm:$0xff] }
  0xd1   : > { %v585_v48 = vmax.f32 %v569_v45, 0.0  ;;  %v584_v49 = vmax.f32 %v568_v46, 0.0  ;;  %4196 = vmatprep.mubr.bf16.mxu0 %v592_v47  ;;  %v767_v45 = vld [vmem:[%s4930_s25 + $0x28] sm:$0xff]  ;;  %v768_v47 = vld [vmem:[%s4930_s25 + $0x30] sm:$0xff] }
  0xd2   : > { %v780_v46 = vpack.c.bf16 %v767_v45, %v766_v44 }
  0xd3   : > { %v593_v50 = vpack.c.bf16 %v585_v48, %v584_v49  ;;  %v769_v48 = vld [vmem:[%s4930_s25 + $0x38] sm:$0xff] }
  0xd4   : > { %v781_v49 = vpack.c.bf16 %v769_v48, %v768_v47  ;;  %v4497_v47 = vld [vmem:[#allocation2 + $0xa0] ss:$8 sps:$4 sm:$0xff]  }
  0xd6   : > { %4197 = vmatmul.mubr.bf16.gmra.mrb[12].mxu0 %v593_v50  ;;  %v770_v50 = vld [vmem:[%s4930_s25 + $0x40] sm:$0xff] }
  0xd7   : > { %v782_v52 = vpack.c.bf16 %v771_v51, %v770_v50 }
 0x191   : > { %v4186_v54 = vpop.f32.mrb[0].mxu0 }
 0x192   : > { %v699_v57 = vpop.f32.mrb[1].mxu0  ;;  %v708_v59 = vadd.f32 %v4186_v54, %v3800_v41  ;;  %v783_v54 = vpack.c.bf16 %v773_v38, %v772_v53 }
 0x193   : > { %v4187_v58 = vpop.f32.mrb[2].mxu0  ;;  %v700_v62 = vadd.f32 %v3800_v41, %v699_v57  ;;  %v776_v57 = vld [vmem:[%s4930_s25 + $0x70] sm:$0xff] }
 0x194   : > { %v711_v60 = vadd.f32 %v4187_v58, %v3800_v41  ;;  %v702_v61 = vpop.f32.mrb[3].mxu0  ;;  %v777_v58 = vld [vmem:[%s4930_s25 + $0x78] sm:$0xff] }
 0x195   : > { %v703_v63 = vadd.f32 %v3800_v41, %v702_v61  ;;  %v4488_v61 = vld [vmem:[%s5854_s9 + $0x28] sm:$0xff]  }
 0x196   : > { %v789_v2 = vpack.c.bf16 %v711_v60, %v708_v59  ;;  %v785_v59 = vpack.c.bf16 %v777_v58, %v776_v57  ;;  %v4487_v60 = vld [vmem:[%s5854_s9 + $0x20] sm:$0xff]  }
 0x197   : > { %v788_v4 = vpack.c.bf16 %v703_v63, %v700_v62  ;;  %4208 = vmatprep.subr.bf16.mxu0 %v4487_v60  ;;  %v4489_v62 = vld [vmem:[%s5854_s9 + $0x30] sm:$0xff]   ;;  %v4490_v63 = vld [vmem:[%s5854_s9 + $0x38] sm:$0xff]  }
 0x198   : > { %4209 = vmatpush3.bf16.msra.mxu0 %v4487_v60  ;;  %v4503_v60 = vld [vmem:[#allocation2 + $0xc0] ss:$8 sps:$4 sm:$0xff]  }
 0x199   : > { %v4190_v5 = vpop.f32.mrb[4].mxu0  ;;  %925 = vmatmul.mubr.bf16.vlgmr.msra.gmra.mrb[0].mxu1 %v788_v4  ;;  %4210 = vmatprep.subr.bf16.mxu0 %v4488_v61 }
 0x19a   : > { %1041 = vmatpush1.bf16.msra.mxu1 %v4480_v3  ;;  %v715_v7 = vpop.f32.mrb[5].mxu0  ;;  %934 = vmatprep.mubr.bf16.mxu1 %v4694_v0  ;;  %v724_v9 = vadd.f32 %v4190_v5, %v3800_v41  ;;  %v1153_v5 = vld [vmem:[%s5853_s8] ss:$8 sm:$0x3] }
 0x19b   : > { %v4191_v8 = vpop.f32.mrb[6].mxu0  ;;  %v716_v12 = vadd.f32 %v3800_v41, %v715_v7 }
 0x19c   : > { %v727_v10 = vadd.f32 %v4191_v8, %v3800_v41  ;;  %v718_v11 = vpop.f32.mrb[7].mxu0  ;;  %4211 = vmatpush3.bf16.msra.mxu0 %v4488_v61 }
 0x19d   : > { %v719_v13 = vadd.f32 %v3800_v41, %v718_v11  ;;  %4212 = vmatprep.subr.bf16.mxu0 %v4489_v62 }
 0x19e   : > { %v791_v14 = vpack.c.bf16 %v727_v10, %v724_v9 }
 0x19f   : > { %v790_v15 = vpack.c.bf16 %v719_v13, %v716_v12 }
 0x1a0   : > { %4213 = vmatpush3.bf16.msra.mxu0 %v4489_v62  ;;  %v4508_v62 = vld [vmem:[#allocation2 + $0xd4] ss:$8 sps:$4 sm:$0xff]  }
 0x1a1   : > { %v4194_v16 = vpop.f32.mrb[8].mxu0  ;;  %935 = vmatmul.mubr.bf16.gmra.mrb[4].mxu1 %v789_v2  ;;  %4214 = vmatprep.subr.bf16.mxu0 %v4490_v63  ;;  %v1155_v2 = vlaneseq }
 0x1a2   : > { %v731_v17 = vpop.f32.mrb[9].mxu0  ;;  %944 = vmatprep.mubr.bf16.mxu1 %v4694_v0  ;;  %v740_v19 = vadd.f32 %v4194_v16, %v3800_v41 }
 0x1a3   : > { %v4195_v18 = vpop.f32.mrb[10].mxu0  ;;  %v732_v22 = vadd.f32 %v3800_v41, %v731_v17  ;;  %v1156_v3 = vshrl.u32 %v1155_v2, 7 }
 0x1a4   : > { %v743_v20 = vadd.f32 %v4195_v18, %v3800_v41  ;;  %v734_v21 = vpop.f32.mrb[11].mxu0  ;;  %4215 = vmatpush3.bf16.msra.mxu0 %v4490_v63 }
 0x1a5   : > { %v735_v23 = vadd.f32 %v3800_v41, %v734_v21  ;;  %1537 = vmatprep.subr.bf16.mxu0 %v4493_v1  ;;  %v4977_v4 = vsub.s32 0, %v1156_v3  ;;  %v4982_v6 = vsub.s32 1, %v1156_v3 }
 0x1a6   : > { %v793_v24 = vpack.c.bf16 %v743_v20, %v740_v19 }
 0x1a7   : > { %v792_v25 = vpack.c.bf16 %v735_v23, %v732_v22  ;;  %v4985_v7 = vrot.slane %v1153_v5, %v4977_v4  ;;  %v4988_v8 = vrot.slane %v1153_v5, %v4982_v6 }
 0x1a9   : > { %v4198_v26 = vpop.f32.mrb[12].mxu0  ;;  %945 = vmatmul.mubr.bf16.gmra.mrb[8].mxu1 %v790_v15 }
 0x1aa   : > { %v747_v27 = vpop.f32.mrb[13].mxu0  ;;  %954 = vmatprep.mubr.bf16.mxu1 %v4694_v0  ;;  %v756_v29 = vadd.f32 %v4198_v26, %v3800_v41 }
 0x1ab   : > { %v4199_v28 = vpop.f32.mrb[14].mxu0  ;;  %v748_v32 = vadd.f32 %v3800_v41, %v747_v27 }
 0x1ac   : > { %v759_v30 = vadd.f32 %v4199_v28, %v3800_v41  ;;  %v750_v31 = vpop.f32.mrb[15].mxu0 }
 0x1ad   : > { %v751_v33 = vadd.f32 %v3800_v41, %v750_v31  ;;  %v774_v41 = vld [vmem:[%s4930_s25 + $0x60] sm:$0xff] }
 0x1ae   : > { %v795_v34 = vpack.c.bf16 %v759_v30, %v756_v29  ;;  %v784_v56 = vpack.c.bf16 %v775_v55, %v774_v41  ;;  %v4491_v30 = vld [vmem:[#allocation2 + $0x80] ss:$8 sps:$4 sm:$0xff]  }
 0x1af   : > { %v794_v35 = vpack.c.bf16 %v751_v33, %v748_v32  ;;  %v4496_v32 = vld [vmem:[#allocation2 + $0x94] ss:$8 sps:$4 sm:$0xff]  }
 0x1b1   : > { %955 = vmatmul.mubr.bf16.gmra.mrb[12].mxu1 %v791_v14 }
 0x1b2   : > { %964 = vmatprep.mubr.bf16.mxu1 %v4694_v0 }
 0x1b9   : > { %965 = vmatmul.mubr.bf16.gmra.mrb[16].mxu1 %v792_v25 }
 0x1ba   : > { %974 = vmatprep.mubr.bf16.mxu1 %v4694_v0 }
 0x1c1   : > { %975 = vmatmul.mubr.bf16.gmra.mrb[20].mxu1 %v793_v24 }
 0x1c2   : > { %984 = vmatprep.mubr.bf16.mxu1 %v4694_v0 }
 0x1c9   : > { %985 = vmatmul.mubr.bf16.gmra.mrb[24].mxu1 %v794_v35 }
 0x1ca   : > { %994 = vmatprep.mubr.bf16.mxu1 %v4694_v0 }
 0x1d1   : > { %995 = vmatmul.mubr.bf16.gmra.mrb[28].mxu1 %v795_v34 }
 0x1d2   : > { %1072 = vmatprep.mubr.bf16.mxu1 %v4694_v0 }
 0x1d9   : > { %3827 = vmatmul.mubr.msk.bf16.vlgmr.msra.gmra.mrb[0].mxu1 %vm1015_vm0, %v778_v39  ;;  %v4494_v39 = vld [vmem:[#allocation2 + $0x90] ss:$8 sps:$4 sm:$0xff]  }
 0x1da   : > { %1082 = vmatprep.mubr.bf16.mxu1 %v4694_v0 }
 0x1e1   : > { %3828 = vmatmul.mubr.msk.bf16.gmra.mrb[4].mxu1 %vm1015_vm0, %v779_v43  ;;  %v4499_v43 = vld [vmem:[#allocation2 + $0xa4] ss:$8 sps:$4 sm:$0xff]  }
 0x1e2   : > { %1092 = vmatprep.mubr.bf16.mxu1 %v4694_v0 }
 0x1e9   : > { %3829 = vmatmul.mubr.msk.bf16.gmra.mrb[8].mxu1 %vm1015_vm0, %v780_v46 }
 0x1ea   : > { %1102 = vmatprep.mubr.bf16.mxu1 %v4694_v0 }
 0x1f1   : > { %3830 = vmatmul.mubr.msk.bf16.gmra.mrb[12].mxu1 %vm1015_vm0, %v781_v49  ;;  %v4502_v49 = vld [vmem:[#allocation2 + $0xb4] ss:$8 sps:$4 sm:$0xff]  }
 0x1f2   : > { %1112 = vmatprep.mubr.bf16.mxu1 %v4694_v0 }
 0x1f9   : > { %3831 = vmatmul.mubr.msk.bf16.gmra.mrb[16].mxu1 %vm1015_vm0, %v782_v52 }
 0x1fa   : > { %1122 = vmatprep.mubr.bf16.mxu1 %v4694_v0 }
 0x201   : > { %3832 = vmatmul.mubr.msk.bf16.gmra.mrb[20].mxu1 %vm1015_vm0, %v783_v54  ;;  %v4500_v54 = vld [vmem:[#allocation2 + $0xb0] ss:$8 sps:$4 sm:$0xff]  }
 0x202   : > { %1132 = vmatprep.mubr.bf16.mxu1 %v4694_v0 }
 0x209   : > { %3833 = vmatmul.mubr.msk.bf16.gmra.mrb[24].mxu1 %vm1015_vm0, %v784_v56  ;;  %v4505_v56 = vld [vmem:[#allocation2 + $0xc4] ss:$8 sps:$4 sm:$0xff]  }
 0x20a   : > { %1142 = vmatprep.mubr.bf16.mxu1 %v4694_v0 }
 0x211   : > { %3834 = vmatmul.mubr.msk.bf16.gmra.mrb[28].mxu1 %vm1015_vm0, %v785_v59 }
 0x212   : > { %2023 = vmatprep.mubr.bf16.mxu1 %v4694_v0 }
 0x2ac   : > { %v1074_v9 = vpop.f32.mrb[0].mxu1 }
 0x2ad   : > { %v1165_v10 = vadd.f32 %v4985_v7, %v1074_v9  ;;  %v1076_v11 = vpop.f32.mrb[1].mxu1  ;;  %v4506_v9 = vld [vmem:[#allocation2 + $0xd0] ss:$8 sps:$4 sm:$0xff]  }
 0x2ae   : > { %v4992_v12 = vadd.f32 %v4988_v8, %v1076_v11  ;;  %v1078_v13 = vpop.f32.mrb[2].mxu1 }
 0x2af   : > { %v1167_v14 = vadd.f32 %v4985_v7, %v1078_v13  ;;  %v1080_v15 = vpop.f32.mrb[3].mxu1  ;;  %v1197_v17 = vmax.f32 %v1165_v10, 0.0 }
 0x2b0   : > { %v4996_v16 = vadd.f32 %v4988_v8, %v1080_v15 }
 0x2b1   : > { %v1198_v18 = vmax.f32 %v1167_v14, 0.0 }
 0x2b3   : > { %v1213_v19 = vpack.c.bf16 %v1198_v18, %v1197_v17 }
 0x2b4   : > { %v1084_v20 = vpop.f32.mrb[4].mxu1 }
 0x2b5   : > { %v1169_v21 = vadd.f32 %v4985_v7, %v1084_v20  ;;  %v1086_v22 = vpop.f32.mrb[5].mxu1  ;;  %4216 = vmatprep.mubr.bf16.mxu0 %v1213_v19 }
 0x2b6   : > { %v5000_v23 = vadd.f32 %v4988_v8, %v1086_v22  ;;  %v1088_v24 = vpop.f32.mrb[6].mxu1 }
 0x2b7   : > { %v1171_v25 = vadd.f32 %v4985_v7, %v1088_v24  ;;  %v1090_v26 = vpop.f32.mrb[7].mxu1  ;;  %v1199_v28 = vmax.f32 %v1169_v21, 0.0 }
 0x2b8   : > { %v5004_v27 = vadd.f32 %v4988_v8, %v1090_v26 }
 0x2b9   : > { %v1200_v29 = vmax.f32 %v1171_v25, 0.0 }
 0x2bb   : > { %v1214_v31 = vpack.c.bf16 %v1200_v29, %v1199_v28 }
 0x2bc   : > { %v1094_v33 = vpop.f32.mrb[8].mxu1 }
 0x2bd   : > { %v1173_v34 = vadd.f32 %v4985_v7, %v1094_v33  ;;  %v1096_v35 = vpop.f32.mrb[9].mxu1  ;;  %4217 = vmatmul.mubr.bf16.vlgmr.msra.gmra.mrb[16].mxu0 %v1214_v31 }
 0x2be   : > { %v5008_v36 = vadd.f32 %v4988_v8, %v1096_v35  ;;  %v1098_v37 = vpop.f32.mrb[10].mxu1  ;;  %1538 = vmatpush1.bf16.msra.mxu0 %v4491_v30 }
 0x2bf   : > { %v1175_v40 = vadd.f32 %v4985_v7, %v1098_v37  ;;  %v1100_v42 = vpop.f32.mrb[11].mxu1  ;;  %1539 = vmatprep.subr.bf16.mxu0 %v4496_v32  ;;  %v1201_v45 = vmax.f32 %v1173_v34, 0.0 }
 0x2c0   : > { %v5012_v44 = vadd.f32 %v4988_v8, %v1100_v42 }
 0x2c1   : > { %v1202_v46 = vmax.f32 %v1175_v40, 0.0 }
 0x2c2   : > { %1540 = vmatpush1.bf16.msra.mxu0 %v4494_v39 }
 0x2c3   : > { %v1215_v48 = vpack.c.bf16 %v1202_v46, %v1201_v45  ;;  %1541 = vmatprep.subr.bf16.mxu0 %v4499_v43 }
 0x2c4   : > { %v1104_v50 = vpop.f32.mrb[12].mxu1 }
 0x2c5   : > { %v1177_v51 = vadd.f32 %v4985_v7, %v1104_v50  ;;  %v1106_v52 = vpop.f32.mrb[13].mxu1  ;;  %4220 = vmatprep.mubr.bf16.mxu0 %v1215_v48 }
 0x2c6   : > { %v5016_v53 = vadd.f32 %v4988_v8, %v1106_v52  ;;  %v1108_v38 = vpop.f32.mrb[14].mxu1  ;;  %1542 = vmatpush1.bf16.msra.mxu0 %v4497_v47 }
 0x2c7   : > { %v1179_v41 = vadd.f32 %v4985_v7, %v1108_v38  ;;  %v1110_v55 = vpop.f32.mrb[15].mxu1  ;;  %1543 = vmatprep.subr.bf16.mxu0 %v4502_v49  ;;  %v1203_v58 = vmax.f32 %v1177_v51, 0.0 }
 0x2c8   : > { %v5020_v57 = vadd.f32 %v4988_v8, %v1110_v55 }
 0x2c9   : > { %v1204_v59 = vmax.f32 %v1179_v41, 0.0 }
 0x2ca   : > { %1544 = vmatpush1.bf16.msra.mxu0 %v4500_v54 }
 0x2cb   : > { %v1216_v61 = vpack.c.bf16 %v1204_v59, %v1203_v58  ;;  %1545 = vmatprep.subr.bf16.mxu0 %v4505_v56  ;;  %v4511_v56 = vld [vmem:[#allocation2 + $0xe4] ss:$8 sps:$4 sm:$0xff]   ;;  %v4509_v58 = vld [vmem:[#allocation2 + $0xe0] ss:$8 sps:$4 sm:$0xff]   ;;  %v4514_v59 = vld [vmem:[#allocation2 + $0xf4] ss:$8 sps:$4 sm:$0xff]  }
 0x2cc   : > { %v1114_v63 = vpop.f32.mrb[16].mxu1 }
 0x2cd   : > { %v1181_v1 = vadd.f32 %v4985_v7, %v1114_v63  ;;  %v1116_v2 = vpop.f32.mrb[17].mxu1  ;;  %4221 = vmatmul.mubr.bf16.gmra.mrb[20].mxu0 %v1216_v61 }
 0x2ce   : > { %v5024_v3 = vadd.f32 %v4988_v8, %v1116_v2  ;;  %v1118_v5 = vpop.f32.mrb[18].mxu1  ;;  %1546 = vmatpush1.bf16.msra.mxu0 %v4503_v60  ;;  %v4512_v60 = vld [vmem:[#allocation2 + $0xf0] ss:$8 sps:$4 sm:$0xff]  }
 0x2cf   : > { %v1183_v10 = vadd.f32 %v4985_v7, %v1118_v5  ;;  %v1120_v11 = vpop.f32.mrb[19].mxu1  ;;  %1547 = vmatprep.subr.bf16.mxu0 %v4508_v62  ;;  %v1205_v14 = vmax.f32 %v1181_v1, 0.0 }
 0x2d0   : > { %v5028_v13 = vadd.f32 %v4988_v8, %v1120_v11 }
 0x2d1   : > { %v1206_v15 = vmax.f32 %v1183_v10, 0.0 }
 0x2d2   : > { %1548 = vmatpush1.bf16.msra.mxu0 %v4506_v9 }
 0x2d3   : > { %v1217_v17 = vpack.c.bf16 %v1206_v15, %v1205_v14  ;;  %1549 = vmatprep.subr.bf16.mxu0 %v4511_v56 }
 0x2d4   : > { %v1124_v18 = vpop.f32.mrb[20].mxu1 }
 0x2d5   : > { %v1185_v19 = vadd.f32 %v4985_v7, %v1124_v18  ;;  %v1126_v20 = vpop.f32.mrb[21].mxu1  ;;  %4224 = vmatprep.mubr.bf16.mxu0 %v1217_v17 }
 0x2d6   : > { %v5032_v21 = vadd.f32 %v4988_v8, %v1126_v20  ;;  %v1128_v22 = vpop.f32.mrb[22].mxu1  ;;  %1550 = vmatpush1.bf16.msra.mxu0 %v4509_v58 }
 0x2d7   : > { %v1187_v24 = vadd.f32 %v4985_v7, %v1128_v22  ;;  %v1130_v25 = vpop.f32.mrb[23].mxu1  ;;  %v1207_v28 = vmax.f32 %v1185_v19, 0.0  ;;  %1551 = vmatprep.subr.bf16.mxu0 %v4514_v59 }
 0x2d8   : > { %v5036_v26 = vadd.f32 %v4988_v8, %v1130_v25 }
 0x2d9   : > { %v1208_v29 = vmax.f32 %v1187_v24, 0.0 }
 0x2da   : > { %1552 = vmatpush1.bf16.msra.mxu0 %v4512_v60 }
 0x2db   : > { %v1218_v30 = vpack.c.bf16 %v1208_v29, %v1207_v28  ;;  %v4516_v28 = vld [vmem:[%s5854_s9 + $0x48] sm:$0xff]  }
 0x2dc   : > { %v1134_v31 = vpop.f32.mrb[24].mxu1 }
 0x2dd   : > { %v1189_v32 = vadd.f32 %v4985_v7, %v1134_v31  ;;  %v1136_v33 = vpop.f32.mrb[25].mxu1  ;;  %4225 = vmatmul.mubr.bf16.gmra.mrb[24].mxu0 %v1218_v30  ;;  %v4518_v31 = vld [vmem:[%s5854_s9 + $0x58] sm:$0xff]  }
 0x2de   : > { %v5040_v34 = vadd.f32 %v4988_v8, %v1136_v33  ;;  %v1138_v35 = vpop.f32.mrb[26].mxu1 }
 0x2df   : > { %v1191_v37 = vadd.f32 %v4985_v7, %v1138_v35  ;;  %v1140_v39 = vpop.f32.mrb[27].mxu1  ;;  %v1209_v42 = vmax.f32 %v1189_v32, 0.0 }
 0x2e0   : > { %v5044_v40 = vadd.f32 %v4988_v8, %v1140_v39 }
 0x2e1   : > { %v1210_v43 = vmax.f32 %v1191_v37, 0.0 }
 0x2e3   : > { %v1219_v45 = vpack.c.bf16 %v1210_v43, %v1209_v42 }
 0x2e4   : > { %v1144_v46 = vpop.f32.mrb[28].mxu1 }
 0x2e5   : > { %v1193_v47 = vadd.f32 %v4985_v7, %v1144_v46  ;;  %v1146_v48 = vpop.f32.mrb[29].mxu1  ;;  %4228 = vmatprep.mubr.bf16.mxu0 %v1219_v45 }
 0x2e6   : > { %v5048_v49 = vadd.f32 %v4988_v8, %v1146_v48  ;;  %v1148_v50 = vpop.f32.mrb[30].mxu1 }
 0x2e7   : > { %v1195_v51 = vadd.f32 %v4985_v7, %v1148_v50  ;;  %v1150_v52 = vpop.f32.mrb[31].mxu1  ;;  %v1211_v54 = vmax.f32 %v1193_v47, 0.0  ;;  %v4515_v7 = vld [vmem:[%s5854_s9 + $0x40] sm:$0xff]  }
 0x2e8   : > { %v5052_v38 = vadd.f32 %v4988_v8, %v1150_v52  ;;  %4232 = vmatprep.subr.bf16.mxu0 %v4515_v7  ;;  %v5061_v8 = vld [vmem:[%s5855_s10] ss:$0 sm:$0xff] }
 0x2e9   : > { %v1212_v41 = vmax.f32 %v1195_v51, 0.0  ;;  %v4519_v47 = vld [vmem:[%s5854_s9 + $0x60] sm:$0xff]  }
 0x2eb   : > { %v1220_v55 = vpack.c.bf16 %v1212_v41, %v1211_v54 }
 0x2ed   : > { %4229 = vmatmul.mubr.bf16.gmra.mrb[28].mxu0 %v1220_v55 }
 0x2ee   : > { %1569 = vmatprep.mubr.bf16.mxu0 %v4694_v0 }
 0x390   : > { %v4218_v61 = vpop.f32.mrb[16].mxu0 }
 0x391   : > { %v1333_v62 = vadd.f32 %v4218_v61, %v5061_v8  ;;  %v1324_v63 = vpop.f32.mrb[17].mxu0 }
 0x392   : > { %v1325_v1 = vadd.f32 %v5061_v8, %v1324_v63  ;;  %v4219_v2 = vpop.f32.mrb[18].mxu0 }
 0x393   : > { %v1389_v5 = vmax.f32 %v1333_v62, 0.0  ;;  %v1336_v9 = vadd.f32 %v4219_v2, %v5061_v8  ;;  %v1327_v10 = vpop.f32.mrb[19].mxu0 }
 0x394   : > { %v1387_v11 = vmax.f32 %v1325_v1, 0.0  ;;  %v1328_v14 = vadd.f32 %v5061_v8, %v1327_v10 }
 0x395   : > { %v1405_v15 = vadd.f32 %v1389_v5, %v5000_v23  ;;  %v1390_v17 = vmax.f32 %v1336_v9, 0.0 }
 0x396   : > { %v1403_v18 = vadd.f32 %v1387_v11, %v4992_v12  ;;  %v1388_v19 = vmax.f32 %v1328_v14, 0.0  ;;  %v4517_v12 = vld [vmem:[%s5854_s9 + $0x50] sm:$0xff]  }
 0x397   : > { %v1406_v20 = vadd.f32 %v1390_v17, %v5004_v27 }
 0x398   : > { %v1404_v22 = vadd.f32 %v1388_v19, %v4996_v16 }
 0x399   : > { %v1420_v24 = vpack.c.bf16 %v1406_v20, %v1405_v15 }
 0x39a   : > { %v1419_v25 = vpack.c.bf16 %v1404_v22, %v1403_v18 }
 0x39c   : > { %1570 = vmatmul.mubr.bf16.vlgmr.msra.gmra.mrb[32].mxu0 %v1419_v25 }
 0x39d   : > { %1579 = vmatprep.mubr.bf16.mxu0 %v4694_v0  ;;  %4233 = vmatpush3.bf16.msra.mxu0 %v4515_v7 }
 0x39e   : > { %4234 = vmatprep.subr.bf16.mxu0 %v4516_v28 }
 0x3a0   : > { %v4222_v23 = vpop.f32.mrb[20].mxu0 }
 0x3a1   : > { %v1349_v27 = vadd.f32 %v4222_v23, %v5061_v8  ;;  %v1340_v29 = vpop.f32.mrb[21].mxu0  ;;  %4235 = vmatpush3.bf16.msra.mxu0 %v4516_v28 }
 0x3a2   : > { %v1341_v16 = vadd.f32 %v5061_v8, %v1340_v29  ;;  %v4223_v30 = vpop.f32.mrb[22].mxu0  ;;  %4236 = vmatprep.subr.bf16.mxu0 %v4517_v12  ;;  %v4531_v29 = vld [vmem:[#allocation2 + $0x124] ss:$8 sps:$4 sm:$0xff]  }
 0x3a3   : > { %v1393_v32 = vmax.f32 %v1349_v27, 0.0  ;;  %v1352_v33 = vadd.f32 %v4223_v30, %v5061_v8  ;;  %v1343_v35 = vpop.f32.mrb[23].mxu0  ;;  %v4526_v27 = vld [vmem:[#allocation2 + $0x110] ss:$8 sps:$4 sm:$0xff]   ;;  %v4534_v30 = vld [vmem:[#allocation2 + $0x134] ss:$8 sps:$4 sm:$0xff]  }
 0x3a4   : > { %v1391_v37 = vmax.f32 %v1341_v16, 0.0  ;;  %v1344_v39 = vadd.f32 %v5061_v8, %v1343_v35  ;;  %1580 = vmatmul.mubr.bf16.gmra.mrb[36].mxu0 %v1420_v24  ;;  %v4529_v16 = vld [vmem:[#allocation2 + $0x120] ss:$8 sps:$4 sm:$0xff]   ;;  %v4540_v35 = vld [vmem:[#allocation2 + $0x154] ss:$8 sps:$4 sm:$0xff]  }
 0x3a5   : > { %v1409_v42 = vadd.f32 %v1393_v32, %v5016_v53  ;;  %v1394_v43 = vmax.f32 %v1352_v33, 0.0  ;;  %1589 = vmatprep.mubr.bf16.mxu0 %v4694_v0  ;;  %4237 = vmatpush3.bf16.msra.mxu0 %v4517_v12  ;;  %v4520_v53 = vld [vmem:[%s5854_s9 + $0x68] sm:$0xff]  }
 0x3a6   : > { %v1407_v45 = vadd.f32 %v1391_v37, %v5008_v36  ;;  %v1392_v46 = vmax.f32 %v1344_v39, 0.0  ;;  %4238 = vmatprep.subr.bf16.mxu0 %v4518_v31  ;;  %v4537_v32 = vld [vmem:[#allocation2 + $0x144] ss:$8 sps:$4 sm:$0xff]   ;;  %v4535_v33 = vld [vmem:[#allocation2 + $0x140] ss:$8 sps:$4 sm:$0xff]  }
 0x3a7   : > { %v1410_v48 = vadd.f32 %v1394_v43, %v5020_v57  ;;  %v4538_v37 = vld [vmem:[#allocation2 + $0x150] ss:$8 sps:$4 sm:$0xff]   ;;  %v4543_v39 = vld [vmem:[#allocation2 + $0x164] ss:$8 sps:$4 sm:$0xff]  }
 0x3a8   : > { %v1408_v50 = vadd.f32 %v1392_v46, %v5012_v44  ;;  %v5126_v43 = vld [vmem:[%s5853_s8 + $0x1] ss:$8 sm:$0x3] }
 0x3a9   : > { %v1422_v51 = vpack.c.bf16 %v1410_v48, %v1409_v42  ;;  %4239 = vmatpush3.bf16.msra.mxu0 %v4518_v31  ;;  %v4532_v31 = vld [vmem:[#allocation2 + $0x130] ss:$8 sps:$4 sm:$0xff]   ;;  %v4541_v42 = vld [vmem:[#allocation2 + $0x160] ss:$8 sps:$4 sm:$0xff]  }
 0x3aa   : > { %v1421_v52 = vpack.c.bf16 %v1408_v50, %v1407_v45  ;;  %4240 = vmatprep.subr.bf16.mxu0 %v4519_v47  ;;  %v5130_v45 = vrot.slane %v5126_v43, %v4977_v4 }
 0x3ac   : > { %1590 = vmatmul.mubr.bf16.gmra.mrb[40].mxu0 %v1421_v52 }
 0x3ad   : > { %1599 = vmatprep.mubr.bf16.mxu0 %v4694_v0  ;;  %4241 = vmatpush3.bf16.msra.mxu0 %v4519_v47 }
 0x3ae   : > { %4242 = vmatprep.subr.bf16.mxu0 %v4520_v53 }
 0x3b0   : > { %v4226_v36 = vpop.f32.mrb[24].mxu0 }
 0x3b1   : > { %v1365_v54 = vadd.f32 %v4226_v36, %v5061_v8  ;;  %v1356_v41 = vpop.f32.mrb[25].mxu0  ;;  %4243 = vmatpush3.bf16.msra.mxu0 %v4520_v53 }
 0x3b2   : > { %v1357_v44 = vadd.f32 %v5061_v8, %v1356_v41  ;;  %v4227_v57 = vpop.f32.mrb[26].mxu0 }
 0x3b3   : > { %v1397_v55 = vmax.f32 %v1365_v54, 0.0  ;;  %v1368_v56 = vadd.f32 %v4227_v57, %v5061_v8  ;;  %v1359_v58 = vpop.f32.mrb[27].mxu0 }
 0x3b4   : > { %v1395_v59 = vmax.f32 %v1357_v44, 0.0  ;;  %v1360_v60 = vadd.f32 %v5061_v8, %v1359_v58  ;;  %1600 = vmatmul.mubr.bf16.gmra.mrb[44].mxu0 %v1422_v51 }
 0x3b5   : > { %v1413_v7 = vadd.f32 %v1397_v55, %v5032_v21  ;;  %v1398_v61 = vmax.f32 %v1368_v56, 0.0  ;;  %1609 = vmatprep.mubr.bf16.mxu0 %v4694_v0 }
 0x3b6   : > { %v1411_v62 = vadd.f32 %v1395_v59, %v5024_v3  ;;  %v1396_v63 = vmax.f32 %v1360_v60, 0.0 }
 0x3b7   : > { %v1414_v1 = vadd.f32 %v1398_v61, %v5036_v26 }
 0x3b8   : > { %v1412_v2 = vadd.f32 %v1396_v63, %v5028_v13 }
 0x3b9   : > { %v1424_v5 = vpack.c.bf16 %v1414_v1, %v1413_v7 }
 0x3ba   : > { %v1423_v9 = vpack.c.bf16 %v1412_v2, %v1411_v62 }
 0x3bc   : > { %1610 = vmatmul.mubr.bf16.gmra.mrb[48].mxu0 %v1423_v9 }
 0x3bd   : > { %1619 = vmatprep.mubr.bf16.mxu0 %v4694_v0 }
 0x3c0   : > { %v4230_v10 = vpop.f32.mrb[28].mxu0 }
 0x3c1   : > { %v1381_v11 = vadd.f32 %v4230_v10, %v5061_v8  ;;  %v1372_v14 = vpop.f32.mrb[29].mxu0 }
 0x3c2   : > { %v1373_v21 = vadd.f32 %v5061_v8, %v1372_v14  ;;  %v4231_v15 = vpop.f32.mrb[30].mxu0 }
 0x3c3   : > { %v1401_v17 = vmax.f32 %v1381_v11, 0.0  ;;  %v1384_v3 = vadd.f32 %v4231_v15, %v5061_v8  ;;  %v1375_v18 = vpop.f32.mrb[31].mxu0 }
 0x3c4   : > { %v1399_v19 = vmax.f32 %v1373_v21, 0.0  ;;  %v1376_v26 = vadd.f32 %v5061_v8, %v1375_v18  ;;  %1620 = vmatmul.mubr.bf16.gmra.mrb[52].mxu0 %v1424_v5  ;;  %v4528_v8 = vld [vmem:[#allocation2 + $0x114] ss:$8 sps:$4 sm:$0xff]  }
 0x3c5   : > { %v1417_v13 = vadd.f32 %v1401_v17, %v5048_v49  ;;  %v1402_v20 = vmax.f32 %v1384_v3, 0.0  ;;  %1629 = vmatprep.mubr.bf16.mxu0 %v4694_v0  ;;  %v4521_v49 = vld [vmem:[%s5854_s9 + $0x70] sm:$0xff]  }
 0x3c6   : > { %v1415_v22 = vadd.f32 %v1399_v19, %v5040_v34  ;;  %v1400_v24 = vmax.f32 %v1376_v26, 0.0  ;;  %4244 = vmatprep.subr.bf16.mxu0 %v4521_v49  ;;  %v4522_v34 = vld [vmem:[%s5854_s9 + $0x78] sm:$0xff]  }
 0x3c7   : > { %v1418_v25 = vadd.f32 %v1402_v20, %v5052_v38  ;;  %4245 = vmatpush3.bf16.msra.mxu0 %v4521_v49  ;;  %v4523_v38 = vld [vmem:[#allocation2 + $0x100] ss:$8 sps:$4 sm:$0xff]  }
 0x3c8   : > { %v1416_v28 = vadd.f32 %v1400_v24, %v5044_v40  ;;  %4246 = vmatprep.subr.bf16.mxu0 %v4522_v34  ;;  %v4525_v40 = vld [vmem:[#allocation2 + $0x104] ss:$8 sps:$4 sm:$0xff]  }
 0x3c9   : > { %v1426_v12 = vpack.c.bf16 %v1418_v25, %v1417_v13  ;;  %1991 = vmatprep.subr.bf16.mxu1 %v4525_v40 }
 0x3ca   : > { %v1425_v23 = vpack.c.bf16 %v1416_v28, %v1415_v22  ;;  %1992 = vmatpush1.bf16.msra.mxu1 %v4523_v38 }
 0x3cb   : > { %4247 = vmatpush3.bf16.msra.mxu0 %v4522_v34  ;;  %1993 = vmatprep.subr.bf16.mxu1 %v4528_v8 }
 0x3cc   : > { %1630 = vmatmul.mubr.bf16.gmra.mrb[56].mxu0 %v1425_v23 }
 0x3cd   : > { %1639 = vmatprep.mubr.bf16.mxu0 %v4694_v0 }
 0x3ce   : > { %1994 = vmatpush1.bf16.msra.mxu1 %v4526_v27 }
 0x3cf   : > { %1995 = vmatprep.subr.bf16.mxu1 %v4531_v29 }
 0x3d2   : > { %1996 = vmatpush1.bf16.msra.mxu1 %v4529_v16 }
 0x3d3   : > { %1997 = vmatprep.subr.bf16.mxu1 %v4534_v30 }
 0x3d4   : > { %1640 = vmatmul.mubr.bf16.gmra.mrb[60].mxu0 %v1426_v12 }
 0x3d6   : > { %1998 = vmatpush1.bf16.msra.mxu1 %v4532_v31 }
 0x3d7   : > { %1999 = vmatprep.subr.bf16.mxu1 %v4537_v32 }
 0x3da   : > { %2000 = vmatpush1.bf16.msra.mxu1 %v4535_v33 }
 0x3db   : > { %2001 = vmatprep.subr.bf16.mxu1 %v4540_v35 }
 0x3de   : > { %2002 = vmatpush1.bf16.msra.mxu1 %v4538_v37 }
 0x3df   : > { %2003 = vmatprep.subr.bf16.mxu1 %v4543_v39 }
 0x3e2   : > { %2004 = vmatpush1.bf16.msra.mxu1 %v4541_v42 }
 0x46f   : > { %v1571_v46 = vpop.f32.mrb[32].mxu0 }
 0x470   : > { %v1572_v47 = vadd.f32 %v1571_v46, %v5130_v45  ;;  %v5133_v48 = vpop.f32.mrb[33].mxu0 }
 0x471   : > { %v1575_v50 = vpop.f32.mrb[34].mxu0 }
 0x472   : > { %v1576_v51 = vadd.f32 %v1575_v50, %v5130_v45  ;;  %v5136_v52 = vpop.f32.mrb[35].mxu0  ;;  %v1650_v53 = vmax.f32 %v1572_v47, 0.0 }
 0x474   : > { %v1651_v36 = vmax.f32 %v1576_v51, 0.0 }
 0x476   : > { %v1666_v54 = vpack.c.bf16 %v1651_v36, %v1650_v53 }
 0x477   : > { %v1581_v41 = vpop.f32.mrb[36].mxu0 }
 0x478   : > { %v1582_v44 = vadd.f32 %v1581_v41, %v5130_v45  ;;  %v5139_v57 = vpop.f32.mrb[37].mxu0  ;;  %4248 = vmatprep.mubr.bf16.mxu0 %v1666_v54 }
 0x479   : > { %v1585_v55 = vpop.f32.mrb[38].mxu0 }
 0x47a   : > { %v1586_v56 = vadd.f32 %v1585_v55, %v5130_v45  ;;  %v5142_v58 = vpop.f32.mrb[39].mxu0  ;;  %v1652_v59 = vmax.f32 %v1582_v44, 0.0 }
 0x47c   : > { %v1653_v60 = vmax.f32 %v1586_v56, 0.0 }
 0x47e   : > { %v1667_v7 = vpack.c.bf16 %v1653_v60, %v1652_v59 }
 0x47f   : > { %v1591_v61 = vpop.f32.mrb[40].mxu0 }
 0x480   : > { %v1592_v62 = vadd.f32 %v1591_v61, %v5130_v45  ;;  %v5145_v63 = vpop.f32.mrb[41].mxu0  ;;  %4249 = vmatmul.mubr.bf16.vlgmr.msra.gmra.mrb[64].mxu0 %v1667_v7  ;;  %v4546_v7 = vld [vmem:[#allocation2 + $0x174] ss:$8 sps:$4 sm:$0xff]   ;;  %v4544_v61 = vld [vmem:[#allocation2 + $0x170] ss:$8 sps:$4 sm:$0xff]  }
 0x481   : > { %v1595_v1 = vpop.f32.mrb[42].mxu0  ;;  %2005 = vmatprep.subr.bf16.mxu1 %v4546_v7 }
 0x482   : > { %v1596_v2 = vadd.f32 %v1595_v1, %v5130_v45  ;;  %v5148_v5 = vpop.f32.mrb[43].mxu0  ;;  %v1654_v9 = vmax.f32 %v1592_v62, 0.0  ;;  %2006 = vmatpush1.bf16.msra.mxu1 %v4544_v61  ;;  %v4547_v62 = vld [vmem:[%s5854_s9 + $0x80] sm:$0xff]   ;;  %v4548_v1 = vld [vmem:[%s5854_s9 + $0x88] sm:$0xff]  }
 0x483   : > { %4264 = vmatprep.subr.bf16.mxu0 %v4547_v62 }
 0x484   : > { %v1655_v10 = vmax.f32 %v1596_v2, 0.0  ;;  %4265 = vmatpush3.bf16.msra.mxu0 %v4547_v62  ;;  %v4550_v2 = vld [vmem:[%s5854_s9 + $0x98] sm:$0xff]  }
 0x485   : > { %4266 = vmatprep.subr.bf16.mxu0 %v4548_v1 }
 0x486   : > { %v1668_v11 = vpack.c.bf16 %v1655_v10, %v1654_v9  ;;  %v5195_v9 = vld [vmem:[%s5855_s10 + $0x1] ss:$0 sm:$0xff]  ;;  %v5199_v10 = vrot.slane %v5126_v43, %v4982_v6 }
 0x487   : > { %v1601_v14 = vpop.f32.mrb[44].mxu0 }
 0x488   : > { %v1602_v21 = vadd.f32 %v1601_v14, %v5130_v45  ;;  %v5151_v15 = vpop.f32.mrb[45].mxu0  ;;  %4252 = vmatprep.mubr.bf16.mxu0 %v1668_v11  ;;  %4267 = vmatpush3.bf16.msra.mxu0 %v4548_v1 }
 0x489   : > { %v1605_v17 = vpop.f32.mrb[46].mxu0 }
 0x48a   : > { %v1606_v3 = vadd.f32 %v1605_v17, %v5130_v45  ;;  %v5154_v18 = vpop.f32.mrb[47].mxu0  ;;  %v1656_v19 = vmax.f32 %v1602_v21, 0.0 }
 0x48c   : > { %v1657_v26 = vmax.f32 %v1606_v3, 0.0 }
 0x48e   : > { %v1669_v13 = vpack.c.bf16 %v1657_v26, %v1656_v19  ;;  %v1584_v19 = vadd.f32 %v5139_v57, %v5199_v10 }
 0x48f   : > { %v1611_v20 = vpop.f32.mrb[48].mxu0 }
 0x490   : > { %v1612_v22 = vadd.f32 %v1611_v20, %v5130_v45  ;;  %v5157_v24 = vpop.f32.mrb[49].mxu0  ;;  %4253 = vmatmul.mubr.bf16.gmra.mrb[68].mxu0 %v1669_v13 }
 0x491   : > { %v1615_v25 = vpop.f32.mrb[50].mxu0 }
 0x492   : > { %v1616_v28 = vadd.f32 %v1615_v25, %v5130_v45  ;;  %v5160_v12 = vpop.f32.mrb[51].mxu0  ;;  %v1658_v23 = vmax.f32 %v1612_v22, 0.0  ;;  %v1574_v22 = vadd.f32 %v5133_v48, %v5199_v10 }
 0x494   : > { %v1659_v49 = vmax.f32 %v1616_v28, 0.0  ;;  %v1588_v28 = vadd.f32 %v5142_v58, %v5199_v10 }
 0x496   : > { %v1670_v34 = vpack.c.bf16 %v1659_v49, %v1658_v23 }
 0x497   : > { %v1621_v38 = vpop.f32.mrb[52].mxu0 }
 0x498   : > { %v1622_v40 = vadd.f32 %v1621_v38, %v5130_v45  ;;  %v5163_v8 = vpop.f32.mrb[53].mxu0  ;;  %4256 = vmatprep.mubr.bf16.mxu0 %v1670_v34  ;;  %v1578_v34 = vadd.f32 %v5136_v52, %v5199_v10 }
 0x499   : > { %v1625_v27 = vpop.f32.mrb[54].mxu0 }
 0x49a   : > { %v1626_v29 = vadd.f32 %v1625_v27, %v5130_v45  ;;  %v5166_v16 = vpop.f32.mrb[55].mxu0  ;;  %v1660_v30 = vmax.f32 %v1622_v40, 0.0 }
 0x49c   : > { %v1661_v31 = vmax.f32 %v1626_v29, 0.0 }
 0x49e   : > { %v1671_v32 = vpack.c.bf16 %v1661_v31, %v1660_v30 }
 0x49f   : > { %v1631_v33 = vpop.f32.mrb[56].mxu0 }
 0x4a0   : > { %v1632_v35 = vadd.f32 %v1631_v33, %v5130_v45  ;;  %v5169_v37 = vpop.f32.mrb[57].mxu0  ;;  %4257 = vmatmul.mubr.bf16.gmra.mrb[72].mxu0 %v1671_v32 }
 0x4a1   : > { %v1635_v39 = vpop.f32.mrb[58].mxu0 }
 0x4a2   : > { %v1636_v42 = vadd.f32 %v1635_v39, %v5130_v45  ;;  %v5172_v46 = vpop.f32.mrb[59].mxu0  ;;  %v1662_v47 = vmax.f32 %v1632_v35, 0.0  ;;  %v1604_v35 = vadd.f32 %v5151_v15, %v5199_v10  ;;  %v1598_v15 = vadd.f32 %v5148_v5, %v5199_v10 }
 0x4a4   : > { %v1663_v50 = vmax.f32 %v1636_v42, 0.0 }
 0x4a6   : > { %v1672_v51 = vpack.c.bf16 %v1663_v50, %v1662_v47  ;;  %v1594_v47 = vadd.f32 %v5145_v63, %v5199_v10 }
 0x4a7   : > { %v1641_v53 = vpop.f32.mrb[60].mxu0 }
 0x4a8   : > { %v1642_v36 = vadd.f32 %v1641_v53, %v5130_v45  ;;  %v5175_v54 = vpop.f32.mrb[61].mxu0  ;;  %4260 = vmatprep.mubr.bf16.mxu0 %v1672_v51  ;;  %v1608_v53 = vadd.f32 %v5154_v18, %v5199_v10 }
 0x4a9   : > { %v1645_v41 = vpop.f32.mrb[62].mxu0 }
 0x4aa   : > { %v1646_v44 = vadd.f32 %v1645_v41, %v5130_v45  ;;  %v5178_v55 = vpop.f32.mrb[63].mxu0  ;;  %v1664_v56 = vmax.f32 %v1642_v36, 0.0  ;;  %v4549_v45 = vld [vmem:[%s5854_s9 + $0x90] sm:$0xff]  }
 0x4ab   : > { %4268 = vmatprep.subr.bf16.mxu0 %v4549_v45 }
 0x4ac   : > { %v1665_v59 = vmax.f32 %v1646_v44, 0.0  ;;  %4269 = vmatpush3.bf16.msra.mxu0 %v4549_v45 }
 0x4ad   : > { %4270 = vmatprep.subr.bf16.mxu0 %v4550_v2 }
 0x4ae   : > { %v1673_v60 = vpack.c.bf16 %v1665_v59, %v1664_v56 }
 0x4b0   : > { %4261 = vmatmul.mubr.bf16.gmra.mrb[76].mxu0 %v1673_v60 }
 0x4b1   : > { %4271 = vmatpush3.bf16.msra.mxu0 %v4550_v2  ;;  %v1624_v2 = vadd.f32 %v5163_v8, %v5199_v10  ;;  %v1618_v8 = vadd.f32 %v5160_v12, %v5199_v10 }
 0x553   : > { %v4250_v11 = vpop.f32.mrb[64].mxu0 }
 0x554   : > { %v1787_v14 = vadd.f32 %v4250_v11, %v5195_v9  ;;  %v1778_v21 = vpop.f32.mrb[65].mxu0 }
 0x555   : > { %v1779_v17 = vadd.f32 %v5195_v9, %v1778_v21  ;;  %v4251_v3 = vpop.f32.mrb[66].mxu0  ;;  %v1614_v21 = vadd.f32 %v5157_v24, %v5199_v10 }
 0x556   : > { %v1843_v26 = vmax.f32 %v1787_v14, 0.0  ;;  %v1790_v13 = vadd.f32 %v4251_v3, %v5195_v9  ;;  %v1781_v20 = vpop.f32.mrb[67].mxu0 }
 0x557   : > { %v1841_v25 = vmax.f32 %v1779_v17, 0.0  ;;  %v1782_v43 = vadd.f32 %v5195_v9, %v1781_v20 }
 0x558   : > { %v1859_v23 = vadd.f32 %v1843_v26, %v1584_v19  ;;  %v1844_v49 = vmax.f32 %v1790_v13, 0.0  ;;  %v1628_v19 = vadd.f32 %v5166_v16, %v5199_v10 }
 0x559   : > { %v1857_v38 = vadd.f32 %v1841_v25, %v1574_v22  ;;  %v1842_v57 = vmax.f32 %v1782_v43, 0.0 }
 0x55a   : > { %v1860_v40 = vadd.f32 %v1844_v49, %v1588_v28 }
 0x55b   : > { %v1858_v27 = vadd.f32 %v1842_v57, %v1578_v34  ;;  %v1644_v57 = vadd.f32 %v5175_v54, %v5199_v10  ;;  %v1638_v54 = vadd.f32 %v5172_v46, %v5199_v10  ;;  %v4552_v46 = vld [vmem:[%s5854_s9 + $0xa8] sm:$0xff]  }
 0x55c   : > { %v1874_v29 = vpack.c.bf16 %v1860_v40, %v1859_v23 }
 0x55d   : > { %v1873_v30 = vpack.c.bf16 %v1858_v27, %v1857_v38 }
 0x55f   : > { %2024 = vmatmul.mubr.bf16.vlgmr.msra.gmra.mrb[32].mxu1 %v1873_v30 }
 0x560   : > { %2033 = vmatprep.mubr.bf16.mxu1 %v4694_v0 }
 0x563   : > { %v4254_v48 = vpop.f32.mrb[68].mxu0 }
 0x564   : > { %v1803_v31 = vadd.f32 %v4254_v48, %v5195_v9  ;;  %v1794_v32 = vpop.f32.mrb[69].mxu0 }
 0x565   : > { %v1795_v58 = vadd.f32 %v5195_v9, %v1794_v32  ;;  %v4255_v33 = vpop.f32.mrb[70].mxu0 }
 0x566   : > { %v1847_v52 = vmax.f32 %v1803_v31, 0.0  ;;  %v1806_v39 = vadd.f32 %v4255_v33, %v5195_v9  ;;  %v1797_v42 = vpop.f32.mrb[71].mxu0  ;;  %v1648_v31 = vadd.f32 %v5178_v55, %v5199_v10  ;;  %v4551_v55 = vld [vmem:[%s5854_s9 + $0xa0] sm:$0xff]  }
 0x567   : > { %v1845_v50 = vmax.f32 %v1795_v58, 0.0  ;;  %v1798_v51 = vadd.f32 %v5195_v9, %v1797_v42  ;;  %2034 = vmatmul.mubr.bf16.gmra.mrb[36].mxu1 %v1874_v29  ;;  %v1634_v29 = vadd.f32 %v5169_v37, %v5199_v10  ;;  %4272 = vmatprep.subr.bf16.mxu0 %v4551_v55  ;;  %v4554_v10 = vld [vmem:[%s5854_s9 + $0xb8] sm:$0xff]  }
 0x568   : > { %v1863_v36 = vadd.f32 %v1847_v52, %v1604_v35  ;;  %v1848_v41 = vmax.f32 %v1806_v39, 0.0  ;;  %2043 = vmatprep.mubr.bf16.mxu1 %v4694_v0  ;;  %4273 = vmatpush3.bf16.msra.mxu0 %v4551_v55 }
 0x569   : > { %v1861_v44 = vadd.f32 %v1845_v50, %v1594_v47  ;;  %v1846_v56 = vmax.f32 %v1798_v51, 0.0  ;;  %4274 = vmatprep.subr.bf16.mxu0 %v4552_v46  ;;  %v4557_v47 = vld [vmem:[#allocation2 + $0x184] ss:$8 sps:$4 sm:$0xff]   ;;  %v5271_v50 = vld [vmem:[%s5853_s8 + $0x2] ss:$8 sm:$0x3] }
 0x56a   : > { %v1864_v59 = vadd.f32 %v1848_v41, %v1608_v53  ;;  %v5275_v51 = vrot.slane %v5271_v50, %v4977_v4 }
 0x56b   : > { %v1862_v60 = vadd.f32 %v1846_v56, %v1598_v15 }
 0x56c   : > { %v1876_v7 = vpack.c.bf16 %v1864_v59, %v1863_v36  ;;  %4275 = vmatpush3.bf16.msra.mxu0 %v4552_v46 }
 0x56d   : > { %v1875_v63 = vpack.c.bf16 %v1862_v60, %v1861_v44 }
 0x56f   : > { %2044 = vmatmul.mubr.bf16.gmra.mrb[40].mxu1 %v1875_v63 }
 0x570   : > { %2053 = vmatprep.mubr.bf16.mxu1 %v4694_v0 }
 0x573   : > { %v4258_v61 = vpop.f32.mrb[72].mxu0 }
 0x574   : > { %v1819_v62 = vadd.f32 %v4258_v61, %v5195_v9  ;;  %v1810_v18 = vpop.f32.mrb[73].mxu0 }
 0x575   : > { %v1811_v1 = vadd.f32 %v5195_v9, %v1810_v18  ;;  %v4259_v45 = vpop.f32.mrb[74].mxu0 }
 0x576   : > { %v1851_v5 = vmax.f32 %v1819_v62, 0.0  ;;  %v1822_v11 = vadd.f32 %v4259_v45, %v5195_v9  ;;  %v1813_v14 = vpop.f32.mrb[75].mxu0 }
 0x577   : > { %v1849_v17 = vmax.f32 %v1811_v1, 0.0  ;;  %v1814_v3 = vadd.f32 %v5195_v9, %v1813_v14  ;;  %2054 = vmatmul.mubr.bf16.gmra.mrb[44].mxu1 %v1876_v7 }
 0x578   : > { %v1867_v26 = vadd.f32 %v1851_v5, %v1624_v2  ;;  %v1852_v13 = vmax.f32 %v1822_v11, 0.0  ;;  %2063 = vmatprep.mubr.bf16.mxu1 %v4694_v0  ;;  %v4555_v11 = vld [vmem:[#allocation2 + $0x180] ss:$8 sps:$4 sm:$0xff]  }
 0x579   : > { %v1865_v20 = vadd.f32 %v1849_v17, %v1614_v21  ;;  %v1850_v22 = vmax.f32 %v1814_v3, 0.0  ;;  %v4560_v21 = vld [vmem:[#allocation2 + $0x194] ss:$8 sps:$4 sm:$0xff]  }
 0x57a   : > { %v1868_v25 = vadd.f32 %v1852_v13, %v1628_v19  ;;  %v4558_v13 = vld [vmem:[#allocation2 + $0x190] ss:$8 sps:$4 sm:$0xff]  }
 0x57b   : > { %v1866_v43 = vadd.f32 %v1850_v22, %v1618_v8  ;;  %v4563_v22 = vld [vmem:[#allocation2 + $0x1a4] ss:$8 sps:$4 sm:$0xff]  }
 0x57c   : > { %v1878_v28 = vpack.c.bf16 %v1868_v25, %v1867_v26 }
 0x57d   : > { %v1877_v24 = vpack.c.bf16 %v1866_v43, %v1865_v20 }
 0x57f   : > { %2064 = vmatmul.mubr.bf16.gmra.mrb[48].mxu1 %v1877_v24 }
 0x580   : > { %2073 = vmatprep.mubr.bf16.mxu1 %v4694_v0 }
 0x583   : > { %v4262_v23 = vpop.f32.mrb[76].mxu0 }
 0x584   : > { %v1835_v49 = vadd.f32 %v4262_v23, %v5195_v9  ;;  %v1826_v16 = vpop.f32.mrb[77].mxu0  ;;  %v4566_v23 = vld [vmem:[#allocation2 + $0x1b4] ss:$8 sps:$4 sm:$0xff]  }
 0x585   : > { %v1827_v34 = vadd.f32 %v5195_v9, %v1826_v16  ;;  %v4263_v38 = vpop.f32.mrb[78].mxu0 }
 0x586   : > { %v1855_v12 = vmax.f32 %v1835_v49, 0.0  ;;  %v1838_v40 = vadd.f32 %v4263_v38, %v5195_v9  ;;  %v1829_v27 = vpop.f32.mrb[79].mxu0 }
 0x587   : > { %v1853_v30 = vmax.f32 %v1827_v34, 0.0  ;;  %v1830_v48 = vadd.f32 %v5195_v9, %v1829_v27  ;;  %2074 = vmatmul.mubr.bf16.gmra.mrb[52].mxu1 %v1878_v28  ;;  %v4553_v9 = vld [vmem:[%s5854_s9 + $0xb0] sm:$0xff]   ;;  %v4561_v28 = vld [vmem:[#allocation2 + $0x1a0] ss:$8 sps:$4 sm:$0xff]   ;;  %v4569_v27 = vld [vmem:[#allocation2 + $0x1c4] ss:$8 sps:$4 sm:$0xff]  }
 0x588   : > { %v1871_v32 = vadd.f32 %v1855_v12, %v1644_v57  ;;  %v1856_v58 = vmax.f32 %v1838_v40, 0.0  ;;  %2083 = vmatprep.mubr.bf16.mxu1 %v4694_v0  ;;  %4276 = vmatprep.subr.bf16.mxu0 %v4553_v9  ;;  %v4564_v57 = vld [vmem:[#allocation2 + $0x1b0] ss:$8 sps:$4 sm:$0xff]  }
 0x589   : > { %v1869_v33 = vadd.f32 %v1853_v30, %v1634_v29  ;;  %v1854_v35 = vmax.f32 %v1830_v48, 0.0  ;;  %4277 = vmatpush3.bf16.msra.mxu0 %v4553_v9  ;;  %v4567_v48 = vld [vmem:[#allocation2 + $0x1c0] ss:$8 sps:$4 sm:$0xff]  }
 0x58a   : > { %v1872_v52 = vadd.f32 %v1856_v58, %v1648_v31  ;;  %4278 = vmatprep.subr.bf16.mxu0 %v4554_v10 }
 0x58b   : > { %v1870_v39 = vadd.f32 %v1854_v35, %v1638_v54 }
 0x58c   : > { %v1880_v42 = vpack.c.bf16 %v1872_v52, %v1871_v32  ;;  %v4572_v32 = vld [vmem:[#allocation2 + $0x1d4] ss:$8 sps:$4 sm:$0xff]   ;;  %v4570_v52 = vld [vmem:[#allocation2 + $0x1d0] ss:$8 sps:$4 sm:$0xff]  }
 0x58d   : > { %v1879_v37 = vpack.c.bf16 %v1870_v39, %v1869_v33  ;;  %4279 = vmatpush3.bf16.msra.mxu0 %v4554_v10 }
 0x58e   : > { %2445 = vmatprep.subr.bf16.mxu0 %v4557_v47 }
 0x58f   : > { %2084 = vmatmul.mubr.bf16.gmra.mrb[56].mxu1 %v1879_v37 }
 0x590   : > { %2093 = vmatprep.mubr.bf16.mxu1 %v4694_v0 }
 0x597   : > { %2094 = vmatmul.mubr.bf16.gmra.mrb[60].mxu1 %v1880_v42 }
 0x632   : > { %v2025_v53 = vpop.f32.mrb[32].mxu1 }
 0x633   : > { %v2026_v36 = vadd.f32 %v2025_v53, %v5275_v51  ;;  %v5278_v41 = vpop.f32.mrb[33].mxu1 }
 0x634   : > { %v2029_v15 = vpop.f32.mrb[34].mxu1 }
 0x635   : > { %v2030_v44 = vadd.f32 %v2029_v15, %v5275_v51  ;;  %v5281_v56 = vpop.f32.mrb[35].mxu1  ;;  %v2104_v59 = vmax.f32 %v2026_v36, 0.0 }
 0x637   : > { %v2105_v60 = vmax.f32 %v2030_v44, 0.0 }
 0x639   : > { %v2120_v7 = vpack.c.bf16 %v2105_v60, %v2104_v59 }
 0x63a   : > { %v2035_v63 = vpop.f32.mrb[36].mxu1 }
 0x63b   : > { %v2036_v61 = vadd.f32 %v2035_v63, %v5275_v51  ;;  %v5284_v62 = vpop.f32.mrb[37].mxu1  ;;  %4280 = vmatprep.mubr.bf16.mxu0 %v2120_v7 }
 0x63c   : > { %v2039_v18 = vpop.f32.mrb[38].mxu1 }
 0x63d   : > { %v2040_v1 = vadd.f32 %v2039_v18, %v5275_v51  ;;  %v5287_v45 = vpop.f32.mrb[39].mxu1  ;;  %v2106_v2 = vmax.f32 %v2036_v61, 0.0 }
 0x63f   : > { %v2107_v5 = vmax.f32 %v2040_v1, 0.0 }
 0x641   : > { %v2121_v14 = vpack.c.bf16 %v2107_v5, %v2106_v2 }
 0x642   : > { %v2045_v17 = vpop.f32.mrb[40].mxu1 }
 0x643   : > { %v2046_v3 = vadd.f32 %v2045_v17, %v5275_v51  ;;  %v5290_v19 = vpop.f32.mrb[41].mxu1  ;;  %4281 = vmatmul.mubr.bf16.vlgmr.msra.gmra.mrb[80].mxu0 %v2121_v14 }
 0x644   : > { %v2049_v26 = vpop.f32.mrb[42].mxu1  ;;  %2446 = vmatpush1.bf16.msra.mxu0 %v4555_v11 }
 0x645   : > { %v2050_v8 = vadd.f32 %v2049_v26, %v5275_v51  ;;  %v5293_v20 = vpop.f32.mrb[43].mxu1  ;;  %2447 = vmatprep.subr.bf16.mxu0 %v4560_v21  ;;  %v2108_v25 = vmax.f32 %v2046_v3, 0.0 }
 0x647   : > { %v2109_v43 = vmax.f32 %v2050_v8, 0.0 }
 0x648   : > { %2448 = vmatpush1.bf16.msra.mxu0 %v4558_v13 }
 0x649   : > { %v2122_v24 = vpack.c.bf16 %v2109_v43, %v2108_v25  ;;  %2449 = vmatprep.subr.bf16.mxu0 %v4563_v22 }
 0x64a   : > { %v2055_v49 = vpop.f32.mrb[44].mxu1 }
 0x64b   : > { %v2056_v16 = vadd.f32 %v2055_v49, %v5275_v51  ;;  %v5296_v34 = vpop.f32.mrb[45].mxu1  ;;  %4284 = vmatprep.mubr.bf16.mxu0 %v2122_v24  ;;  %v4573_v24 = vld [vmem:[#allocation2 + $0x1e0] ss:$8 sps:$4 sm:$0xff]   ;;  %v4576_v49 = vld [vmem:[#allocation2 + $0x1f0] ss:$8 sps:$4 sm:$0xff]  }
 0x64c   : > { %v2059_v38 = vpop.f32.mrb[46].mxu1  ;;  %2450 = vmatpush1.bf16.msra.mxu0 %v4561_v28  ;;  %v4575_v28 = vld [vmem:[#allocation2 + $0x1e4] ss:$8 sps:$4 sm:$0xff]  }
 0x64d   : > { %v2060_v12 = vadd.f32 %v2059_v38, %v5275_v51  ;;  %v5299_v40 = vpop.f32.mrb[47].mxu1  ;;  %2451 = vmatprep.subr.bf16.mxu0 %v4566_v23  ;;  %v2110_v29 = vmax.f32 %v2056_v16, 0.0  ;;  %v4578_v23 = vld [vmem:[#allocation2 + $0x1f4] ss:$8 sps:$4 sm:$0xff]   ;;  %v4580_v16 = vld [vmem:[%s5854_s9 + $0xc8] sm:$0xff]  }
 0x64e   : > { %v4581_v38 = vld [vmem:[%s5854_s9 + $0xd0] sm:$0xff]  }
 0x64f   : > { %v2111_v30 = vmax.f32 %v2060_v12, 0.0  ;;  %v4583_v12 = vld [vmem:[%s5854_s9 + $0xe0] sm:$0xff]  }
 0x650   : > { %2452 = vmatpush1.bf16.msra.mxu0 %v4564_v57  ;;  %v4582_v57 = vld [vmem:[%s5854_s9 + $0xd8] sm:$0xff]  }
 0x651   : > { %v2123_v31 = vpack.c.bf16 %v2111_v30, %v2110_v29  ;;  %2453 = vmatprep.subr.bf16.mxu0 %v4569_v27  ;;  %v4584_v27 = vld [vmem:[%s5854_s9 + $0xe8] sm:$0xff]   ;;  %v5347_v29 = vld [vmem:[%s5855_s10 + $0x2] ss:$0 sm:$0xff]  ;;  %v5351_v30 = vrot.slane %v5271_v50, %v4982_v6 }
 0x652   : > { %v2065_v58 = vpop.f32.mrb[48].mxu1 }
 0x653   : > { %v2066_v54 = vadd.f32 %v2065_v58, %v5275_v51  ;;  %v5302_v33 = vpop.f32.mrb[49].mxu1  ;;  %4285 = vmatmul.mubr.bf16.gmra.mrb[84].mxu0 %v2123_v31 }
 0x654   : > { %v2069_v35 = vpop.f32.mrb[50].mxu1  ;;  %2454 = vmatpush1.bf16.msra.mxu0 %v4567_v48 }
 0x655   : > { %v2070_v39 = vadd.f32 %v2069_v35, %v5275_v51  ;;  %v5305_v42 = vpop.f32.mrb[51].mxu1  ;;  %2455 = vmatprep.subr.bf16.mxu0 %v4572_v32  ;;  %v2112_v37 = vmax.f32 %v2066_v54, 0.0  ;;  %v2038_v35 = vadd.f32 %v5284_v62, %v5351_v30 }
 0x657   : > { %v2113_v55 = vmax.f32 %v2070_v39, 0.0 }
 0x658   : > { %2456 = vmatpush1.bf16.msra.mxu0 %v4570_v52 }
 0x659   : > { %v2124_v46 = vpack.c.bf16 %v2113_v55, %v2112_v37  ;;  %2457 = vmatprep.subr.bf16.mxu0 %v4575_v28  ;;  %v2028_v55 = vadd.f32 %v5278_v41, %v5351_v30 }
 0x65a   : > { %v2075_v9 = vpop.f32.mrb[52].mxu1 }
 0x65b   : > { %v2076_v10 = vadd.f32 %v2075_v9, %v5275_v51  ;;  %v5308_v47 = vpop.f32.mrb[53].mxu1  ;;  %4288 = vmatprep.mubr.bf16.mxu0 %v2124_v46  ;;  %v2042_v9 = vadd.f32 %v5287_v45, %v5351_v30 }
 0x65c   : > { %v2079_v53 = vpop.f32.mrb[54].mxu1  ;;  %2458 = vmatpush1.bf16.msra.mxu0 %v4573_v24 }
 0x65d   : > { %v2080_v36 = vadd.f32 %v2079_v53, %v5275_v51  ;;  %v5311_v15 = vpop.f32.mrb[55].mxu1  ;;  %v2114_v44 = vmax.f32 %v2076_v10, 0.0  ;;  %2459 = vmatprep.subr.bf16.mxu0 %v4578_v23 }
 0x65f   : > { %v2115_v59 = vmax.f32 %v2080_v36, 0.0  ;;  %v2032_v36 = vadd.f32 %v5281_v56, %v5351_v30 }
 0x660   : > { %2460 = vmatpush1.bf16.msra.mxu0 %v4576_v49 }
 0x661   : > { %v2125_v60 = vpack.c.bf16 %v2115_v59, %v2114_v44 }
 0x662   : > { %v2085_v7 = vpop.f32.mrb[56].mxu1 }
 0x663   : > { %v2086_v63 = vadd.f32 %v2085_v7, %v5275_v51  ;;  %v5314_v61 = vpop.f32.mrb[57].mxu1  ;;  %4289 = vmatmul.mubr.bf16.gmra.mrb[88].mxu0 %v2125_v60 }
 0x664   : > { %v2089_v18 = vpop.f32.mrb[58].mxu1 }
 0x665   : > { %v2090_v1 = vadd.f32 %v2089_v18, %v5275_v51  ;;  %v5317_v2 = vpop.f32.mrb[59].mxu1  ;;  %v2116_v5 = vmax.f32 %v2086_v63, 0.0 }
 0x667   : > { %v2117_v11 = vmax.f32 %v2090_v1, 0.0 }
 0x669   : > { %v2126_v14 = vpack.c.bf16 %v2117_v11, %v2116_v5  ;;  %v2058_v11 = vadd.f32 %v5296_v34, %v5351_v30  ;;  %v2052_v34 = vadd.f32 %v5293_v20, %v5351_v30 }
 0x66a   : > { %v2095_v21 = vpop.f32.mrb[60].mxu1 }
 0x66b   : > { %v2096_v17 = vadd.f32 %v2095_v21, %v5275_v51  ;;  %v5320_v3 = vpop.f32.mrb[61].mxu1  ;;  %4292 = vmatprep.mubr.bf16.mxu0 %v2126_v14 }
 0x66c   : > { %v2099_v26 = vpop.f32.mrb[62].mxu1 }
 0x66d   : > { %v2100_v13 = vadd.f32 %v2099_v26, %v5275_v51  ;;  %v5323_v8 = vpop.f32.mrb[63].mxu1  ;;  %v2118_v22 = vmax.f32 %v2096_v17, 0.0  ;;  %v4579_v51 = vld [vmem:[%s5854_s9 + $0xc0] sm:$0xff]   ;;  %v2048_v17 = vadd.f32 %v5290_v19, %v5351_v30 }
 0x66e   : > { %4296 = vmatprep.subr.bf16.mxu1 %v4579_v51 }
 0x66f   : > { %v2119_v25 = vmax.f32 %v2100_v13, 0.0  ;;  %4297 = vmatpush3.bf16.msra.mxu1 %v4579_v51 }
 0x670   : > { %4298 = vmatprep.subr.bf16.mxu1 %v4580_v16 }
 0x671   : > { %v2127_v43 = vpack.c.bf16 %v2119_v25, %v2118_v22  ;;  %v2062_v22 = vadd.f32 %v5299_v40, %v5351_v30 }
 0x673   : > { %4293 = vmatmul.mubr.bf16.gmra.mrb[92].mxu0 %v2127_v43  ;;  %4299 = vmatpush3.bf16.msra.mxu1 %v4580_v16 }
 0x674   : > { %2477 = vmatprep.mubr.bf16.mxu0 %v4694_v0  ;;  %4300 = vmatprep.subr.bf16.mxu1 %v4581_v38 }
 0x677   : > { %4301 = vmatpush3.bf16.msra.mxu1 %v4581_v38 }
 0x678   : > { %4302 = vmatprep.subr.bf16.mxu1 %v4582_v57 }
 0x67b   : > { %4303 = vmatpush3.bf16.msra.mxu1 %v4582_v57 }
 0x67c   : > { %4304 = vmatprep.subr.bf16.mxu1 %v4583_v12 }
 0x67f   : > { %4305 = vmatpush3.bf16.msra.mxu1 %v4583_v12 }
 0x680   : > { %4306 = vmatprep.subr.bf16.mxu1 %v4584_v27 }
 0x683   : > { %4307 = vmatpush3.bf16.msra.mxu1 %v4584_v27  ;;  %v2078_v27 = vadd.f32 %v5308_v47, %v5351_v30  ;;  %v2072_v47 = vadd.f32 %v5305_v42, %v5351_v30 }
 0x716   : > { %v4282_v48 = vpop.f32.mrb[80].mxu0 }
 0x717   : > { %v2241_v31 = vadd.f32 %v4282_v48, %v5347_v29  ;;  %v2232_v32 = vpop.f32.mrb[81].mxu0 }
 0x718   : > { %v2233_v58 = vadd.f32 %v5347_v29, %v2232_v32  ;;  %v4283_v54 = vpop.f32.mrb[82].mxu0  ;;  %v2068_v32 = vadd.f32 %v5302_v33, %v5351_v30 }
 0x719   : > { %v2297_v52 = vmax.f32 %v2241_v31, 0.0  ;;  %v2244_v39 = vadd.f32 %v4283_v54, %v5347_v29  ;;  %v2235_v37 = vpop.f32.mrb[83].mxu0 }
 0x71a   : > { %v2295_v46 = vmax.f32 %v2233_v58, 0.0  ;;  %v2236_v50 = vadd.f32 %v5347_v29, %v2235_v37 }
 0x71b   : > { %v2313_v10 = vadd.f32 %v2297_v52, %v2038_v35  ;;  %v2298_v53 = vmax.f32 %v2244_v39, 0.0  ;;  %v2082_v35 = vadd.f32 %v5311_v15, %v5351_v30 }
 0x71c   : > { %v2311_v44 = vadd.f32 %v2295_v46, %v2028_v55  ;;  %v2296_v62 = vmax.f32 %v2236_v50, 0.0 }
 0x71d   : > { %v2314_v59 = vadd.f32 %v2298_v53, %v2042_v9 }
 0x71e   : > { %v2312_v60 = vadd.f32 %v2296_v62, %v2032_v36  ;;  %v2098_v62 = vadd.f32 %v5320_v3, %v5351_v30  ;;  %v2092_v3 = vadd.f32 %v5317_v2, %v5351_v30  ;;  %v4586_v2 = vld [vmem:[%s5854_s9 + $0xf8] sm:$0xff]  }
 0x71f   : > { %v2328_v7 = vpack.c.bf16 %v2314_v59, %v2313_v10 }
 0x720   : > { %v2327_v63 = vpack.c.bf16 %v2312_v60, %v2311_v44 }
 0x722   : > { %2478 = vmatmul.mubr.bf16.vlgmr.msra.gmra.mrb[96].mxu0 %v2327_v63 }
 0x723   : > { %2487 = vmatprep.mubr.bf16.mxu0 %v4694_v0 }
 0x726   : > { %v4286_v41 = vpop.f32.mrb[84].mxu0 }
 0x727   : > { %v2257_v18 = vadd.f32 %v4286_v41, %v5347_v29  ;;  %v2248_v1 = vpop.f32.mrb[85].mxu0 }
 0x728   : > { %v2249_v45 = vadd.f32 %v5347_v29, %v2248_v1  ;;  %v4287_v5 = vpop.f32.mrb[86].mxu0 }
 0x729   : > { %v2301_v56 = vmax.f32 %v2257_v18, 0.0  ;;  %v2260_v14 = vadd.f32 %v4287_v5, %v5347_v29  ;;  %v2251_v21 = vpop.f32.mrb[87].mxu0  ;;  %v2102_v18 = vadd.f32 %v5323_v8, %v5351_v30  ;;  %v4585_v8 = vld [vmem:[%s5854_s9 + $0xf0] sm:$0xff]  }
 0x72a   : > { %v2299_v26 = vmax.f32 %v2249_v45, 0.0  ;;  %v2252_v13 = vadd.f32 %v5347_v29, %v2251_v21  ;;  %2488 = vmatmul.mubr.bf16.gmra.mrb[100].mxu0 %v2328_v7  ;;  %v2088_v7 = vadd.f32 %v5314_v61, %v5351_v30  ;;  %4308 = vmatprep.subr.bf16.mxu1 %v4585_v8  ;;  %v5417_v30 = vld [vmem:[%s5853_s8 + $0x3] ss:$8 sm:$0x3] }
 0x72b   : > { %v2317_v25 = vadd.f32 %v2301_v56, %v2058_v11  ;;  %v2302_v43 = vmax.f32 %v2260_v14, 0.0  ;;  %2497 = vmatprep.mubr.bf16.mxu0 %v4694_v0  ;;  %4309 = vmatpush3.bf16.msra.mxu1 %v4585_v8 }
 0x72c   : > { %v2315_v28 = vadd.f32 %v2299_v26, %v2048_v17  ;;  %v2300_v24 = vmax.f32 %v2252_v13, 0.0  ;;  %4310 = vmatprep.subr.bf16.mxu1 %v4586_v2  ;;  %v5421_v17 = vrot.slane %v5417_v30, %v4977_v4 }
 0x72d   : > { %v2318_v23 = vadd.f32 %v2302_v43, %v2062_v22 }
 0x72e   : > { %v2316_v49 = vadd.f32 %v2300_v24, %v2052_v34 }
 0x72f   : > { %v2330_v51 = vpack.c.bf16 %v2318_v23, %v2317_v25  ;;  %4311 = vmatpush3.bf16.msra.mxu1 %v4586_v2 }
 0x730   : > { %v2329_v19 = vpack.c.bf16 %v2316_v49, %v2315_v28 }
 0x732   : > { %2498 = vmatmul.mubr.bf16.gmra.mrb[104].mxu0 %v2329_v19 }
 0x733   : > { %2507 = vmatprep.mubr.bf16.mxu0 %v4694_v0 }
 0x736   : > { %v4290_v16 = vpop.f32.mrb[88].mxu0 }
 0x737   : > { %v2273_v38 = vadd.f32 %v4290_v16, %v5347_v29  ;;  %v2264_v40 = vpop.f32.mrb[89].mxu0 }
 0x738   : > { %v2265_v57 = vadd.f32 %v5347_v29, %v2264_v40  ;;  %v4291_v12 = vpop.f32.mrb[90].mxu0 }
 0x739   : > { %v2305_v20 = vmax.f32 %v2273_v38, 0.0  ;;  %v2276_v48 = vadd.f32 %v4291_v12, %v5347_v29  ;;  %v2267_v31 = vpop.f32.mrb[91].mxu0 }
 0x73a   : > { %v2303_v58 = vmax.f32 %v2265_v57, 0.0  ;;  %v2268_v54 = vadd.f32 %v5347_v29, %v2267_v31  ;;  %2508 = vmatmul.mubr.bf16.gmra.mrb[108].mxu0 %v2330_v51 }
 0x73b   : > { %v2321_v52 = vadd.f32 %v2305_v20, %v2078_v27  ;;  %v2306_v39 = vmax.f32 %v2276_v48, 0.0  ;;  %2517 = vmatprep.mubr.bf16.mxu0 %v4694_v0  ;;  %v4587_v27 = vld [vmem:[#allocation2 + $0x200] ss:$8 sps:$4 sm:$0xff]   ;;  %v4592_v48 = vld [vmem:[#allocation2 + $0x214] ss:$8 sps:$4 sm:$0xff]  }
 0x73c   : > { %v2319_v37 = vadd.f32 %v2303_v58, %v2068_v32  ;;  %v2304_v55 = vmax.f32 %v2268_v54, 0.0 }
 0x73d   : > { %v2322_v46 = vadd.f32 %v2306_v39, %v2082_v35  ;;  %v4590_v35 = vld [vmem:[#allocation2 + $0x210] ss:$8 sps:$4 sm:$0xff]  }
 0x73e   : > { %v2320_v50 = vadd.f32 %v2304_v55, %v2072_v47  ;;  %v4595_v47 = vld [vmem:[#allocation2 + $0x224] ss:$8 sps:$4 sm:$0xff]  }
 0x73f   : > { %v2332_v9 = vpack.c.bf16 %v2322_v46, %v2321_v52  ;;  %v4593_v46 = vld [vmem:[#allocation2 + $0x220] ss:$8 sps:$4 sm:$0xff]  }
 0x740   : > { %v2331_v33 = vpack.c.bf16 %v2320_v50, %v2319_v37 }
 0x742   : > { %2518 = vmatmul.mubr.bf16.gmra.mrb[112].mxu0 %v2331_v33 }
 0x743   : > { %2527 = vmatprep.mubr.bf16.mxu0 %v4694_v0 }
 0x746   : > { %v4294_v10 = vpop.f32.mrb[92].mxu0 }
 0x747   : > { %v2289_v53 = vadd.f32 %v4294_v10, %v5347_v29  ;;  %v2280_v15 = vpop.f32.mrb[93].mxu0 }
 0x748   : > { %v2281_v36 = vadd.f32 %v5347_v29, %v2280_v15  ;;  %v4295_v44 = vpop.f32.mrb[94].mxu0 }
 0x749   : > { %v2309_v42 = vmax.f32 %v2289_v53, 0.0  ;;  %v2292_v59 = vadd.f32 %v4295_v44, %v5347_v29  ;;  %v2283_v60 = vpop.f32.mrb[95].mxu0 }
 0x74a   : > { %v2307_v63 = vmax.f32 %v2281_v36, 0.0  ;;  %v2284_v41 = vadd.f32 %v5347_v29, %v2283_v60  ;;  %2528 = vmatmul.mubr.bf16.gmra.mrb[116].mxu0 %v2332_v9  ;;  %v4589_v29 = vld [vmem:[#allocation2 + $0x204] ss:$8 sps:$4 sm:$0xff]   ;;  %v4598_v9 = vld [vmem:[#allocation2 + $0x234] ss:$8 sps:$4 sm:$0xff]  }
 0x74b   : > { %v2325_v1 = vadd.f32 %v2309_v42, %v2098_v62  ;;  %v2310_v45 = vmax.f32 %v2292_v59, 0.0  ;;  %2537 = vmatprep.mubr.bf16.mxu0 %v4694_v0  ;;  %2899 = vmatprep.subr.bf16.mxu1 %v4589_v29  ;;  %v4596_v36 = vld [vmem:[#allocation2 + $0x230] ss:$8 sps:$4 sm:$0xff]   ;;  %v4601_v42 = vld [vmem:[#allocation2 + $0x244] ss:$8 sps:$4 sm:$0xff]  }
 0x74c   : > { %v2323_v5 = vadd.f32 %v2307_v63, %v2088_v7  ;;  %v2308_v11 = vmax.f32 %v2284_v41, 0.0  ;;  %v4599_v7 = vld [vmem:[#allocation2 + $0x240] ss:$8 sps:$4 sm:$0xff]   ;;  %v4604_v41 = vld [vmem:[#allocation2 + $0x254] ss:$8 sps:$4 sm:$0xff]  }
 0x74d   : > { %v2326_v56 = vadd.f32 %v2310_v45, %v2102_v18 }
 0x74e   : > { %v2324_v14 = vadd.f32 %v2308_v11, %v2092_v3 }
 0x74f   : > { %v2334_v21 = vpack.c.bf16 %v2326_v56, %v2325_v1 }
 0x750   : > { %v2333_v61 = vpack.c.bf16 %v2324_v14, %v2323_v5  ;;  %v4602_v5 = vld [vmem:[#allocation2 + $0x250] ss:$8 sps:$4 sm:$0xff]  }
 0x752   : > { %2538 = vmatmul.mubr.bf16.gmra.mrb[120].mxu0 %v2333_v61 }
 0x753   : > { %2547 = vmatprep.mubr.bf16.mxu0 %v4694_v0 }
 0x75a   : > { %2548 = vmatmul.mubr.bf16.gmra.mrb[124].mxu0 %v2334_v21 }
 0x7f5   : > { %v2479_v26 = vpop.f32.mrb[96].mxu0 }
 0x7f6   : > { %v2480_v13 = vadd.f32 %v2479_v26, %v5421_v17  ;;  %v5424_v22 = vpop.f32.mrb[97].mxu0 }
 0x7f7   : > { %v2483_v25 = vpop.f32.mrb[98].mxu0 }
 0x7f8   : > { %v2484_v43 = vadd.f32 %v2483_v25, %v5421_v17  ;;  %v5427_v34 = vpop.f32.mrb[99].mxu0  ;;  %v2558_v28 = vmax.f32 %v2480_v13, 0.0 }
 0x7fa   : > { %v2559_v24 = vmax.f32 %v2484_v43, 0.0 }
 0x7fc   : > { %v2574_v23 = vpack.c.bf16 %v2559_v24, %v2558_v28 }
 0x7fd   : > { %v2489_v49 = vpop.f32.mrb[100].mxu0 }
 0x7fe   : > { %v2490_v51 = vadd.f32 %v2489_v49, %v5421_v17  ;;  %v5430_v19 = vpop.f32.mrb[101].mxu0  ;;  %4312 = vmatprep.mubr.bf16.mxu1 %v2574_v23 }
 0x7ff   : > { %v2493_v16 = vpop.f32.mrb[102].mxu0 }
 0x800   : > { %v2494_v38 = vadd.f32 %v2493_v16, %v5421_v17  ;;  %v5433_v40 = vpop.f32.mrb[103].mxu0  ;;  %v2560_v57 = vmax.f32 %v2490_v51, 0.0 }
 0x802   : > { %v2561_v12 = vmax.f32 %v2494_v38, 0.0 }
 0x804   : > { %v2575_v20 = vpack.c.bf16 %v2561_v12, %v2560_v57 }
 0x805   : > { %v2499_v31 = vpop.f32.mrb[104].mxu0 }
 0x806   : > { %v2500_v32 = vadd.f32 %v2499_v31, %v5421_v17  ;;  %v5436_v58 = vpop.f32.mrb[105].mxu0  ;;  %4313 = vmatmul.mubr.bf16.vlgmr.msra.gmra.mrb[64].mxu1 %v2575_v20 }
 0x807   : > { %v2503_v54 = vpop.f32.mrb[106].mxu0  ;;  %2900 = vmatpush1.bf16.msra.mxu1 %v4587_v27 }
 0x808   : > { %v2504_v52 = vadd.f32 %v2503_v54, %v5421_v17  ;;  %v5439_v39 = vpop.f32.mrb[107].mxu0  ;;  %2901 = vmatprep.subr.bf16.mxu1 %v4592_v48  ;;  %v2562_v37 = vmax.f32 %v2500_v32, 0.0 }
 0x80a   : > { %v2563_v55 = vmax.f32 %v2504_v52, 0.0 }
 0x80b   : > { %2902 = vmatpush1.bf16.msra.mxu1 %v4590_v35 }
 0x80c   : > { %v2576_v50 = vpack.c.bf16 %v2563_v55, %v2562_v37  ;;  %2903 = vmatprep.subr.bf16.mxu1 %v4595_v47 }
 0x80d   : > { %v2509_v33 = vpop.f32.mrb[108].mxu0 }
 0x80e   : > { %v2510_v10 = vadd.f32 %v2509_v33, %v5421_v17  ;;  %v5442_v53 = vpop.f32.mrb[109].mxu0  ;;  %4316 = vmatprep.mubr.bf16.mxu1 %v2576_v50  ;;  %v4605_v50 = vld [vmem:[#allocation2 + $0x260] ss:$8 sps:$4 sm:$0xff]   ;;  %v4608_v33 = vld [vmem:[#allocation2 + $0x270] ss:$8 sps:$4 sm:$0xff]  }
 0x80f   : > { %v2513_v15 = vpop.f32.mrb[110].mxu0  ;;  %2904 = vmatpush1.bf16.msra.mxu1 %v4593_v46  ;;  %v4607_v46 = vld [vmem:[#allocation2 + $0x264] ss:$8 sps:$4 sm:$0xff]  }
 0x810   : > { %v2514_v44 = vadd.f32 %v2513_v15, %v5421_v17  ;;  %v5445_v62 = vpop.f32.mrb[111].mxu0  ;;  %2905 = vmatprep.subr.bf16.mxu1 %v4598_v9  ;;  %v2564_v59 = vmax.f32 %v2510_v10, 0.0  ;;  %v4610_v9 = vld [vmem:[#allocation2 + $0x274] ss:$8 sps:$4 sm:$0xff]   ;;  %v4612_v10 = vld [vmem:[%s5854_s9 + $0x108] sm:$0xff]  }
 0x811   : > { %v4613_v15 = vld [vmem:[%s5854_s9 + $0x110] sm:$0xff]  }
 0x812   : > { %v2565_v60 = vmax.f32 %v2514_v44, 0.0  ;;  %v4615_v44 = vld [vmem:[%s5854_s9 + $0x120] sm:$0xff]  }
 0x813   : > { %2906 = vmatpush1.bf16.msra.mxu1 %v4596_v36  ;;  %v4614_v36 = vld [vmem:[%s5854_s9 + $0x118] sm:$0xff]  }
 0x814   : > { %v2577_v63 = vpack.c.bf16 %v2565_v60, %v2564_v59  ;;  %2907 = vmatprep.subr.bf16.mxu1 %v4601_v42  ;;  %v4616_v42 = vld [vmem:[%s5854_s9 + $0x128] sm:$0xff]   ;;  %v5493_v59 = vld [vmem:[%s5855_s10 + $0x3] ss:$0 sm:$0xff]  ;;  %v5497_v60 = vrot.slane %v5417_v30, %v4982_v6 }
 0x815   : > { %v2519_v18 = vpop.f32.mrb[112].mxu0 }
 0x816   : > { %v2520_v1 = vadd.f32 %v2519_v18, %v5421_v17  ;;  %v5448_v45 = vpop.f32.mrb[113].mxu0  ;;  %4317 = vmatmul.mubr.bf16.gmra.mrb[68].mxu1 %v2577_v63 }
 0x817   : > { %v2523_v3 = vpop.f32.mrb[114].mxu0  ;;  %2908 = vmatpush1.bf16.msra.mxu1 %v4599_v7 }
 0x818   : > { %v2524_v11 = vadd.f32 %v2523_v3, %v5421_v17  ;;  %v5451_v56 = vpop.f32.mrb[115].mxu0  ;;  %2909 = vmatprep.subr.bf16.mxu1 %v4604_v41  ;;  %v2566_v14 = vmax.f32 %v2520_v1, 0.0  ;;  %v2492_v3 = vadd.f32 %v5430_v19, %v5497_v60 }
 0x81a   : > { %v2567_v21 = vmax.f32 %v2524_v11, 0.0 }
 0x81b   : > { %2910 = vmatpush1.bf16.msra.mxu1 %v4602_v5 }
 0x81c   : > { %v2578_v61 = vpack.c.bf16 %v2567_v21, %v2566_v14  ;;  %2911 = vmatprep.subr.bf16.mxu1 %v4607_v46  ;;  %v2482_v21 = vadd.f32 %v5424_v22, %v5497_v60 }
 0x81d   : > { %v2529_v8 = vpop.f32.mrb[116].mxu0 }
 0x81e   : > { %v2530_v2 = vadd.f32 %v2529_v8, %v5421_v17  ;;  %v5454_v29 = vpop.f32.mrb[117].mxu0  ;;  %4320 = vmatprep.mubr.bf16.mxu1 %v2578_v61  ;;  %v2496_v8 = vadd.f32 %v5433_v40, %v5497_v60 }
 0x81f   : > { %v2533_v26 = vpop.f32.mrb[118].mxu0  ;;  %2912 = vmatpush1.bf16.msra.mxu1 %v4605_v50 }
 0x820   : > { %v2534_v13 = vadd.f32 %v2533_v26, %v5421_v17  ;;  %v5457_v25 = vpop.f32.mrb[119].mxu0  ;;  %v2568_v43 = vmax.f32 %v2530_v2, 0.0  ;;  %2913 = vmatprep.subr.bf16.mxu1 %v4610_v9 }
 0x822   : > { %v2569_v28 = vmax.f32 %v2534_v13, 0.0  ;;  %v2486_v13 = vadd.f32 %v5427_v34, %v5497_v60 }
 0x823   : > { %2914 = vmatpush1.bf16.msra.mxu1 %v4608_v33 }
 0x824   : > { %v2579_v24 = vpack.c.bf16 %v2569_v28, %v2568_v43 }
 0x825   : > { %v2539_v23 = vpop.f32.mrb[120].mxu0 }
 0x826   : > { %v2540_v49 = vadd.f32 %v2539_v23, %v5421_v17  ;;  %v5460_v51 = vpop.f32.mrb[121].mxu0  ;;  %4321 = vmatmul.mubr.bf16.gmra.mrb[72].mxu1 %v2579_v24 }
 0x827   : > { %v2543_v16 = vpop.f32.mrb[122].mxu0 }
 0x828   : > { %v2544_v38 = vadd.f32 %v2543_v16, %v5421_v17  ;;  %v5463_v57 = vpop.f32.mrb[123].mxu0  ;;  %v2570_v12 = vmax.f32 %v2540_v49, 0.0 }
 0x82a   : > { %v2571_v27 = vmax.f32 %v2544_v38, 0.0 }
 0x82c   : > { %v2580_v20 = vpack.c.bf16 %v2571_v27, %v2570_v12  ;;  %v2512_v27 = vadd.f32 %v5442_v53, %v5497_v60  ;;  %v2506_v53 = vadd.f32 %v5439_v39, %v5497_v60 }
 0x82d   : > { %v2549_v48 = vpop.f32.mrb[124].mxu0 }
 0x82e   : > { %v2550_v31 = vadd.f32 %v2549_v48, %v5421_v17  ;;  %v5466_v32 = vpop.f32.mrb[125].mxu0  ;;  %4324 = vmatprep.mubr.bf16.mxu1 %v2580_v20 }
 0x82f   : > { %v2553_v54 = vpop.f32.mrb[126].mxu0 }
 0x830   : > { %v2554_v35 = vadd.f32 %v2553_v54, %v5421_v17  ;;  %v5469_v52 = vpop.f32.mrb[127].mxu0  ;;  %v2572_v47 = vmax.f32 %v2550_v31, 0.0  ;;  %v4611_v17 = vld [vmem:[%s5854_s9 + $0x100] sm:$0xff]   ;;  %v2502_v31 = vadd.f32 %v5436_v58, %v5497_v60 }
 0x831   : > { %4328 = vmatprep.subr.bf16.mxu0 %v4611_v17 }
 0x832   : > { %v2573_v37 = vmax.f32 %v2554_v35, 0.0  ;;  %4329 = vmatpush3.bf16.msra.mxu0 %v4611_v17 }
 0x833   : > { %4330 = vmatprep.subr.bf16.mxu0 %v4612_v10 }
 0x834   : > { %v2581_v55 = vpack.c.bf16 %v2573_v37, %v2572_v47  ;;  %v2516_v47 = vadd.f32 %v5445_v62, %v5497_v60 }
 0x836   : > { %4325 = vmatmul.mubr.bf16.gmra.mrb[76].mxu1 %v2581_v55  ;;  %4331 = vmatpush3.bf16.msra.mxu0 %v4612_v10 }
 0x837   : > { %2931 = vmatprep.mubr.bf16.mxu1 %v4694_v0  ;;  %4332 = vmatprep.subr.bf16.mxu0 %v4613_v15 }
 0x83a   : > { %4333 = vmatpush3.bf16.msra.mxu0 %v4613_v15 }
 0x83b   : > { %4334 = vmatprep.subr.bf16.mxu0 %v4614_v36 }
 0x83e   : > { %4335 = vmatpush3.bf16.msra.mxu0 %v4614_v36 }
 0x83f   : > { %4336 = vmatprep.subr.bf16.mxu0 %v4615_v44 }
 0x842   : > { %4337 = vmatpush3.bf16.msra.mxu0 %v4615_v44 }
 0x843   : > { %4338 = vmatprep.subr.bf16.mxu0 %v4616_v42 }
 0x846   : > { %4339 = vmatpush3.bf16.msra.mxu0 %v4616_v42  ;;  %v2532_v42 = vadd.f32 %v5454_v29, %v5497_v60  ;;  %v2526_v29 = vadd.f32 %v5451_v56, %v5497_v60 }
 0x8d9   : > { %v4314_v7 = vpop.f32.mrb[64].mxu1 }
 0x8da   : > { %v2695_v63 = vadd.f32 %v4314_v7, %v5493_v59  ;;  %v2686_v41 = vpop.f32.mrb[65].mxu1 }
 0x8db   : > { %v2687_v18 = vadd.f32 %v5493_v59, %v2686_v41  ;;  %v4315_v1 = vpop.f32.mrb[66].mxu1  ;;  %v2522_v41 = vadd.f32 %v5448_v45, %v5497_v60 }
 0x8dc   : > { %v2751_v5 = vmax.f32 %v2695_v63, 0.0  ;;  %v2698_v11 = vadd.f32 %v4315_v1, %v5493_v59  ;;  %v2689_v14 = vpop.f32.mrb[67].mxu1 }
 0x8dd   : > { %v2749_v61 = vmax.f32 %v2687_v18, 0.0  ;;  %v2690_v30 = vadd.f32 %v5493_v59, %v2689_v14 }
 0x8de   : > { %v2767_v2 = vadd.f32 %v2751_v5, %v2492_v3  ;;  %v2752_v26 = vmax.f32 %v2698_v11, 0.0  ;;  %v2536_v3 = vadd.f32 %v5457_v25, %v5497_v60 }
 0x8df   : > { %v2765_v43 = vadd.f32 %v2749_v61, %v2482_v21  ;;  %v2750_v19 = vmax.f32 %v2690_v30, 0.0 }
 0x8e0   : > { %v2768_v28 = vadd.f32 %v2752_v26, %v2496_v8 }
 0x8e1   : > { %v2766_v24 = vadd.f32 %v2750_v19, %v2486_v13  ;;  %v2552_v19 = vadd.f32 %v5466_v32, %v5497_v60  ;;  %v2546_v32 = vadd.f32 %v5463_v57, %v5497_v60  ;;  %v4618_v57 = vld [vmem:[%s5854_s9 + $0x138] sm:$0xff]  }
 0x8e2   : > { %v2782_v23 = vpack.c.bf16 %v2768_v28, %v2767_v2 }
 0x8e3   : > { %v2781_v49 = vpack.c.bf16 %v2766_v24, %v2765_v43 }
 0x8e5   : > { %2932 = vmatmul.mubr.bf16.vlgmr.msra.gmra.mrb[80].mxu1 %v2781_v49 }
 0x8e6   : > { %2941 = vmatprep.mubr.bf16.mxu1 %v4694_v0 }
 0x8e9   : > { %v4318_v22 = vpop.f32.mrb[68].mxu1 }
 0x8ea   : > { %v2711_v16 = vadd.f32 %v4318_v22, %v5493_v59  ;;  %v2702_v38 = vpop.f32.mrb[69].mxu1 }
 0x8eb   : > { %v2703_v40 = vadd.f32 %v5493_v59, %v2702_v38  ;;  %v4319_v12 = vpop.f32.mrb[70].mxu1 }
 0x8ec   : > { %v2755_v34 = vmax.f32 %v2711_v16, 0.0  ;;  %v2714_v20 = vadd.f32 %v4319_v12, %v5493_v59  ;;  %v2705_v48 = vpop.f32.mrb[71].mxu1  ;;  %v2556_v16 = vadd.f32 %v5469_v52, %v5497_v60  ;;  %v4617_v52 = vld [vmem:[%s5854_s9 + $0x130] sm:$0xff]  }
 0x8ed   : > { %v2753_v54 = vmax.f32 %v2703_v40, 0.0  ;;  %v2706_v35 = vadd.f32 %v5493_v59, %v2705_v48  ;;  %2942 = vmatmul.mubr.bf16.gmra.mrb[84].mxu1 %v2782_v23  ;;  %v2542_v23 = vadd.f32 %v5460_v51, %v5497_v60  ;;  %4340 = vmatprep.subr.bf16.mxu0 %v4617_v52  ;;  %v5563_v60 = vld [vmem:[%s5853_s8 + $0x4] ss:$8 sm:$0x3] }
 0x8ee   : > { %v2771_v37 = vadd.f32 %v2755_v34, %v2512_v27  ;;  %v2756_v55 = vmax.f32 %v2714_v20, 0.0  ;;  %2951 = vmatprep.mubr.bf16.mxu1 %v4694_v0  ;;  %4341 = vmatpush3.bf16.msra.mxu0 %v4617_v52 }
 0x8ef   : > { %v2769_v46 = vadd.f32 %v2753_v54, %v2502_v31  ;;  %v2754_v50 = vmax.f32 %v2706_v35, 0.0  ;;  %4342 = vmatprep.subr.bf16.mxu0 %v4618_v57  ;;  %v5567_v31 = vrot.slane %v5563_v60, %v4977_v4 }
 0x8f0   : > { %v2772_v9 = vadd.f32 %v2756_v55, %v2516_v47 }
 0x8f1   : > { %v2770_v33 = vadd.f32 %v2754_v50, %v2506_v53 }
 0x8f2   : > { %v2784_v17 = vpack.c.bf16 %v2772_v9, %v2771_v37  ;;  %4343 = vmatpush3.bf16.msra.mxu0 %v4618_v57 }
 0x8f3   : > { %v2783_v58 = vpack.c.bf16 %v2770_v33, %v2769_v46 }
 0x8f5   : > { %2952 = vmatmul.mubr.bf16.gmra.mrb[88].mxu1 %v2783_v58 }
 0x8f6   : > { %2961 = vmatprep.mubr.bf16.mxu1 %v4694_v0 }
 0x8f9   : > { %v4322_v10 = vpop.f32.mrb[72].mxu1 }
 0x8fa   : > { %v2727_v15 = vadd.f32 %v4322_v10, %v5493_v59  ;;  %v2718_v62 = vpop.f32.mrb[73].mxu1 }
 0x8fb   : > { %v2719_v36 = vadd.f32 %v5493_v59, %v2718_v62  ;;  %v4323_v44 = vpop.f32.mrb[74].mxu1 }
 0x8fc   : > { %v2759_v39 = vmax.f32 %v2727_v15, 0.0  ;;  %v2730_v7 = vadd.f32 %v4323_v44, %v5493_v59  ;;  %v2721_v63 = vpop.f32.mrb[75].mxu1 }
 0x8fd   : > { %v2757_v18 = vmax.f32 %v2719_v36, 0.0  ;;  %v2722_v1 = vadd.f32 %v5493_v59, %v2721_v63  ;;  %2962 = vmatmul.mubr.bf16.gmra.mrb[92].mxu1 %v2784_v17 }
 0x8fe   : > { %v2775_v5 = vadd.f32 %v2759_v39, %v2532_v42  ;;  %v2760_v11 = vmax.f32 %v2730_v7, 0.0  ;;  %2971 = vmatprep.mubr.bf16.mxu1 %v4694_v0  ;;  %v4619_v42 = vld [vmem:[#allocation2 + $0x280] ss:$8 sps:$4 sm:$0xff]   ;;  %v4624_v7 = vld [vmem:[#allocation2 + $0x294] ss:$8 sps:$4 sm:$0xff]  }
 0x8ff   : > { %v2773_v14 = vadd.f32 %v2757_v18, %v2522_v41  ;;  %v2758_v21 = vmax.f32 %v2722_v1, 0.0 }
 0x900   : > { %v2776_v61 = vadd.f32 %v2760_v11, %v2536_v3  ;;  %v4622_v3 = vld [vmem:[#allocation2 + $0x290] ss:$8 sps:$4 sm:$0xff]  }
 0x901   : > { %v2774_v30 = vadd.f32 %v2758_v21, %v2526_v29  ;;  %v4627_v29 = vld [vmem:[#allocation2 + $0x2a4] ss:$8 sps:$4 sm:$0xff]  }
 0x902   : > { %v2786_v8 = vpack.c.bf16 %v2776_v61, %v2775_v5  ;;  %v4625_v61 = vld [vmem:[#allocation2 + $0x2a0] ss:$8 sps:$4 sm:$0xff]  }
 0x903   : > { %v2785_v45 = vpack.c.bf16 %v2774_v30, %v2773_v14 }
 0x905   : > { %2972 = vmatmul.mubr.bf16.gmra.mrb[96].mxu1 %v2785_v45 }
 0x906   : > { %2981 = vmatprep.mubr.bf16.mxu1 %v4694_v0 }
 0x909   : > { %v4326_v2 = vpop.f32.mrb[76].mxu1 }
 0x90a   : > { %v2743_v26 = vadd.f32 %v4326_v2, %v5493_v59  ;;  %v2734_v25 = vpop.f32.mrb[77].mxu1 }
 0x90b   : > { %v2735_v13 = vadd.f32 %v5493_v59, %v2734_v25  ;;  %v4327_v43 = vpop.f32.mrb[78].mxu1 }
 0x90c   : > { %v2763_v56 = vmax.f32 %v2743_v26, 0.0  ;;  %v2746_v28 = vadd.f32 %v4327_v43, %v5493_v59  ;;  %v2737_v24 = vpop.f32.mrb[79].mxu1 }
 0x90d   : > { %v2761_v49 = vmax.f32 %v2735_v13, 0.0  ;;  %v2738_v22 = vadd.f32 %v5493_v59, %v2737_v24  ;;  %2982 = vmatmul.mubr.bf16.gmra.mrb[100].mxu1 %v2786_v8  ;;  %v4621_v59 = vld [vmem:[#allocation2 + $0x284] ss:$8 sps:$4 sm:$0xff]   ;;  %v4630_v8 = vld [vmem:[#allocation2 + $0x2b4] ss:$8 sps:$4 sm:$0xff]  }
 0x90e   : > { %v2779_v38 = vadd.f32 %v2763_v56, %v2552_v19  ;;  %v2764_v40 = vmax.f32 %v2746_v28, 0.0  ;;  %2991 = vmatprep.mubr.bf16.mxu1 %v4694_v0  ;;  %3353 = vmatprep.subr.bf16.mxu0 %v4621_v59  ;;  %v4628_v13 = vld [vmem:[#allocation2 + $0x2b0] ss:$8 sps:$4 sm:$0xff]   ;;  %v4633_v56 = vld [vmem:[#allocation2 + $0x2c4] ss:$8 sps:$4 sm:$0xff]  }
 0x90f   : > { %v2777_v12 = vadd.f32 %v2761_v49, %v2542_v23  ;;  %v2762_v27 = vmax.f32 %v2738_v22, 0.0  ;;  %v4631_v23 = vld [vmem:[#allocation2 + $0x2c0] ss:$8 sps:$4 sm:$0xff]   ;;  %v4636_v22 = vld [vmem:[#allocation2 + $0x2d4] ss:$8 sps:$4 sm:$0xff]  }
 0x910   : > { %v2780_v34 = vadd.f32 %v2764_v40, %v2556_v16 }
 0x911   : > { %v2778_v20 = vadd.f32 %v2762_v27, %v2546_v32 }
 0x912   : > { %v2788_v48 = vpack.c.bf16 %v2780_v34, %v2779_v38 }
 0x913   : > { %v2787_v51 = vpack.c.bf16 %v2778_v20, %v2777_v12  ;;  %v4634_v12 = vld [vmem:[#allocation2 + $0x2d0] ss:$8 sps:$4 sm:$0xff]  }
 0x915   : > { %2992 = vmatmul.mubr.bf16.gmra.mrb[104].mxu1 %v2787_v51 }
 0x916   : > { %3001 = vmatprep.mubr.bf16.mxu1 %v4694_v0 }
 0x91d   : > { %3002 = vmatmul.mubr.bf16.gmra.mrb[108].mxu1 %v2788_v48 }
 0x9b8   : > { %v2933_v54 = vpop.f32.mrb[80].mxu1 }
 0x9b9   : > { %v2934_v35 = vadd.f32 %v2933_v54, %v5567_v31  ;;  %v5570_v47 = vpop.f32.mrb[81].mxu1 }
 0x9ba   : > { %v2937_v37 = vpop.f32.mrb[82].mxu1 }
 0x9bb   : > { %v2938_v55 = vadd.f32 %v2937_v37, %v5567_v31  ;;  %v5573_v53 = vpop.f32.mrb[83].mxu1  ;;  %v3012_v46 = vmax.f32 %v2934_v35, 0.0 }
 0x9bd   : > { %v3013_v50 = vmax.f32 %v2938_v55, 0.0 }
 0x9bf   : > { %v3028_v9 = vpack.c.bf16 %v3013_v50, %v3012_v46 }
 0x9c0   : > { %v2943_v33 = vpop.f32.mrb[84].mxu1 }
 0x9c1   : > { %v2944_v17 = vadd.f32 %v2943_v33, %v5567_v31  ;;  %v5576_v58 = vpop.f32.mrb[85].mxu1  ;;  %4344 = vmatprep.mubr.bf16.mxu0 %v3028_v9 }
 0x9c2   : > { %v2947_v10 = vpop.f32.mrb[86].mxu1 }
 0x9c3   : > { %v2948_v15 = vadd.f32 %v2947_v10, %v5567_v31  ;;  %v5579_v62 = vpop.f32.mrb[87].mxu1  ;;  %v3014_v36 = vmax.f32 %v2944_v17, 0.0 }
 0x9c5   : > { %v3015_v44 = vmax.f32 %v2948_v15, 0.0 }
 0x9c7   : > { %v3029_v39 = vpack.c.bf16 %v3015_v44, %v3014_v36 }
 0x9c8   : > { %v2953_v63 = vpop.f32.mrb[88].mxu1 }
 0x9c9   : > { %v2954_v41 = vadd.f32 %v2953_v63, %v5567_v31  ;;  %v5582_v18 = vpop.f32.mrb[89].mxu1  ;;  %4345 = vmatmul.mubr.bf16.vlgmr.msra.gmra.mrb[128].mxu0 %v3029_v39 }
 0x9ca   : > { %v2957_v1 = vpop.f32.mrb[90].mxu1  ;;  %3354 = vmatpush1.bf16.msra.mxu0 %v4619_v42 }
 0x9cb   : > { %v2958_v5 = vadd.f32 %v2957_v1, %v5567_v31  ;;  %v5585_v11 = vpop.f32.mrb[91].mxu1  ;;  %3355 = vmatprep.subr.bf16.mxu0 %v4624_v7  ;;  %v3016_v14 = vmax.f32 %v2954_v41, 0.0 }
 0x9cd   : > { %v3017_v21 = vmax.f32 %v2958_v5, 0.0 }
 0x9ce   : > { %3356 = vmatpush1.bf16.msra.mxu0 %v4622_v3 }
 0x9cf   : > { %v3030_v30 = vpack.c.bf16 %v3017_v21, %v3016_v14  ;;  %3357 = vmatprep.subr.bf16.mxu0 %v4627_v29 }
 0x9d0   : > { %v2963_v45 = vpop.f32.mrb[92].mxu1 }
 0x9d1   : > { %v2964_v2 = vadd.f32 %v2963_v45, %v5567_v31  ;;  %v5588_v26 = vpop.f32.mrb[93].mxu1  ;;  %4348 = vmatprep.mubr.bf16.mxu0 %v3030_v30  ;;  %v4637_v30 = vld [vmem:[#allocation2 + $0x2e0] ss:$8 sps:$4 sm:$0xff]   ;;  %v4640_v45 = vld [vmem:[#allocation2 + $0x2f0] ss:$8 sps:$4 sm:$0xff]  }
 0x9d2   : > { %v2967_v25 = vpop.f32.mrb[94].mxu1  ;;  %3358 = vmatpush1.bf16.msra.mxu0 %v4625_v61  ;;  %v4639_v61 = vld [vmem:[#allocation2 + $0x2e4] ss:$8 sps:$4 sm:$0xff]  }
 0x9d3   : > { %v2968_v43 = vadd.f32 %v2967_v25, %v5567_v31  ;;  %v5591_v19 = vpop.f32.mrb[95].mxu1  ;;  %3359 = vmatprep.subr.bf16.mxu0 %v4630_v8  ;;  %v3018_v28 = vmax.f32 %v2964_v2, 0.0  ;;  %v4642_v8 = vld [vmem:[#allocation2 + $0x2f4] ss:$8 sps:$4 sm:$0xff]   ;;  %v4644_v2 = vld [vmem:[%s5854_s9 + $0x148] sm:$0xff]  }
 0x9d4   : > { %v4645_v25 = vld [vmem:[%s5854_s9 + $0x150] sm:$0xff]  }
 0x9d5   : > { %v3019_v24 = vmax.f32 %v2968_v43, 0.0  ;;  %v5633_v43 = vld [vmem:[%s5855_s10 + $0x4] ss:$0 sm:$0xff] }
 0x9d6   : > { %3360 = vmatpush1.bf16.msra.mxu0 %v4628_v13  ;;  %v4646_v13 = vld [vmem:[%s5854_s9 + $0x158] sm:$0xff]  }
 0x9d7   : > { %v3031_v49 = vpack.c.bf16 %v3019_v24, %v3018_v28  ;;  %3361 = vmatprep.subr.bf16.mxu0 %v4633_v56  ;;  %v5637_v56 = vrot.slane %v5563_v60, %v4982_v6 }
 0x9d8   : > { %v2973_v16 = vpop.f32.mrb[96].mxu1 }
 0x9d9   : > { %v2974_v38 = vadd.f32 %v2973_v16, %v5567_v31  ;;  %v5594_v40 = vpop.f32.mrb[97].mxu1  ;;  %4349 = vmatmul.mubr.bf16.gmra.mrb[132].mxu0 %v3031_v49  ;;  %v2946_v16 = vadd.f32 %v5576_v58, %v5637_v56 }
 0x9da   : > { %v2977_v32 = vpop.f32.mrb[98].mxu1  ;;  %3362 = vmatpush1.bf16.msra.mxu0 %v4631_v23 }
 0x9db   : > { %v2978_v27 = vadd.f32 %v2977_v32, %v5567_v31  ;;  %v5597_v34 = vpop.f32.mrb[99].mxu1  ;;  %3363 = vmatprep.subr.bf16.mxu0 %v4636_v22  ;;  %v3020_v20 = vmax.f32 %v2974_v38, 0.0 }
 0x9dd   : > { %v3021_v48 = vmax.f32 %v2978_v27, 0.0  ;;  %v2936_v27 = vadd.f32 %v5570_v47, %v5637_v56 }
 0x9de   : > { %3364 = vmatpush1.bf16.msra.mxu0 %v4634_v12 }
 0x9df   : > { %v3032_v51 = vpack.c.bf16 %v3021_v48, %v3020_v20  ;;  %3365 = vmatprep.subr.bf16.mxu0 %v4639_v61  ;;  %v2950_v48 = vadd.f32 %v5579_v62, %v5637_v56 }
 0x9e0   : > { %v2983_v52 = vpop.f32.mrb[100].mxu1 }
 0x9e1   : > { %v2984_v57 = vadd.f32 %v2983_v52, %v5567_v31  ;;  %v5600_v59 = vpop.f32.mrb[101].mxu1  ;;  %4352 = vmatprep.mubr.bf16.mxu0 %v3032_v51 }
 0x9e2   : > { %v2987_v54 = vpop.f32.mrb[102].mxu1  ;;  %3366 = vmatpush1.bf16.msra.mxu0 %v4637_v30 }
 0x9e3   : > { %v2988_v35 = vadd.f32 %v2987_v54, %v5567_v31  ;;  %v5603_v37 = vpop.f32.mrb[103].mxu1  ;;  %v3022_v55 = vmax.f32 %v2984_v57, 0.0  ;;  %3367 = vmatprep.subr.bf16.mxu0 %v4642_v8  ;;  %v2940_v57 = vadd.f32 %v5573_v53, %v5637_v56 }
 0x9e5   : > { %v3023_v46 = vmax.f32 %v2988_v35, 0.0 }
 0x9e6   : > { %3368 = vmatpush1.bf16.msra.mxu0 %v4640_v45 }
 0x9e7   : > { %v3033_v50 = vpack.c.bf16 %v3023_v46, %v3022_v55 }
 0x9e8   : > { %v2993_v9 = vpop.f32.mrb[104].mxu1 }
 0x9e9   : > { %v2994_v33 = vadd.f32 %v2993_v9, %v5567_v31  ;;  %v5606_v17 = vpop.f32.mrb[105].mxu1  ;;  %4353 = vmatmul.mubr.bf16.gmra.mrb[136].mxu0 %v3033_v50 }
 0x9ea   : > { %v2997_v10 = vpop.f32.mrb[106].mxu1 }
 0x9eb   : > { %v2998_v15 = vadd.f32 %v2997_v10, %v5567_v31  ;;  %v5609_v36 = vpop.f32.mrb[107].mxu1  ;;  %v3024_v44 = vmax.f32 %v2994_v33, 0.0 }
 0x9ed   : > { %v3025_v42 = vmax.f32 %v2998_v15, 0.0  ;;  %v2966_v15 = vadd.f32 %v5588_v26, %v5637_v56  ;;  %v2960_v26 = vadd.f32 %v5585_v11, %v5637_v56 }
 0x9ef   : > { %v3034_v39 = vpack.c.bf16 %v3025_v42, %v3024_v44 }
 0x9f0   : > { %v3003_v7 = vpop.f32.mrb[108].mxu1 }
 0x9f1   : > { %v3004_v63 = vadd.f32 %v3003_v7, %v5567_v31  ;;  %v5612_v41 = vpop.f32.mrb[109].mxu1  ;;  %4356 = vmatprep.mubr.bf16.mxu0 %v3034_v39  ;;  %v2956_v39 = vadd.f32 %v5582_v18, %v5637_v56 }
 0x9f2   : > { %v3007_v1 = vpop.f32.mrb[110].mxu1 }
 0x9f3   : > { %v3008_v3 = vadd.f32 %v3007_v1, %v5567_v31  ;;  %v5615_v5 = vpop.f32.mrb[111].mxu1  ;;  %v3026_v29 = vmax.f32 %v3004_v63, 0.0  ;;  %v4643_v31 = vld [vmem:[%s5854_s9 + $0x140] sm:$0xff]   ;;  %v2970_v1 = vadd.f32 %v5591_v19, %v5637_v56 }
 0x9f4   : > { %4360 = vmatprep.subr.bf16.mxu1 %v4643_v31 }
 0x9f5   : > { %v3027_v14 = vmax.f32 %v3008_v3, 0.0  ;;  %4361 = vmatpush3.bf16.msra.mxu1 %v4643_v31 }
 0x9f6   : > { %4362 = vmatprep.subr.bf16.mxu1 %v4644_v2 }
 0x9f7   : > { %v3035_v21 = vpack.c.bf16 %v3027_v14, %v3026_v29 }
 0x9f9   : > { %4357 = vmatmul.mubr.bf16.gmra.mrb[140].mxu0 %v3035_v21  ;;  %4363 = vmatpush3.bf16.msra.mxu1 %v4644_v2 }
 0x9fa   : > { %3385 = vmatprep.mubr.bf16.mxu0 %v4694_v0  ;;  %4364 = vmatprep.subr.bf16.mxu1 %v4645_v25 }
 0x9fd   : > { %4365 = vmatpush3.bf16.msra.mxu1 %v4645_v25 }
 0x9fe   : > { %4366 = vmatprep.subr.bf16.mxu1 %v4646_v13 }
 0xa01   : > { %4367 = vmatpush3.bf16.msra.mxu1 %v4646_v13  ;;  %v2986_v13 = vadd.f32 %v5600_v59, %v5637_v56  ;;  %v2980_v59 = vadd.f32 %v5597_v34, %v5637_v56 }
 0xa9c   : > { %v4346_v28 = vpop.f32.mrb[128].mxu0 }
 0xa9d   : > { %v3149_v24 = vadd.f32 %v4346_v28, %v5633_v43  ;;  %v3140_v23 = vpop.f32.mrb[129].mxu0 }
 0xa9e   : > { %v3141_v49 = vadd.f32 %v5633_v43, %v3140_v23  ;;  %v4347_v22 = vpop.f32.mrb[130].mxu0  ;;  %v2976_v23 = vadd.f32 %v5594_v40, %v5637_v56 }
 0xa9f   : > { %v3205_v38 = vmax.f32 %v3149_v24, 0.0  ;;  %v3152_v32 = vadd.f32 %v4347_v22, %v5633_v43  ;;  %v3143_v12 = vpop.f32.mrb[131].mxu0 }
 0xaa0   : > { %v3203_v20 = vmax.f32 %v3141_v49, 0.0  ;;  %v3144_v60 = vadd.f32 %v5633_v43, %v3143_v12 }
 0xaa1   : > { %v3221_v51 = vadd.f32 %v3205_v38, %v2946_v16  ;;  %v3206_v52 = vmax.f32 %v3152_v32, 0.0  ;;  %v2990_v16 = vadd.f32 %v5603_v37, %v5637_v56 }
 0xaa2   : > { %v3219_v54 = vadd.f32 %v3203_v20, %v2936_v27  ;;  %v3204_v58 = vmax.f32 %v3144_v60, 0.0 }
 0xaa3   : > { %v3222_v35 = vadd.f32 %v3206_v52, %v2950_v48 }
 0xaa4   : > { %v3220_v55 = vadd.f32 %v3204_v58, %v2940_v57  ;;  %v3006_v58 = vadd.f32 %v5612_v41, %v5637_v56  ;;  %v3000_v41 = vadd.f32 %v5609_v36, %v5637_v56  ;;  %v4648_v36 = vld [vmem:[%s5854_s9 + $0x168] sm:$0xff]  }
 0xaa5   : > { %v3236_v46 = vpack.c.bf16 %v3222_v35, %v3221_v51 }
 0xaa6   : > { %v3235_v50 = vpack.c.bf16 %v3220_v55, %v3219_v54 }
 0xaa8   : > { %3386 = vmatmul.mubr.bf16.vlgmr.msra.gmra.mrb[144].mxu0 %v3235_v50 }
 0xaa9   : > { %3395 = vmatprep.mubr.bf16.mxu0 %v4694_v0 }
 0xaac   : > { %v4350_v47 = vpop.f32.mrb[132].mxu0 }
 0xaad   : > { %v3165_v9 = vadd.f32 %v4350_v47, %v5633_v43  ;;  %v3156_v33 = vpop.f32.mrb[133].mxu0 }
 0xaae   : > { %v3157_v62 = vadd.f32 %v5633_v43, %v3156_v33  ;;  %v4351_v10 = vpop.f32.mrb[134].mxu0 }
 0xaaf   : > { %v3209_v53 = vmax.f32 %v3165_v9, 0.0  ;;  %v3168_v44 = vadd.f32 %v4351_v10, %v5633_v43  ;;  %v3159_v42 = vpop.f32.mrb[135].mxu0  ;;  %v3010_v9 = vadd.f32 %v5615_v5, %v5637_v56  ;;  %v4647_v5 = vld [vmem:[%s5854_s9 + $0x160] sm:$0xff]  }
 0xab0   : > { %v3207_v7 = vmax.f32 %v3157_v62, 0.0  ;;  %v3160_v63 = vadd.f32 %v5633_v43, %v3159_v42  ;;  %3396 = vmatmul.mubr.bf16.gmra.mrb[148].mxu0 %v3236_v46  ;;  %v2996_v46 = vadd.f32 %v5606_v17, %v5637_v56  ;;  %4368 = vmatprep.subr.bf16.mxu1 %v4647_v5  ;;  %v5709_v56 = vld [vmem:[%s5853_s8 + $0x5] ss:$8 sm:$0x3] }
 0xab1   : > { %v3225_v3 = vadd.f32 %v3209_v53, %v2966_v15  ;;  %v3210_v29 = vmax.f32 %v3168_v44, 0.0  ;;  %3405 = vmatprep.mubr.bf16.mxu0 %v4694_v0  ;;  %4369 = vmatpush3.bf16.msra.mxu1 %v4647_v5 }
 0xab2   : > { %v3223_v14 = vadd.f32 %v3207_v7, %v2956_v39  ;;  %v3208_v21 = vmax.f32 %v3160_v63, 0.0  ;;  %4370 = vmatprep.subr.bf16.mxu1 %v4648_v36  ;;  %v5713_v39 = vrot.slane %v5709_v56, %v4977_v4 }
 0xab3   : > { %v3226_v61 = vadd.f32 %v3210_v29, %v2970_v1 }
 0xab4   : > { %v3224_v30 = vadd.f32 %v3208_v21, %v2960_v26 }
 0xab5   : > { %v3238_v8 = vpack.c.bf16 %v3226_v61, %v3225_v3  ;;  %4371 = vmatpush3.bf16.msra.mxu1 %v4648_v36 }
 0xab6   : > { %v3237_v18 = vpack.c.bf16 %v3224_v30, %v3223_v14 }
 0xab8   : > { %3406 = vmatmul.mubr.bf16.gmra.mrb[152].mxu0 %v3237_v18 }
 0xab9   : > { %3415 = vmatprep.mubr.bf16.mxu0 %v4694_v0 }
 0xabc   : > { %v4354_v45 = vpop.f32.mrb[136].mxu0 }
 0xabd   : > { %v3181_v31 = vadd.f32 %v4354_v45, %v5633_v43  ;;  %v3172_v19 = vpop.f32.mrb[137].mxu0 }
 0xabe   : > { %v3173_v2 = vadd.f32 %v5633_v43, %v3172_v19  ;;  %v4355_v25 = vpop.f32.mrb[138].mxu0 }
 0xabf   : > { %v3213_v11 = vmax.f32 %v3181_v31, 0.0  ;;  %v3184_v28 = vadd.f32 %v4355_v25, %v5633_v43  ;;  %v3175_v24 = vpop.f32.mrb[139].mxu0 }
 0xac0   : > { %v3211_v49 = vmax.f32 %v3173_v2, 0.0  ;;  %v3176_v22 = vadd.f32 %v5633_v43, %v3175_v24  ;;  %3416 = vmatmul.mubr.bf16.gmra.mrb[156].mxu0 %v3238_v8 }
 0xac1   : > { %v3229_v38 = vadd.f32 %v3213_v11, %v2986_v13  ;;  %v3214_v32 = vmax.f32 %v3184_v28, 0.0  ;;  %3425 = vmatprep.mubr.bf16.mxu0 %v4694_v0 }
 0xac2   : > { %v3227_v12 = vadd.f32 %v3211_v49, %v2976_v23  ;;  %v3212_v27 = vmax.f32 %v3176_v22, 0.0 }
 0xac3   : > { %v3230_v20 = vadd.f32 %v3214_v32, %v2990_v16 }
 0xac4   : > { %v3228_v60 = vadd.f32 %v3212_v27, %v2980_v59 }
 0xac5   : > { %v3240_v48 = vpack.c.bf16 %v3230_v20, %v3229_v38 }
 0xac6   : > { %v3239_v40 = vpack.c.bf16 %v3228_v60, %v3227_v12 }
 0xac8   : > { %3426 = vmatmul.mubr.bf16.gmra.mrb[160].mxu0 %v3239_v40 }
 0xac9   : > { %3435 = vmatprep.mubr.bf16.mxu0 %v4694_v0 }
 0xacc   : > { %v4358_v51 = vpop.f32.mrb[140].mxu0 }
 0xacd   : > { %v3197_v52 = vadd.f32 %v4358_v51, %v5633_v43  ;;  %v3188_v37 = vpop.f32.mrb[141].mxu0 }
 0xace   : > { %v3189_v57 = vadd.f32 %v5633_v43, %v3188_v37  ;;  %v4359_v54 = vpop.f32.mrb[142].mxu0 }
 0xacf   : > { %v3217_v34 = vmax.f32 %v3197_v52, 0.0  ;;  %v3200_v35 = vadd.f32 %v4359_v54, %v5633_v43  ;;  %v3191_v55 = vpop.f32.mrb[143].mxu0 }
 0xad0   : > { %v3215_v50 = vmax.f32 %v3189_v57, 0.0  ;;  %v3192_v47 = vadd.f32 %v5633_v43, %v3191_v55  ;;  %3436 = vmatmul.mubr.bf16.gmra.mrb[164].mxu0 %v3240_v48  ;;  %v4649_v43 = vld [vmem:[%s5854_s9 + $0x170] sm:$0xff]  }
 0xad1   : > { %v3233_v33 = vadd.f32 %v3217_v34, %v3006_v58  ;;  %v3218_v62 = vmax.f32 %v3200_v35, 0.0  ;;  %3445 = vmatprep.mubr.bf16.mxu0 %v4694_v0  ;;  %4372 = vmatprep.subr.bf16.mxu1 %v4649_v43 }
 0xad2   : > { %v3231_v10 = vadd.f32 %v3215_v50, %v2996_v46  ;;  %v3216_v15 = vmax.f32 %v3192_v47, 0.0  ;;  %4373 = vmatpush3.bf16.msra.mxu1 %v4649_v43 }
 0xad3   : > { %v3234_v53 = vadd.f32 %v3218_v62, %v3010_v9 }
 0xad4   : > { %v3232_v44 = vadd.f32 %v3216_v15, %v3000_v41 }
 0xad5   : > { %v3242_v42 = vpack.c.bf16 %v3234_v53, %v3233_v33 }
 0xad6   : > { %v3241_v17 = vpack.c.bf16 %v3232_v44, %v3231_v10 }
 0xad8   : > { %3446 = vmatmul.mubr.bf16.gmra.mrb[168].mxu0 %v3241_v17 }
 0xad9   : > { %3455 = vmatprep.mubr.bf16.mxu0 %v4694_v0  ;;  %v4650_v0 = vld [vmem:[%s5854_s9 + $0x178] sm:$0xff]  }
 0xada   : > { %4374 = vmatprep.subr.bf16.mxu1 %v4650_v0 }
 0xadb   : > { %4375 = vmatpush3.bf16.msra.mxu1 %v4650_v0 }
 0xae0   : > { %3456 = vmatmul.mubr.bf16.gmra.mrb[172].mxu0 %v3242_v42 }
 0xb7b   : > { %v3387_v7 = vpop.f32.mrb[144].mxu0 }
 0xb7c   : > { %v3388_v63 = vadd.f32 %v3387_v7, %v5713_v39  ;;  %v5716_v1 = vpop.f32.mrb[145].mxu0 }
 0xb7d   : > { %v3391_v3 = vpop.f32.mrb[146].mxu0 }
 0xb7e   : > { %v3392_v29 = vadd.f32 %v3391_v3, %v5713_v39  ;;  %v5719_v26 = vpop.f32.mrb[147].mxu0  ;;  %v3466_v14 = vmax.f32 %v3388_v63, 0.0 }
 0xb80   : > { %v3467_v21 = vmax.f32 %v3392_v29, 0.0 }
 0xb82   : > { %v3482_v61 = vpack.c.bf16 %v3467_v21, %v3466_v14 }
 0xb83   : > { %v3397_v30 = vpop.f32.mrb[148].mxu0 }
 0xb84   : > { %v3398_v8 = vadd.f32 %v3397_v30, %v5713_v39  ;;  %v5722_v18 = vpop.f32.mrb[149].mxu0  ;;  %4376 = vmatprep.mubr.bf16.mxu1 %v3482_v61 }
 0xb85   : > { %v3401_v4 = vpop.f32.mrb[150].mxu0 }
 0xb86   : > { %v3402_v45 = vadd.f32 %v3401_v4, %v5713_v39  ;;  %v5725_v31 = vpop.f32.mrb[151].mxu0  ;;  %v3468_v19 = vmax.f32 %v3398_v8, 0.0 }
 0xb88   : > { %v3469_v2 = vmax.f32 %v3402_v45, 0.0 }
 0xb8a   : > { %v3483_v25 = vpack.c.bf16 %v3469_v2, %v3468_v19  ;;  %v5766_v19 = vld [vmem:[%s5855_s10 + $0x5] ss:$0 sm:$0xff]  ;;  %v5770_v2 = vrot.slane %v5709_v56, %v4982_v6 }
 0xb8b   : > { %v3407_v13 = vpop.f32.mrb[152].mxu0 }
 0xb8c   : > { %v3408_v11 = vadd.f32 %v3407_v13, %v5713_v39  ;;  %v5728_v28 = vpop.f32.mrb[153].mxu0  ;;  %4377 = vmatmul.mubr.bf16.vlgmr.msra.gmra.mrb[112].mxu1 %v3483_v25  ;;  %v3390_v6 = vadd.f32 %v5716_v1, %v5770_v2 }
 0xb8d   : > { %v3411_v24 = vpop.f32.mrb[154].mxu0 }
 0xb8e   : > { %v3412_v23 = vadd.f32 %v3411_v24, %v5713_v39  ;;  %v5731_v49 = vpop.f32.mrb[155].mxu0  ;;  %v3470_v22 = vmax.f32 %v3408_v11, 0.0 }
 0xb90   : > { %v3471_v16 = vmax.f32 %v3412_v23, 0.0  ;;  %v3400_v23 = vadd.f32 %v5722_v18, %v5770_v2  ;;  %v3404_v18 = vadd.f32 %v5725_v31, %v5770_v2 }
 0xb92   : > { %v3484_v38 = vpack.c.bf16 %v3471_v16, %v3470_v22 }
 0xb93   : > { %v3417_v32 = vpop.f32.mrb[156].mxu0 }
 0xb94   : > { %v3418_v59 = vadd.f32 %v3417_v32, %v5713_v39  ;;  %v5734_v12 = vpop.f32.mrb[157].mxu0  ;;  %4380 = vmatprep.mubr.bf16.mxu1 %v3484_v38 }
 0xb95   : > { %v3421_v27 = vpop.f32.mrb[158].mxu0 }
 0xb96   : > { %v3422_v20 = vadd.f32 %v3421_v27, %v5713_v39  ;;  %v5737_v60 = vpop.f32.mrb[159].mxu0  ;;  %v3472_v48 = vmax.f32 %v3418_v59, 0.0 }
 0xb98   : > { %v3473_v40 = vmax.f32 %v3422_v20, 0.0  ;;  %v3394_v20 = vadd.f32 %v5719_v26, %v5770_v2  ;;  %v3420_v26 = vadd.f32 %v5734_v12, %v5770_v2  ;;  %v3414_v12 = vadd.f32 %v5731_v49, %v5770_v2 }
 0xb9a   : > { %v3485_v51 = vpack.c.bf16 %v3473_v40, %v3472_v48 }
 0xb9b   : > { %v3427_v52 = vpop.f32.mrb[160].mxu0 }
 0xb9c   : > { %v3428_v37 = vadd.f32 %v3427_v52, %v5713_v39  ;;  %v5740_v57 = vpop.f32.mrb[161].mxu0  ;;  %4381 = vmatmul.mubr.bf16.gmra.mrb[116].mxu1 %v3485_v51 }
 0xb9d   : > { %v3431_v54 = vpop.f32.mrb[162].mxu0 }
 0xb9e   : > { %v3432_v58 = vadd.f32 %v3431_v54, %v5713_v39  ;;  %v5743_v34 = vpop.f32.mrb[163].mxu0  ;;  %v3474_v35 = vmax.f32 %v3428_v37, 0.0 }
 0xba0   : > { %v3475_v55 = vmax.f32 %v3432_v58, 0.0 }
 0xba2   : > { %v3486_v46 = vpack.c.bf16 %v3475_v55, %v3474_v35 }
 0xba3   : > { %v3437_v50 = vpop.f32.mrb[164].mxu0 }
 0xba4   : > { %v3438_v47 = vadd.f32 %v3437_v50, %v5713_v39  ;;  %v5746_v9 = vpop.f32.mrb[165].mxu0  ;;  %4384 = vmatprep.mubr.bf16.mxu1 %v3486_v46  ;;  %v3410_v50 = vadd.f32 %v5728_v28, %v5770_v2 }
 0xba5   : > { %v3441_v33 = vpop.f32.mrb[166].mxu0  ;;  %v3440_v49 = vadd.f32 %v5746_v9, %v5770_v2  ;;  %v3434_v9 = vadd.f32 %v5743_v34, %v5770_v2 }
 0xba6   : > { %v3442_v62 = vadd.f32 %v3441_v33, %v5713_v39  ;;  %v5749_v41 = vpop.f32.mrb[167].mxu0  ;;  %v3476_v10 = vmax.f32 %v3438_v47, 0.0 }
 0xba8   : > { %v3477_v15 = vmax.f32 %v3442_v62, 0.0  ;;  %v3424_v62 = vadd.f32 %v5737_v60, %v5770_v2 }
 0xbaa   : > { %v3487_v53 = vpack.c.bf16 %v3477_v15, %v3476_v10 }
 0xbab   : > { %v3447_v44 = vpop.f32.mrb[168].mxu0 }
 0xbac   : > { %v3448_v42 = vadd.f32 %v3447_v44, %v5713_v39  ;;  %v5752_v17 = vpop.f32.mrb[169].mxu0  ;;  %4385 = vmatmul.mubr.bf16.gmra.mrb[120].mxu1 %v3487_v53 }
 0xbad   : > { %v3451_v5 = vpop.f32.mrb[170].mxu0 }
 0xbae   : > { %v3452_v36 = vadd.f32 %v3451_v5, %v5713_v39  ;;  %v5755_v43 = vpop.f32.mrb[171].mxu0  ;;  %v3478_v0 = vmax.f32 %v3448_v42, 0.0 }
 0xbb0   : > { %v3479_v7 = vmax.f32 %v3452_v36, 0.0 }
 0xbb2   : > { %v3488_v63 = vpack.c.bf16 %v3479_v7, %v3478_v0 }
 0xbb3   : > { %v3457_v3 = vpop.f32.mrb[172].mxu0 }
 0xbb4   : > { %v3458_v29 = vadd.f32 %v3457_v3, %v5713_v39  ;;  %v5758_v14 = vpop.f32.mrb[173].mxu0  ;;  %4388 = vmatprep.mubr.bf16.mxu1 %v3488_v63 }
 0xbb5   : > { %v3461_v21 = vpop.f32.mrb[174].mxu0  ;;  %v3460_v34 = vadd.f32 %v5758_v14, %v5770_v2  ;;  %v3454_v14 = vadd.f32 %v5755_v43, %v5770_v2 }
 0xbb6   : > { %v3462_v61 = vadd.f32 %v3461_v21, %v5713_v39  ;;  %v5761_v30 = vpop.f32.mrb[175].mxu0  ;;  %v3480_v8 = vmax.f32 %v3458_v29, 0.0  ;;  %v3430_v21 = vadd.f32 %v5740_v57, %v5770_v2 }
 0xbb8   : > { %v3481_v4 = vmax.f32 %v3462_v61, 0.0 }
 0xbba   : > { %v3489_v45 = vpack.c.bf16 %v3481_v4, %v3480_v8  ;;  %v3444_v4 = vadd.f32 %v5749_v41, %v5770_v2 }
 0xbbc   : > { %4389 = vmatmul.mubr.bf16.gmra.mrb[124].mxu1 %v3489_v45 }
 0xc5f   : > { %v4378_v25 = vpop.f32.mrb[112].mxu1 }
 0xc60   : > { %v3603_v13 = vadd.f32 %v4378_v25, %v5766_v19  ;;  %v3594_v39 = vpop.f32.mrb[113].mxu1 }
 0xc61   : > { %v3595_v11 = vadd.f32 %v5766_v19, %v3594_v39  ;;  %v4379_v24 = vpop.f32.mrb[114].mxu1 }
 0xc62   : > { %v3659_v22 = vmax.f32 %v3603_v13, 0.0  ;;  %v3606_v16 = vadd.f32 %v4379_v24, %v5766_v19  ;;  %v3597_v38 = vpop.f32.mrb[115].mxu1 }
 0xc63   : > { %v3657_v56 = vmax.f32 %v3595_v11, 0.0  ;;  %v3598_v32 = vadd.f32 %v5766_v19, %v3597_v38 }
 0xc64   : > { %v3675_v59 = vadd.f32 %v3659_v22, %v3400_v23  ;;  %v3660_v27 = vmax.f32 %v3606_v16, 0.0 }
 0xc65   : > { %v3673_v48 = vadd.f32 %v3657_v56, %v3390_v6  ;;  %v3658_v40 = vmax.f32 %v3598_v32, 0.0  ;;  %v3450_v32 = vadd.f32 %v5752_v17, %v5770_v2 }
 0xc66   : > { %3691 = vst [vmem:[%s5781_s23 + $0x10] sm:$0xff] %v3675_v59  ;;  %v3676_v51 = vadd.f32 %v3660_v27, %v3404_v18  ;;  %v3464_v27 = vadd.f32 %v5761_v30, %v5770_v2 }
 0xc67   : > { %3689 = vst [vmem:[%s5781_s23] sm:$0xff] %v3673_v48  ;;  %v3674_v52 = vadd.f32 %v3658_v40, %v3394_v20 }
 0xc68   : > { %3692 = vst [vmem:[%s5781_s23 + $0x18] sm:$0xff] %v3676_v51 }
 0xc69   : > { %3690 = vst [vmem:[%s5781_s23 + $0x8] sm:$0xff] %v3674_v52 }
 0xc6f   : > { %v4382_v1 = vpop.f32.mrb[116].mxu1 }
 0xc70   : > { %v3619_v37 = vadd.f32 %v4382_v1, %v5766_v19  ;;  %v3610_v54 = vpop.f32.mrb[117].mxu1 }
 0xc71   : > { %v3611_v31 = vadd.f32 %v5766_v19, %v3610_v54  ;;  %v4383_v58 = vpop.f32.mrb[118].mxu1 }
 0xc72   : > { %v3663_v35 = vmax.f32 %v3619_v37, 0.0  ;;  %v3622_v55 = vadd.f32 %v4383_v58, %v5766_v19  ;;  %v3613_v46 = vpop.f32.mrb[119].mxu1 }
 0xc73   : > { %v3661_v47 = vmax.f32 %v3611_v31, 0.0  ;;  %v3614_v33 = vadd.f32 %v5766_v19, %v3613_v46 }
 0xc74   : > { %v3679_v10 = vadd.f32 %v3663_v35, %v3420_v26  ;;  %v3664_v15 = vmax.f32 %v3622_v55, 0.0 }
 0xc75   : > { %v3677_v53 = vadd.f32 %v3661_v47, %v3410_v50  ;;  %v3662_v44 = vmax.f32 %v3614_v33, 0.0 }
 0xc76   : > { %3695 = vst [vmem:[%s5781_s23 + $0x30] sm:$0xff] %v3679_v10  ;;  %v3680_v42 = vadd.f32 %v3664_v15, %v3424_v62 }
 0xc77   : > { %3693 = vst [vmem:[%s5781_s23 + $0x20] sm:$0xff] %v3677_v53  ;;  %v3678_v5 = vadd.f32 %v3662_v44, %v3414_v12 }
 0xc78   : > { %3696 = vst [vmem:[%s5781_s23 + $0x38] sm:$0xff] %v3680_v42 }
 0xc79   : > { %3694 = vst [vmem:[%s5781_s23 + $0x28] sm:$0xff] %v3678_v5 }
 0xc7f   : > { %v4386_v28 = vpop.f32.mrb[120].mxu1 }
 0xc80   : > { %v3635_v36 = vadd.f32 %v4386_v28, %v5766_v19  ;;  %v3626_v0 = vpop.f32.mrb[121].mxu1 }
 0xc81   : > { %v3627_v60 = vadd.f32 %v5766_v19, %v3626_v0  ;;  %v4387_v7 = vpop.f32.mrb[122].mxu1 }
 0xc82   : > { %v3667_v63 = vmax.f32 %v3635_v36, 0.0  ;;  %v3638_v3 = vadd.f32 %v4387_v7, %v5766_v19  ;;  %v3629_v29 = vpop.f32.mrb[123].mxu1 }
 0xc83   : > { %v3665_v61 = vmax.f32 %v3627_v60, 0.0  ;;  %v3630_v8 = vadd.f32 %v5766_v19, %v3629_v29 }
 0xc84   : > { %v3683_v45 = vadd.f32 %v3667_v63, %v3440_v49  ;;  %v3668_v25 = vmax.f32 %v3638_v3, 0.0 }
 0xc85   : > { %v3681_v13 = vadd.f32 %v3665_v61, %v3430_v21  ;;  %v3666_v39 = vmax.f32 %v3630_v8, 0.0 }
 0xc86   : > { %3699 = vst [vmem:[%s5781_s23 + $0x50] sm:$0xff] %v3683_v45  ;;  %v3684_v11 = vadd.f32 %v3668_v25, %v3444_v4 }
 0xc87   : > { %3697 = vst [vmem:[%s5781_s23 + $0x40] sm:$0xff] %v3681_v13  ;;  %v3682_v24 = vadd.f32 %v3666_v39, %v3434_v9 }
 0xc88   : > { %3700 = vst [vmem:[%s5781_s23 + $0x58] sm:$0xff] %v3684_v11 }
 0xc89   : > { %3698 = vst [vmem:[%s5781_s23 + $0x48] sm:$0xff] %v3682_v24 }
 0xc8f   : > { %v4390_v57 = vpop.f32.mrb[124].mxu1 }
 0xc90   : > { %v3651_v23 = vadd.f32 %v4390_v57, %v5766_v19  ;;  %v3642_v22 = vpop.f32.mrb[125].mxu1 }
 0xc91   : > { %v3643_v41 = vadd.f32 %v5766_v19, %v3642_v22  ;;  %v4391_v16 = vpop.f32.mrb[126].mxu1 }
 0xc92   : > { %v3671_v38 = vmax.f32 %v3651_v23, 0.0  ;;  %v3654_v6 = vadd.f32 %v4391_v16, %v5766_v19  ;;  %v3645_v56 = vpop.f32.mrb[127].mxu1 }
 0xc93   : > { %v3669_v18 = vmax.f32 %v3643_v41, 0.0  ;;  %v3646_v59 = vadd.f32 %v5766_v19, %v3645_v56 }
 0xc94   : > { %v3687_v20 = vadd.f32 %v3671_v38, %v3460_v34  ;;  %v3672_v48 = vmax.f32 %v3654_v6, 0.0 }
 0xc95   : > { %v3685_v40 = vadd.f32 %v3669_v18, %v3450_v32  ;;  %v3670_v51 = vmax.f32 %v3646_v59, 0.0 }
 0xc96   : > { %3703 = vst [vmem:[%s5781_s23 + $0x70] sm:$0xff] %v3687_v20  ;;  %v3688_v52 = vadd.f32 %v3672_v48, %v3464_v27 }
 0xc97   : > { %3701 = vst [vmem:[%s5781_s23 + $0x60] sm:$0xff] %v3685_v40  ;;  %v3686_v1 = vadd.f32 %v3670_v51, %v3454_v14 }
 0xc98   : > { %3704 = vst [vmem:[%s5781_s23 + $0x78] sm:$0xff] %v3688_v52 }
 0xc99   : > { %3702 = vst [vmem:[%s5781_s23 + $0x68] sm:$0xff] %v3686_v1 }
 0xc9a PF: > { %s22_s17 = sadd.s32 1, %s4689_s17  }
 0xc9b   : > { %p19_p3 = scmp.ge.s32.totalorder %s22_s17, 4  }
 0xc9d   :  { %21 = sbr.rel (!%p19_p3) target bundleno = 1 (0x1), region = 117 }
 0xca4   :  { %3727 = vsyncpa [#allocation3], 1 }
 0xca5   :  { %3729 = vsyncpa [#allocation3 + $0x1], 1 }

</bundles_post_ra>
